<compile_context>
chip_gen: v6e
topology: v6e:2x2x1
jax: 0.10.0
libtpu: 0.0.40
codegen_flags: <defaults>
</compile_context>

<pallas_src>
import functools

import jax
import jax.numpy as jnp
from jax import lax
from jax.experimental import pallas as pl
from jax.experimental.pallas import tpu as pltpu


def ppeg_kernel(feat_ref, k7m_ref, bias_ref, k3_ref, out_ref, pad_ref):
    """One batch chunk per grid step.

    feat_ref: (bt, H, W, C)   un-padded NHWC image chunk
    k7m_ref : (7, 7, C)       merged depthwise taps (7x7 + centered 5x5 + identity)
    bias_ref: (1, C)          combined bias b7 + b5 + b3
    k3_ref  : (9, C, C)       dense 3x3 weights, tap-major (t = dh*3 + dw), (Cin, Cout)
    out_ref : (bt, H, W, C)
    pad_ref : VMEM scratch (bt, H+6, W+6, C) f32   zero-padded image (pad=3 each side)
    """
    bt, H, W, C = feat_ref.shape
    M = bt * H * W
    Wp = W + 6

    # Zero only the 3-wide halo (O(perimeter), not O(area)), then write the interior.
    pad_ref[:, 0:3, :, :] = jnp.zeros((bt, 3, Wp, C), jnp.float32)
    pad_ref[:, 3 + H:, :, :] = jnp.zeros((bt, 3, Wp, C), jnp.float32)
    pad_ref[:, 3:3 + H, 0:3, :] = jnp.zeros((bt, H, 3, C), jnp.float32)
    pad_ref[:, 3:3 + H, 3 + W:, :] = jnp.zeros((bt, H, 3, C), jnp.float32)
    pad_ref[:, 3:3 + H, 3:3 + W, :] = feat_ref[...].astype(jnp.float32)

    bias = bias_ref[0, :].astype(jnp.float32)                       # (C,)
    acc = jnp.broadcast_to(bias[None, None, None, :], (bt, H, W, C))
    mm = jnp.zeros((M, C), jnp.float32)

    # Single 49-tap sweep.  Every tap feeds the depthwise accumulate (VPU); the 9
    # centre taps additionally feed the dense 3x3 conv as MXU matmuls, so each
    # window is loaded from VMEM exactly once and compute overlaps across units.
    for dh in range(7):
        for dw in range(7):
            win = pad_ref[:, dh:dh + H, dw:dw + W, :]               # (bt, H, W, C) f32
            w = k7m_ref[dh, dw, :]                                  # (C,)
            acc = acc + win * w[None, None, None, :]
            if 2 <= dh <= 4 and 2 <= dw <= 4:
                t = (dh - 2) * 3 + (dw - 2)
                mm = mm + jnp.dot(win.reshape(M, C), k3_ref[t],
                                  preferred_element_type=jnp.float32)

    out_ref[...] = (acc + mm.reshape(bt, H, W, C)).astype(out_ref.dtype)


def ppeg_forward(x, H, W, params, *, batch_block=None):
    """x: (B, 1 + H*W, C).  Returns (B, 1 + H*W, C)."""
    k7, b7, k5, b5, k3, b3 = params
    B, P, C = x.shape
    assert P == 1 + H * W

    # ---- one-time parameter folding (cheap, fused under jit) ----------------
    # 5x5 depthwise folds into the centre 5x5 of the 7x7 kernel; the residual
    # (identity) term folds into the centre tap; the three biases are summed.
    k7m = k7.astype(jnp.float32)
    k7m = k7m.at[1:6, 1:6, :].add(k5.astype(jnp.float32))
    k7m = k7m.at[3, 3, :].add(1.0)
    bias_all = (b7 + b5 + b3).astype(jnp.float32).reshape(1, C)
    k3t = k3.astype(jnp.float32).reshape(9, C, C)         # tap-major (t, Cin, Cout)

    cls_token = x[:, :1, :]
    feat = x[:, 1:, :].reshape(B, H, W, C)                # NHWC, free reshape

    # Batch tiling: fold batch into the per-step work while keeping at least two
    # parallel grid steps when possible (megacore).
    if batch_block is None:
        batch_block = B // 2 if (B >= 2 and B % 2 == 0) else 1
    assert B % batch_block == 0
    num_steps = B // batch_block

    # Explicit VMEM budget (double-buffered blocks + weights + padded scratch).
    esize = jnp.dtype(x.dtype).itemsize
    blk = batch_block * H * W * C * esize
    weights = (7 * 7 * C + C + 9 * C * C) * 4
    pad_scratch = batch_block * (H + 6) * (W + 6) * C * 4
    est = 2 * (2 * blk) + 2 * weights + pad_scratch
    vmem_limit = int(min(64 * 1024 * 1024, max(2 * est, 16 * 1024 * 1024)))

    out_img = pl.pallas_call(
        ppeg_kernel,
        out_shape=jax.ShapeDtypeStruct((B, H, W, C), x.dtype),
        grid=(num_steps,),
        in_specs=[
            pl.BlockSpec((batch_block, H, W, C), lambda b: (b, 0, 0, 0)),
            pl.BlockSpec((7, 7, C), lambda b: (0, 0, 0)),
            pl.BlockSpec((1, C), lambda b: (0, 0)),
            pl.BlockSpec((9, C, C), lambda b: (0, 0, 0)),
        ],
        out_specs=pl.BlockSpec((batch_block, H, W, C), lambda b: (b, 0, 0, 0)),
        scratch_shapes=[
            pltpu.VMEM((batch_block, H + 6, W + 6, C), jnp.float32),
        ],
        compiler_params=pltpu.CompilerParams(
            dimension_semantics=("parallel",),
            vmem_limit_bytes=vmem_limit,
        ),
    )(feat, k7m, bias_all, k3t)

    out_seq = out_img.reshape(B, H * W, C)
    return jnp.concatenate([cls_token, out_seq], axis=1)


def ppeg_reference(x, H, W, params):
    """Pure-JAX reference (lax.conv) mirroring the PyTorch module (unfolded params)."""
    k7, b7, k5, b5, k3, b3 = params
    B, P, C = x.shape
    cls_token = x[:, :1, :]
    img = x[:, 1:, :].reshape(B, H, W, C).astype(jnp.float32)
    dn = ('NHWC', 'HWIO', 'NHWC')

    def dwconv(img, k, b, pad):
        rhs = k[:, :, None, :].astype(jnp.float32)        # (kh, kw, 1, C)
        y = lax.conv_general_dilated(img, rhs, (1, 1), [(pad, pad), (pad, pad)],
                                     dimension_numbers=dn, feature_group_count=C,
                                     precision=lax.Precision.HIGHEST)
        return y + b.astype(jnp.float32)[None, None, :, :]

    def conv3(img, k, b):
        y = lax.conv_general_dilated(img, k.astype(jnp.float32), (1, 1),
                                     [(1, 1), (1, 1)], dimension_numbers=dn,
                                     precision=lax.Precision.HIGHEST)
        return y + b.astype(jnp.float32)[None, None, :, :]

    out = img + dwconv(img, k7, b7, 3) + dwconv(img, k5, b5, 2) + conv3(img, k3, b3)
    out = out.reshape(B, H * W, C).astype(x.dtype)
    return jnp.concatenate([cls_token, out], axis=1)


def make_params(key, C, dtype=jnp.float32):
    ks = jax.random.split(key, 6)
    k7 = jax.random.normal(ks[0], (7, 7, C), dtype) * 0.05      # depthwise per-channel taps
    b7 = jax.random.normal(ks[1], (1, C), dtype) * 0.05
    k5 = jax.random.normal(ks[2], (5, 5, C), dtype) * 0.05
    b5 = jax.random.normal(ks[3], (1, C), dtype) * 0.05
    k3 = jax.random.normal(ks[4], (3, 3, C, C), dtype) * 0.05   # dense HWIO (kh, kw, Cin, Cout)
    b3 = jax.random.normal(ks[5], (1, C), dtype) * 0.05
    return (k7, b7, k5, b5, k3, b3)


if __name__ == "__main__":
    key = jax.random.PRNGKey(0)
    # Small but lane-dense shapes (real TransMIL uses dim=512; C kept a multiple of 128).
    B, C, H, W = 2, 128, 8, 8
    P = 1 + H * W

    kx, kp = jax.random.split(key)
    x = jax.random.normal(kx, (B, P, C), jnp.float32)
    params = make_params(kp, C)

    fwd = jax.jit(functools.partial(ppeg_forward, H=H, W=W, params=params))
    out = fwd(x)
    jax.block_until_ready(out)

    ref = ppeg_reference(x, H, W, params)
    assert out.shape == (B, P, C)
    max_err = float(jnp.max(jnp.abs(out - ref)))
    assert jnp.allclose(out, ref, atol=1e-3, rtol=1e-3), (
        f"mismatch vs JAX conv reference (max abs err {max_err})")

    print("KERNEL_OK")
</pallas_src>

<mosaic_0001>
module attributes {stable_mosaic.version = 11 : i64} {
  func.func @ppeg_kernel(%arg0: i32, %arg1: memref<1x8x8x128xf32, #tpu.memory_space<vmem>>, %arg2: memref<7x7x128xf32, #tpu.memory_space<vmem>>, %arg3: memref<1x128xf32, #tpu.memory_space<vmem>>, %arg4: memref<9x128x128xf32, #tpu.memory_space<vmem>>, %arg5: memref<1x8x8x128xf32, #tpu.memory_space<vmem>>, %arg6: memref<1x14x14x128xf32, #tpu.memory_space<vmem>>) attributes {dimension_semantics = [#tpu.dimension_semantics<parallel>], iteration_bounds = array<i64: 2>, scalar_prefetch = 0 : i64, scratch_operands = 1 : i64, tpu.core_type = #tpu.core_type<tc>, window_params = [{transform_indices = @transform_0, window_bounds = array<i64: 1, 8, 8, 128>}, {pipeline_mode = #tpu.pipeline_mode<synchronous>, transform_indices = @transform_1, window_bounds = array<i64: 7, 7, 128>}, {pipeline_mode = #tpu.pipeline_mode<synchronous>, transform_indices = @transform_2, window_bounds = array<i64: 1, 128>}, {pipeline_mode = #tpu.pipeline_mode<synchronous>, transform_indices = @transform_3, window_bounds = array<i64: 9, 128, 128>}, {transform_indices = @transform_4, window_bounds = array<i64: 1, 8, 8, 128>}]} {
    %cst = arith.constant 0.000000e+00 : f32
    %0 = vector.broadcast %cst : f32 to vector<1x3x14x128xf32>
    %c0 = arith.constant 0 : index
    %c0_0 = arith.constant 0 : index
    %c0_1 = arith.constant 0 : index
    %c0_2 = arith.constant 0 : index
    %1 = vector.load %arg6[%c0, %c0_0, %c0_1, %c0_2] : memref<1x14x14x128xf32, #tpu.memory_space<vmem>>, vector<1x3x14x128xf32>
    tpu.vector_store %arg6[%c0, %c0_0, %c0_1, %c0_2], %0 {strides = array<i32>} : memref<1x14x14x128xf32, #tpu.memory_space<vmem>>, vector<1x3x14x128xf32>,
    %cst_3 = arith.constant 0.000000e+00 : f32
    %2 = vector.broadcast %cst_3 : f32 to vector<1x3x14x128xf32>
    %c0_4 = arith.constant 0 : index
    %c11 = arith.constant 11 : index
    %c0_5 = arith.constant 0 : index
    %c0_6 = arith.constant 0 : index
    %3 = vector.load %arg6[%c0_4, %c11, %c0_5, %c0_6] : memref<1x14x14x128xf32, #tpu.memory_space<vmem>>, vector<1x3x14x128xf32>
    tpu.vector_store %arg6[%c0_4, %c11, %c0_5, %c0_6], %2 {strides = array<i32>} : memref<1x14x14x128xf32, #tpu.memory_space<vmem>>, vector<1x3x14x128xf32>,
    %cst_7 = arith.constant 0.000000e+00 : f32
    %4 = vector.broadcast %cst_7 : f32 to vector<1x8x3x128xf32>
    %c0_8 = arith.constant 0 : index
    %c3 = arith.constant 3 : index
    %c0_9 = arith.constant 0 : index
    %c0_10 = arith.constant 0 : index
    %5 = vector.load %arg6[%c0_8, %c3, %c0_9, %c0_10] : memref<1x14x14x128xf32, #tpu.memory_space<vmem>>, vector<1x8x3x128xf32>
    tpu.vector_store %arg6[%c0_8, %c3, %c0_9, %c0_10], %4 {strides = array<i32>} : memref<1x14x14x128xf32, #tpu.memory_space<vmem>>, vector<1x8x3x128xf32>,
    %cst_11 = arith.constant 0.000000e+00 : f32
    %6 = vector.broadcast %cst_11 : f32 to vector<1x8x3x128xf32>
    %c0_12 = arith.constant 0 : index
    %c3_13 = arith.constant 3 : index
    %c11_14 = arith.constant 11 : index
    %c0_15 = arith.constant 0 : index
    %7 = vector.load %arg6[%c0_12, %c3_13, %c11_14, %c0_15] : memref<1x14x14x128xf32, #tpu.memory_space<vmem>>, vector<1x8x3x128xf32>
    tpu.vector_store %arg6[%c0_12, %c3_13, %c11_14, %c0_15], %6 {strides = array<i32>} : memref<1x14x14x128xf32, #tpu.memory_space<vmem>>, vector<1x8x3x128xf32>,
    %c0_16 = arith.constant 0 : index
    %c0_17 = arith.constant 0 : index
    %c0_18 = arith.constant 0 : index
    %c0_19 = arith.constant 0 : index
    %8 = vector.load %arg1[%c0_16, %c0_17, %c0_18, %c0_19] : memref<1x8x8x128xf32, #tpu.memory_space<vmem>>, vector<1x8x8x128xf32>
    %c0_20 = arith.constant 0 : index
    %c3_21 = arith.constant 3 : index
    %c3_22 = arith.constant 3 : index
    %c0_23 = arith.constant 0 : index
    %9 = vector.load %arg6[%c0_20, %c3_21, %c3_22, %c0_23] : memref<1x14x14x128xf32, #tpu.memory_space<vmem>>, vector<1x8x8x128xf32>
    tpu.vector_store %arg6[%c0_20, %c3_21, %c3_22, %c0_23], %8 {strides = array<i32>} : memref<1x14x14x128xf32, #tpu.memory_space<vmem>>, vector<1x8x8x128xf32>,
    %c0_24 = arith.constant 0 : index
    %c0_25 = arith.constant 0 : index
    %10 = vector.load %arg3[%c0_24, %c0_25] : memref<1x128xf32, #tpu.memory_space<vmem>>, vector<1x128xf32>
    %11 = vector.shape_cast %10 : vector<1x128xf32> to vector<128xf32>
    %12 = vector.shape_cast %11 : vector<128xf32> to vector<1x1x1x128xf32>
    %13 = vector.shape_cast %12 : vector<1x1x1x128xf32> to vector<1x1x1x128xf32>
    %14 = vector.broadcast %13 : vector<1x1x1x128xf32> to vector<1x8x8x128xf32>
    %cst_26 = arith.constant 0.000000e+00 : f32
    %15 = vector.broadcast %cst_26 : f32 to vector<64x128xf32>
    %c0_27 = arith.constant 0 : index
    %c0_28 = arith.constant 0 : index
    %c0_29 = arith.constant 0 : index
    %c0_30 = arith.constant 0 : index
    %16 = vector.load %arg6[%c0_27, %c0_28, %c0_29, %c0_30] : memref<1x14x14x128xf32, #tpu.memory_space<vmem>>, vector<1x8x8x128xf32>
    %c0_31 = arith.constant 0 : index
    %c0_32 = arith.constant 0 : index
    %c0_33 = arith.constant 0 : index
    %17 = vector.load %arg2[%c0_31, %c0_32, %c0_33] : memref<7x7x128xf32, #tpu.memory_space<vmem>>, vector<1x1x128xf32>
    %18 = vector.shape_cast %17 : vector<1x1x128xf32> to vector<128xf32>
    %19 = vector.shape_cast %18 : vector<128xf32> to vector<1x1x1x128xf32>
    %20 = vector.broadcast %19 : vector<1x1x1x128xf32> to vector<1x8x8x128xf32>
    %21 = arith.mulf %16, %20 : vector<1x8x8x128xf32>
    %22 = arith.addf %14, %21 : vector<1x8x8x128xf32>
    %c0_34 = arith.constant 0 : index
    %c0_35 = arith.constant 0 : index
    %c1 = arith.constant 1 : index
    %c0_36 = arith.constant 0 : index
    %23 = vector.load %arg6[%c0_34, %c0_35, %c1, %c0_36] : memref<1x14x14x128xf32, #tpu.memory_space<vmem>>, vector<1x8x8x128xf32>
    %c0_37 = arith.constant 0 : index
    %c1_38 = arith.constant 1 : index
    %c0_39 = arith.constant 0 : index
    %24 = vector.load %arg2[%c0_37, %c1_38, %c0_39] : memref<7x7x128xf32, #tpu.memory_space<vmem>>, vector<1x1x128xf32>
    %25 = vector.shape_cast %24 : vector<1x1x128xf32> to vector<128xf32>
    %26 = vector.shape_cast %25 : vector<128xf32> to vector<1x1x1x128xf32>
    %27 = vector.broadcast %26 : vector<1x1x1x128xf32> to vector<1x8x8x128xf32>
    %28 = arith.mulf %23, %27 : vector<1x8x8x128xf32>
    %29 = arith.addf %22, %28 : vector<1x8x8x128xf32>
    %c0_40 = arith.constant 0 : index
    %c0_41 = arith.constant 0 : index
    %c2 = arith.constant 2 : index
    %c0_42 = arith.constant 0 : index
    %30 = vector.load %arg6[%c0_40, %c0_41, %c2, %c0_42] : memref<1x14x14x128xf32, #tpu.memory_space<vmem>>, vector<1x8x8x128xf32>
    %c0_43 = arith.constant 0 : index
    %c2_44 = arith.constant 2 : index
    %c0_45 = arith.constant 0 : index
    %31 = vector.load %arg2[%c0_43, %c2_44, %c0_45] : memref<7x7x128xf32, #tpu.memory_space<vmem>>, vector<1x1x128xf32>
    %32 = vector.shape_cast %31 : vector<1x1x128xf32> to vector<128xf32>
    %33 = vector.shape_cast %32 : vector<128xf32> to vector<1x1x1x128xf32>
    %34 = vector.broadcast %33 : vector<1x1x1x128xf32> to vector<1x8x8x128xf32>
    %35 = arith.mulf %30, %34 : vector<1x8x8x128xf32>
    %36 = arith.addf %29, %35 : vector<1x8x8x128xf32>
    %c0_46 = arith.constant 0 : index
    %c0_47 = arith.constant 0 : index
    %c3_48 = arith.constant 3 : index
    %c0_49 = arith.constant 0 : index
    %37 = vector.load %arg6[%c0_46, %c0_47, %c3_48, %c0_49] : memref<1x14x14x128xf32, #tpu.memory_space<vmem>>, vector<1x8x8x128xf32>
    %c0_50 = arith.constant 0 : index
    %c3_51 = arith.constant 3 : index
    %c0_52 = arith.constant 0 : index
    %38 = vector.load %arg2[%c0_50, %c3_51, %c0_52] : memref<7x7x128xf32, #tpu.memory_space<vmem>>, vector<1x1x128xf32>
    %39 = vector.shape_cast %38 : vector<1x1x128xf32> to vector<128xf32>
    %40 = vector.shape_cast %39 : vector<128xf32> to vector<1x1x1x128xf32>
    %41 = vector.broadcast %40 : vector<1x1x1x128xf32> to vector<1x8x8x128xf32>
    %42 = arith.mulf %37, %41 : vector<1x8x8x128xf32>
    %43 = arith.addf %36, %42 : vector<1x8x8x128xf32>
    %c0_53 = arith.constant 0 : index
    %c0_54 = arith.constant 0 : index
    %c4 = arith.constant 4 : index
    %c0_55 = arith.constant 0 : index
    %44 = vector.load %arg6[%c0_53, %c0_54, %c4, %c0_55] : memref<1x14x14x128xf32, #tpu.memory_space<vmem>>, vector<1x8x8x128xf32>
    %c0_56 = arith.constant 0 : index
    %c4_57 = arith.constant 4 : index
    %c0_58 = arith.constant 0 : index
    %45 = vector.load %arg2[%c0_56, %c4_57, %c0_58] : memref<7x7x128xf32, #tpu.memory_space<vmem>>, vector<1x1x128xf32>
    %46 = vector.shape_cast %45 : vector<1x1x128xf32> to vector<128xf32>
    %47 = vector.shape_cast %46 : vector<128xf32> to vector<1x1x1x128xf32>
    %48 = vector.broadcast %47 : vector<1x1x1x128xf32> to vector<1x8x8x128xf32>
    %49 = arith.mulf %44, %48 : vector<1x8x8x128xf32>
    %50 = arith.addf %43, %49 : vector<1x8x8x128xf32>
    %c0_59 = arith.constant 0 : index
    %c0_60 = arith.constant 0 : index
    %c5 = arith.constant 5 : index
    %c0_61 = arith.constant 0 : index
    %51 = vector.load %arg6[%c0_59, %c0_60, %c5, %c0_61] : memref<1x14x14x128xf32, #tpu.memory_space<vmem>>, vector<1x8x8x128xf32>
    %c0_62 = arith.constant 0 : index
    %c5_63 = arith.constant 5 : index
    %c0_64 = arith.constant 0 : index
    %52 = vector.load %arg2[%c0_62, %c5_63, %c0_64] : memref<7x7x128xf32, #tpu.memory_space<vmem>>, vector<1x1x128xf32>
    %53 = vector.shape_cast %52 : vector<1x1x128xf32> to vector<128xf32>
    %54 = vector.shape_cast %53 : vector<128xf32> to vector<1x1x1x128xf32>
    %55 = vector.broadcast %54 : vector<1x1x1x128xf32> to vector<1x8x8x128xf32>
    %56 = arith.mulf %51, %55 : vector<1x8x8x128xf32>
    %57 = arith.addf %50, %56 : vector<1x8x8x128xf32>
    %c0_65 = arith.constant 0 : index
    %c0_66 = arith.constant 0 : index
    %c6 = arith.constant 6 : index
    %c0_67 = arith.constant 0 : index
    %58 = vector.load %arg6[%c0_65, %c0_66, %c6, %c0_67] : memref<1x14x14x128xf32, #tpu.memory_space<vmem>>, vector<1x8x8x128xf32>
    %c0_68 = arith.constant 0 : index
    %c6_69 = arith.constant 6 : index
    %c0_70 = arith.constant 0 : index
    %59 = vector.load %arg2[%c0_68, %c6_69, %c0_70] : memref<7x7x128xf32, #tpu.memory_space<vmem>>, vector<1x1x128xf32>
    %60 = vector.shape_cast %59 : vector<1x1x128xf32> to vector<128xf32>
    %61 = vector.shape_cast %60 : vector<128xf32> to vector<1x1x1x128xf32>
    %62 = vector.broadcast %61 : vector<1x1x1x128xf32> to vector<1x8x8x128xf32>
    %63 = arith.mulf %58, %62 : vector<1x8x8x128xf32>
    %64 = arith.addf %57, %63 : vector<1x8x8x128xf32>
    %c0_71 = arith.constant 0 : index
    %c1_72 = arith.constant 1 : index
    %c0_73 = arith.constant 0 : index
    %c0_74 = arith.constant 0 : index
    %65 = vector.load %arg6[%c0_71, %c1_72, %c0_73, %c0_74] : memref<1x14x14x128xf32, #tpu.memory_space<vmem>>, vector<1x8x8x128xf32>
    %c1_75 = arith.constant 1 : index
    %c0_76 = arith.constant 0 : index
    %c0_77 = arith.constant 0 : index
    %66 = vector.load %arg2[%c1_75, %c0_76, %c0_77] : memref<7x7x128xf32, #tpu.memory_space<vmem>>, vector<1x1x128xf32>
    %67 = vector.shape_cast %66 : vector<1x1x128xf32> to vector<128xf32>
    %68 = vector.shape_cast %67 : vector<128xf32> to vector<1x1x1x128xf32>
    %69 = vector.broadcast %68 : vector<1x1x1x128xf32> to vector<1x8x8x128xf32>
    %70 = arith.mulf %65, %69 : vector<1x8x8x128xf32>
    %71 = arith.addf %64, %70 : vector<1x8x8x128xf32>
    %c0_78 = arith.constant 0 : index
    %c1_79 = arith.constant 1 : index
    %c1_80 = arith.constant 1 : index
    %c0_81 = arith.constant 0 : index
    %72 = vector.load %arg6[%c0_78, %c1_79, %c1_80, %c0_81] : memref<1x14x14x128xf32, #tpu.memory_space<vmem>>, vector<1x8x8x128xf32>
    %c1_82 = arith.constant 1 : index
    %c1_83 = arith.constant 1 : index
    %c0_84 = arith.constant 0 : index
    %73 = vector.load %arg2[%c1_82, %c1_83, %c0_84] : memref<7x7x128xf32, #tpu.memory_space<vmem>>, vector<1x1x128xf32>
    %74 = vector.shape_cast %73 : vector<1x1x128xf32> to vector<128xf32>
    %75 = vector.shape_cast %74 : vector<128xf32> to vector<1x1x1x128xf32>
    %76 = vector.broadcast %75 : vector<1x1x1x128xf32> to vector<1x8x8x128xf32>
    %77 = arith.mulf %72, %76 : vector<1x8x8x128xf32>
    %78 = arith.addf %71, %77 : vector<1x8x8x128xf32>
    %c0_85 = arith.constant 0 : index
    %c1_86 = arith.constant 1 : index
    %c2_87 = arith.constant 2 : index
    %c0_88 = arith.constant 0 : index
    %79 = vector.load %arg6[%c0_85, %c1_86, %c2_87, %c0_88] : memref<1x14x14x128xf32, #tpu.memory_space<vmem>>, vector<1x8x8x128xf32>
    %c1_89 = arith.constant 1 : index
    %c2_90 = arith.constant 2 : index
    %c0_91 = arith.constant 0 : index
    %80 = vector.load %arg2[%c1_89, %c2_90, %c0_91] : memref<7x7x128xf32, #tpu.memory_space<vmem>>, vector<1x1x128xf32>
    %81 = vector.shape_cast %80 : vector<1x1x128xf32> to vector<128xf32>
    %82 = vector.shape_cast %81 : vector<128xf32> to vector<1x1x1x128xf32>
    %83 = vector.broadcast %82 : vector<1x1x1x128xf32> to vector<1x8x8x128xf32>
    %84 = arith.mulf %79, %83 : vector<1x8x8x128xf32>
    %85 = arith.addf %78, %84 : vector<1x8x8x128xf32>
    %c0_92 = arith.constant 0 : index
    %c1_93 = arith.constant 1 : index
    %c3_94 = arith.constant 3 : index
    %c0_95 = arith.constant 0 : index
    %86 = vector.load %arg6[%c0_92, %c1_93, %c3_94, %c0_95] : memref<1x14x14x128xf32, #tpu.memory_space<vmem>>, vector<1x8x8x128xf32>
    %c1_96 = arith.constant 1 : index
    %c3_97 = arith.constant 3 : index
    %c0_98 = arith.constant 0 : index
    %87 = vector.load %arg2[%c1_96, %c3_97, %c0_98] : memref<7x7x128xf32, #tpu.memory_space<vmem>>, vector<1x1x128xf32>
    %88 = vector.shape_cast %87 : vector<1x1x128xf32> to vector<128xf32>
    %89 = vector.shape_cast %88 : vector<128xf32> to vector<1x1x1x128xf32>
    %90 = vector.broadcast %89 : vector<1x1x1x128xf32> to vector<1x8x8x128xf32>
    %91 = arith.mulf %86, %90 : vector<1x8x8x128xf32>
    %92 = arith.addf %85, %91 : vector<1x8x8x128xf32>
    %c0_99 = arith.constant 0 : index
    %c1_100 = arith.constant 1 : index
    %c4_101 = arith.constant 4 : index
    %c0_102 = arith.constant 0 : index
    %93 = vector.load %arg6[%c0_99, %c1_100, %c4_101, %c0_102] : memref<1x14x14x128xf32, #tpu.memory_space<vmem>>, vector<1x8x8x128xf32>
    %c1_103 = arith.constant 1 : index
    %c4_104 = arith.constant 4 : index
    %c0_105 = arith.constant 0 : index
    %94 = vector.load %arg2[%c1_103, %c4_104, %c0_105] : memref<7x7x128xf32, #tpu.memory_space<vmem>>, vector<1x1x128xf32>
    %95 = vector.shape_cast %94 : vector<1x1x128xf32> to vector<128xf32>
    %96 = vector.shape_cast %95 : vector<128xf32> to vector<1x1x1x128xf32>
    %97 = vector.broadcast %96 : vector<1x1x1x128xf32> to vector<1x8x8x128xf32>
    %98 = arith.mulf %93, %97 : vector<1x8x8x128xf32>
    %99 = arith.addf %92, %98 : vector<1x8x8x128xf32>
    %c0_106 = arith.constant 0 : index
    %c1_107 = arith.constant 1 : index
    %c5_108 = arith.constant 5 : index
    %c0_109 = arith.constant 0 : index
    %100 = vector.load %arg6[%c0_106, %c1_107, %c5_108, %c0_109] : memref<1x14x14x128xf32, #tpu.memory_space<vmem>>, vector<1x8x8x128xf32>
    %c1_110 = arith.constant 1 : index
    %c5_111 = arith.constant 5 : index
    %c0_112 = arith.constant 0 : index
    %101 = vector.load %arg2[%c1_110, %c5_111, %c0_112] : memref<7x7x128xf32, #tpu.memory_space<vmem>>, vector<1x1x128xf32>
    %102 = vector.shape_cast %101 : vector<1x1x128xf32> to vector<128xf32>
    %103 = vector.shape_cast %102 : vector<128xf32> to vector<1x1x1x128xf32>
    %104 = vector.broadcast %103 : vector<1x1x1x128xf32> to vector<1x8x8x128xf32>
    %105 = arith.mulf %100, %104 : vector<1x8x8x128xf32>
    %106 = arith.addf %99, %105 : vector<1x8x8x128xf32>
    %c0_113 = arith.constant 0 : index
    %c1_114 = arith.constant 1 : index
    %c6_115 = arith.constant 6 : index
    %c0_116 = arith.constant 0 : index
    %107 = vector.load %arg6[%c0_113, %c1_114, %c6_115, %c0_116] : memref<1x14x14x128xf32, #tpu.memory_space<vmem>>, vector<1x8x8x128xf32>
    %c1_117 = arith.constant 1 : index
    %c6_118 = arith.constant 6 : index
    %c0_119 = arith.constant 0 : index
    %108 = vector.load %arg2[%c1_117, %c6_118, %c0_119] : memref<7x7x128xf32, #tpu.memory_space<vmem>>, vector<1x1x128xf32>
    %109 = vector.shape_cast %108 : vector<1x1x128xf32> to vector<128xf32>
    %110 = vector.shape_cast %109 : vector<128xf32> to vector<1x1x1x128xf32>
    %111 = vector.broadcast %110 : vector<1x1x1x128xf32> to vector<1x8x8x128xf32>
    %112 = arith.mulf %107, %111 : vector<1x8x8x128xf32>
    %113 = arith.addf %106, %112 : vector<1x8x8x128xf32>
    %c0_120 = arith.constant 0 : index
    %c2_121 = arith.constant 2 : index
    %c0_122 = arith.constant 0 : index
    %c0_123 = arith.constant 0 : index
    %114 = vector.load %arg6[%c0_120, %c2_121, %c0_122, %c0_123] : memref<1x14x14x128xf32, #tpu.memory_space<vmem>>, vector<1x8x8x128xf32>
    %c2_124 = arith.constant 2 : index
    %c0_125 = arith.constant 0 : index
    %c0_126 = arith.constant 0 : index
    %115 = vector.load %arg2[%c2_124, %c0_125, %c0_126] : memref<7x7x128xf32, #tpu.memory_space<vmem>>, vector<1x1x128xf32>
    %116 = vector.shape_cast %115 : vector<1x1x128xf32> to vector<128xf32>
    %117 = vector.shape_cast %116 : vector<128xf32> to vector<1x1x1x128xf32>
    %118 = vector.broadcast %117 : vector<1x1x1x128xf32> to vector<1x8x8x128xf32>
    %119 = arith.mulf %114, %118 : vector<1x8x8x128xf32>
    %120 = arith.addf %113, %119 : vector<1x8x8x128xf32>
    %c0_127 = arith.constant 0 : index
    %c2_128 = arith.constant 2 : index
    %c1_129 = arith.constant 1 : index
    %c0_130 = arith.constant 0 : index
    %121 = vector.load %arg6[%c0_127, %c2_128, %c1_129, %c0_130] : memref<1x14x14x128xf32, #tpu.memory_space<vmem>>, vector<1x8x8x128xf32>
    %c2_131 = arith.constant 2 : index
    %c1_132 = arith.constant 1 : index
    %c0_133 = arith.constant 0 : index
    %122 = vector.load %arg2[%c2_131, %c1_132, %c0_133] : memref<7x7x128xf32, #tpu.memory_space<vmem>>, vector<1x1x128xf32>
    %123 = vector.shape_cast %122 : vector<1x1x128xf32> to vector<128xf32>
    %124 = vector.shape_cast %123 : vector<128xf32> to vector<1x1x1x128xf32>
    %125 = vector.broadcast %124 : vector<1x1x1x128xf32> to vector<1x8x8x128xf32>
    %126 = arith.mulf %121, %125 : vector<1x8x8x128xf32>
    %127 = arith.addf %120, %126 : vector<1x8x8x128xf32>
    %c0_134 = arith.constant 0 : index
    %c2_135 = arith.constant 2 : index
    %c2_136 = arith.constant 2 : index
    %c0_137 = arith.constant 0 : index
    %128 = vector.load %arg6[%c0_134, %c2_135, %c2_136, %c0_137] : memref<1x14x14x128xf32, #tpu.memory_space<vmem>>, vector<1x8x8x128xf32>
    %c2_138 = arith.constant 2 : index
    %c2_139 = arith.constant 2 : index
    %c0_140 = arith.constant 0 : index
    %129 = vector.load %arg2[%c2_138, %c2_139, %c0_140] : memref<7x7x128xf32, #tpu.memory_space<vmem>>, vector<1x1x128xf32>
    %130 = vector.shape_cast %129 : vector<1x1x128xf32> to vector<128xf32>
    %131 = vector.shape_cast %130 : vector<128xf32> to vector<1x1x1x128xf32>
    %132 = vector.broadcast %131 : vector<1x1x1x128xf32> to vector<1x8x8x128xf32>
    %133 = arith.mulf %128, %132 : vector<1x8x8x128xf32>
    %134 = arith.addf %127, %133 : vector<1x8x8x128xf32>
    %135 = vector.shape_cast %128 : vector<1x8x8x128xf32> to vector<64x128xf32>
    %c0_141 = arith.constant 0 : index
    %c0_142 = arith.constant 0 : index
    %c0_143 = arith.constant 0 : index
    %136 = vector.load %arg4[%c0_141, %c0_142, %c0_143] : memref<9x128x128xf32, #tpu.memory_space<vmem>>, vector<1x128x128xf32>
    %137 = vector.shape_cast %136 : vector<1x128x128xf32> to vector<128x128xf32>
    %cst_144 = arith.constant dense<0.000000e+00> : vector<64x128xf32>
    %138 = tpu.matmul %135, %137, %cst_144 {dimension_numbers = #tpu.dot_dimension_numbers<[1], [0], [0], [1], [0, 0, 1, 1], [], []>} : vector<64x128xf32>, vector<128x128xf32>, vector<64x128xf32> -> vector<64x128xf32>
    %139 = arith.addf %15, %138 : vector<64x128xf32>
    %c0_145 = arith.constant 0 : index
    %c2_146 = arith.constant 2 : index
    %c3_147 = arith.constant 3 : index
    %c0_148 = arith.constant 0 : index
    %140 = vector.load %arg6[%c0_145, %c2_146, %c3_147, %c0_148] : memref<1x14x14x128xf32, #tpu.memory_space<vmem>>, vector<1x8x8x128xf32>
    %c2_149 = arith.constant 2 : index
    %c3_150 = arith.constant 3 : index
    %c0_151 = arith.constant 0 : index
    %141 = vector.load %arg2[%c2_149, %c3_150, %c0_151] : memref<7x7x128xf32, #tpu.memory_space<vmem>>, vector<1x1x128xf32>
    %142 = vector.shape_cast %141 : vector<1x1x128xf32> to vector<128xf32>
    %143 = vector.shape_cast %142 : vector<128xf32> to vector<1x1x1x128xf32>
    %144 = vector.broadcast %143 : vector<1x1x1x128xf32> to vector<1x8x8x128xf32>
    %145 = arith.mulf %140, %144 : vector<1x8x8x128xf32>
    %146 = arith.addf %134, %145 : vector<1x8x8x128xf32>
    %147 = vector.shape_cast %140 : vector<1x8x8x128xf32> to vector<64x128xf32>
    %c1_152 = arith.constant 1 : index
    %c0_153 = arith.constant 0 : index
    %c0_154 = arith.constant 0 : index
    %148 = vector.load %arg4[%c1_152, %c0_153, %c0_154] : memref<9x128x128xf32, #tpu.memory_space<vmem>>, vector<1x128x128xf32>
    %149 = vector.shape_cast %148 : vector<1x128x128xf32> to vector<128x128xf32>
    %cst_155 = arith.constant dense<0.000000e+00> : vector<64x128xf32>
    %150 = tpu.matmul %147, %149, %cst_155 {dimension_numbers = #tpu.dot_dimension_numbers<[1], [0], [0], [1], [0, 0, 1, 1], [], []>} : vector<64x128xf32>, vector<128x128xf32>, vector<64x128xf32> -> vector<64x128xf32>
    %151 = arith.addf %139, %150 : vector<64x128xf32>
    %c0_156 = arith.constant 0 : index
    %c2_157 = arith.constant 2 : index
    %c4_158 = arith.constant 4 : index
    %c0_159 = arith.constant 0 : index
    %152 = vector.load %arg6[%c0_156, %c2_157, %c4_158, %c0_159] : memref<1x14x14x128xf32, #tpu.memory_space<vmem>>, vector<1x8x8x128xf32>
    %c2_160 = arith.constant 2 : index
    %c4_161 = arith.constant 4 : index
    %c0_162 = arith.constant 0 : index
    %153 = vector.load %arg2[%c2_160, %c4_161, %c0_162] : memref<7x7x128xf32, #tpu.memory_space<vmem>>, vector<1x1x128xf32>
    %154 = vector.shape_cast %153 : vector<1x1x128xf32> to vector<128xf32>
    %155 = vector.shape_cast %154 : vector<128xf32> to vector<1x1x1x128xf32>
    %156 = vector.broadcast %155 : vector<1x1x1x128xf32> to vector<1x8x8x128xf32>
    %157 = arith.mulf %152, %156 : vector<1x8x8x128xf32>
    %158 = arith.addf %146, %157 : vector<1x8x8x128xf32>
    %159 = vector.shape_cast %152 : vector<1x8x8x128xf32> to vector<64x128xf32>
    %c2_163 = arith.constant 2 : index
    %c0_164 = arith.constant 0 : index
    %c0_165 = arith.constant 0 : index
    %160 = vector.load %arg4[%c2_163, %c0_164, %c0_165] : memref<9x128x128xf32, #tpu.memory_space<vmem>>, vector<1x128x128xf32>
    %161 = vector.shape_cast %160 : vector<1x128x128xf32> to vector<128x128xf32>
    %cst_166 = arith.constant dense<0.000000e+00> : vector<64x128xf32>
    %162 = tpu.matmul %159, %161, %cst_166 {dimension_numbers = #tpu.dot_dimension_numbers<[1], [0], [0], [1], [0, 0, 1, 1], [], []>} : vector<64x128xf32>, vector<128x128xf32>, vector<64x128xf32> -> vector<64x128xf32>
    %163 = arith.addf %151, %162 : vector<64x128xf32>
    %c0_167 = arith.constant 0 : index
    %c2_168 = arith.constant 2 : index
    %c5_169 = arith.constant 5 : index
    %c0_170 = arith.constant 0 : index
    %164 = vector.load %arg6[%c0_167, %c2_168, %c5_169, %c0_170] : memref<1x14x14x128xf32, #tpu.memory_space<vmem>>, vector<1x8x8x128xf32>
    %c2_171 = arith.constant 2 : index
    %c5_172 = arith.constant 5 : index
    %c0_173 = arith.constant 0 : index
    %165 = vector.load %arg2[%c2_171, %c5_172, %c0_173] : memref<7x7x128xf32, #tpu.memory_space<vmem>>, vector<1x1x128xf32>
    %166 = vector.shape_cast %165 : vector<1x1x128xf32> to vector<128xf32>
    %167 = vector.shape_cast %166 : vector<128xf32> to vector<1x1x1x128xf32>
    %168 = vector.broadcast %167 : vector<1x1x1x128xf32> to vector<1x8x8x128xf32>
    %169 = arith.mulf %164, %168 : vector<1x8x8x128xf32>
    %170 = arith.addf %158, %169 : vector<1x8x8x128xf32>
    %c0_174 = arith.constant 0 : index
    %c2_175 = arith.constant 2 : index
    %c6_176 = arith.constant 6 : index
    %c0_177 = arith.constant 0 : index
    %171 = vector.load %arg6[%c0_174, %c2_175, %c6_176, %c0_177] : memref<1x14x14x128xf32, #tpu.memory_space<vmem>>, vector<1x8x8x128xf32>
    %c2_178 = arith.constant 2 : index
    %c6_179 = arith.constant 6 : index
    %c0_180 = arith.constant 0 : index
    %172 = vector.load %arg2[%c2_178, %c6_179, %c0_180] : memref<7x7x128xf32, #tpu.memory_space<vmem>>, vector<1x1x128xf32>
    %173 = vector.shape_cast %172 : vector<1x1x128xf32> to vector<128xf32>
    %174 = vector.shape_cast %173 : vector<128xf32> to vector<1x1x1x128xf32>
    %175 = vector.broadcast %174 : vector<1x1x1x128xf32> to vector<1x8x8x128xf32>
    %176 = arith.mulf %171, %175 : vector<1x8x8x128xf32>
    %177 = arith.addf %170, %176 : vector<1x8x8x128xf32>
    %c0_181 = arith.constant 0 : index
    %c3_182 = arith.constant 3 : index
    %c0_183 = arith.constant 0 : index
    %c0_184 = arith.constant 0 : index
    %178 = vector.load %arg6[%c0_181, %c3_182, %c0_183, %c0_184] : memref<1x14x14x128xf32, #tpu.memory_space<vmem>>, vector<1x8x8x128xf32>
    %c3_185 = arith.constant 3 : index
    %c0_186 = arith.constant 0 : index
    %c0_187 = arith.constant 0 : index
    %179 = vector.load %arg2[%c3_185, %c0_186, %c0_187] : memref<7x7x128xf32, #tpu.memory_space<vmem>>, vector<1x1x128xf32>
    %180 = vector.shape_cast %179 : vector<1x1x128xf32> to vector<128xf32>
    %181 = vector.shape_cast %180 : vector<128xf32> to vector<1x1x1x128xf32>
    %182 = vector.broadcast %181 : vector<1x1x1x128xf32> to vector<1x8x8x128xf32>
    %183 = arith.mulf %178, %182 : vector<1x8x8x128xf32>
    %184 = arith.addf %177, %183 : vector<1x8x8x128xf32>
    %c0_188 = arith.constant 0 : index
    %c3_189 = arith.constant 3 : index
    %c1_190 = arith.constant 1 : index
    %c0_191 = arith.constant 0 : index
    %185 = vector.load %arg6[%c0_188, %c3_189, %c1_190, %c0_191] : memref<1x14x14x128xf32, #tpu.memory_space<vmem>>, vector<1x8x8x128xf32>
    %c3_192 = arith.constant 3 : index
    %c1_193 = arith.constant 1 : index
    %c0_194 = arith.constant 0 : index
    %186 = vector.load %arg2[%c3_192, %c1_193, %c0_194] : memref<7x7x128xf32, #tpu.memory_space<vmem>>, vector<1x1x128xf32>
    %187 = vector.shape_cast %186 : vector<1x1x128xf32> to vector<128xf32>
    %188 = vector.shape_cast %187 : vector<128xf32> to vector<1x1x1x128xf32>
    %189 = vector.broadcast %188 : vector<1x1x1x128xf32> to vector<1x8x8x128xf32>
    %190 = arith.mulf %185, %189 : vector<1x8x8x128xf32>
    %191 = arith.addf %184, %190 : vector<1x8x8x128xf32>
    %c0_195 = arith.constant 0 : index
    %c3_196 = arith.constant 3 : index
    %c2_197 = arith.constant 2 : index
    %c0_198 = arith.constant 0 : index
    %192 = vector.load %arg6[%c0_195, %c3_196, %c2_197, %c0_198] : memref<1x14x14x128xf32, #tpu.memory_space<vmem>>, vector<1x8x8x128xf32>
    %c3_199 = arith.constant 3 : index
    %c2_200 = arith.constant 2 : index
    %c0_201 = arith.constant 0 : index
    %193 = vector.load %arg2[%c3_199, %c2_200, %c0_201] : memref<7x7x128xf32, #tpu.memory_space<vmem>>, vector<1x1x128xf32>
    %194 = vector.shape_cast %193 : vector<1x1x128xf32> to vector<128xf32>
    %195 = vector.shape_cast %194 : vector<128xf32> to vector<1x1x1x128xf32>
    %196 = vector.broadcast %195 : vector<1x1x1x128xf32> to vector<1x8x8x128xf32>
    %197 = arith.mulf %192, %196 : vector<1x8x8x128xf32>
    %198 = arith.addf %191, %197 : vector<1x8x8x128xf32>
    %199 = vector.shape_cast %192 : vector<1x8x8x128xf32> to vector<64x128xf32>
    %c3_202 = arith.constant 3 : index
    %c0_203 = arith.constant 0 : index
    %c0_204 = arith.constant 0 : index
    %200 = vector.load %arg4[%c3_202, %c0_203, %c0_204] : memref<9x128x128xf32, #tpu.memory_space<vmem>>, vector<1x128x128xf32>
    %201 = vector.shape_cast %200 : vector<1x128x128xf32> to vector<128x128xf32>
    %cst_205 = arith.constant dense<0.000000e+00> : vector<64x128xf32>
    %202 = tpu.matmul %199, %201, %cst_205 {dimension_numbers = #tpu.dot_dimension_numbers<[1], [0], [0], [1], [0, 0, 1, 1], [], []>} : vector<64x128xf32>, vector<128x128xf32>, vector<64x128xf32> -> vector<64x128xf32>
    %203 = arith.addf %163, %202 : vector<64x128xf32>
    %c0_206 = arith.constant 0 : index
    %c3_207 = arith.constant 3 : index
    %c3_208 = arith.constant 3 : index
    %c0_209 = arith.constant 0 : index
    %204 = vector.load %arg6[%c0_206, %c3_207, %c3_208, %c0_209] : memref<1x14x14x128xf32, #tpu.memory_space<vmem>>, vector<1x8x8x128xf32>
    %c3_210 = arith.constant 3 : index
    %c3_211 = arith.constant 3 : index
    %c0_212 = arith.constant 0 : index
    %205 = vector.load %arg2[%c3_210, %c3_211, %c0_212] : memref<7x7x128xf32, #tpu.memory_space<vmem>>, vector<1x1x128xf32>
    %206 = vector.shape_cast %205 : vector<1x1x128xf32> to vector<128xf32>
    %207 = vector.shape_cast %206 : vector<128xf32> to vector<1x1x1x128xf32>
    %208 = vector.broadcast %207 : vector<1x1x1x128xf32> to vector<1x8x8x128xf32>
    %209 = arith.mulf %204, %208 : vector<1x8x8x128xf32>
    %210 = arith.addf %198, %209 : vector<1x8x8x128xf32>
    %211 = vector.shape_cast %204 : vector<1x8x8x128xf32> to vector<64x128xf32>
    %c4_213 = arith.constant 4 : index
    %c0_214 = arith.constant 0 : index
    %c0_215 = arith.constant 0 : index
    %212 = vector.load %arg4[%c4_213, %c0_214, %c0_215] : memref<9x128x128xf32, #tpu.memory_space<vmem>>, vector<1x128x128xf32>
    %213 = vector.shape_cast %212 : vector<1x128x128xf32> to vector<128x128xf32>
    %cst_216 = arith.constant dense<0.000000e+00> : vector<64x128xf32>
    %214 = tpu.matmul %211, %213, %cst_216 {dimension_numbers = #tpu.dot_dimension_numbers<[1], [0], [0], [1], [0, 0, 1, 1], [], []>} : vector<64x128xf32>, vector<128x128xf32>, vector<64x128xf32> -> vector<64x128xf32>
    %215 = arith.addf %203, %214 : vector<64x128xf32>
    %c0_217 = arith.constant 0 : index
    %c3_218 = arith.constant 3 : index
    %c4_219 = arith.constant 4 : index
    %c0_220 = arith.constant 0 : index
    %216 = vector.load %arg6[%c0_217, %c3_218, %c4_219, %c0_220] : memref<1x14x14x128xf32, #tpu.memory_space<vmem>>, vector<1x8x8x128xf32>
    %c3_221 = arith.constant 3 : index
    %c4_222 = arith.constant 4 : index
    %c0_223 = arith.constant 0 : index
    %217 = vector.load %arg2[%c3_221, %c4_222, %c0_223] : memref<7x7x128xf32, #tpu.memory_space<vmem>>, vector<1x1x128xf32>
    %218 = vector.shape_cast %217 : vector<1x1x128xf32> to vector<128xf32>
    %219 = vector.shape_cast %218 : vector<128xf32> to vector<1x1x1x128xf32>
    %220 = vector.broadcast %219 : vector<1x1x1x128xf32> to vector<1x8x8x128xf32>
    %221 = arith.mulf %216, %220 : vector<1x8x8x128xf32>
    %222 = arith.addf %210, %221 : vector<1x8x8x128xf32>
    %223 = vector.shape_cast %216 : vector<1x8x8x128xf32> to vector<64x128xf32>
    %c5_224 = arith.constant 5 : index
    %c0_225 = arith.constant 0 : index
    %c0_226 = arith.constant 0 : index
    %224 = vector.load %arg4[%c5_224, %c0_225, %c0_226] : memref<9x128x128xf32, #tpu.memory_space<vmem>>, vector<1x128x128xf32>
    %225 = vector.shape_cast %224 : vector<1x128x128xf32> to vector<128x128xf32>
    %cst_227 = arith.constant dense<0.000000e+00> : vector<64x128xf32>
    %226 = tpu.matmul %223, %225, %cst_227 {dimension_numbers = #tpu.dot_dimension_numbers<[1], [0], [0], [1], [0, 0, 1, 1], [], []>} : vector<64x128xf32>, vector<128x128xf32>, vector<64x128xf32> -> vector<64x128xf32>
    %227 = arith.addf %215, %226 : vector<64x128xf32>
    %c0_228 = arith.constant 0 : index
    %c3_229 = arith.constant 3 : index
    %c5_230 = arith.constant 5 : index
    %c0_231 = arith.constant 0 : index
    %228 = vector.load %arg6[%c0_228, %c3_229, %c5_230, %c0_231] : memref<1x14x14x128xf32, #tpu.memory_space<vmem>>, vector<1x8x8x128xf32>
    %c3_232 = arith.constant 3 : index
    %c5_233 = arith.constant 5 : index
    %c0_234 = arith.constant 0 : index
    %229 = vector.load %arg2[%c3_232, %c5_233, %c0_234] : memref<7x7x128xf32, #tpu.memory_space<vmem>>, vector<1x1x128xf32>
    %230 = vector.shape_cast %229 : vector<1x1x128xf32> to vector<128xf32>
    %231 = vector.shape_cast %230 : vector<128xf32> to vector<1x1x1x128xf32>
    %232 = vector.broadcast %231 : vector<1x1x1x128xf32> to vector<1x8x8x128xf32>
    %233 = arith.mulf %228, %232 : vector<1x8x8x128xf32>
    %234 = arith.addf %222, %233 : vector<1x8x8x128xf32>
    %c0_235 = arith.constant 0 : index
    %c3_236 = arith.constant 3 : index
    %c6_237 = arith.constant 6 : index
    %c0_238 = arith.constant 0 : index
    %235 = vector.load %arg6[%c0_235, %c3_236, %c6_237, %c0_238] : memref<1x14x14x128xf32, #tpu.memory_space<vmem>>, vector<1x8x8x128xf32>
    %c3_239 = arith.constant 3 : index
    %c6_240 = arith.constant 6 : index
    %c0_241 = arith.constant 0 : index
    %236 = vector.load %arg2[%c3_239, %c6_240, %c0_241] : memref<7x7x128xf32, #tpu.memory_space<vmem>>, vector<1x1x128xf32>
    %237 = vector.shape_cast %236 : vector<1x1x128xf32> to vector<128xf32>
    %238 = vector.shape_cast %237 : vector<128xf32> to vector<1x1x1x128xf32>
    %239 = vector.broadcast %238 : vector<1x1x1x128xf32> to vector<1x8x8x128xf32>
    %240 = arith.mulf %235, %239 : vector<1x8x8x128xf32>
    %241 = arith.addf %234, %240 : vector<1x8x8x128xf32>
    %c0_242 = arith.constant 0 : index
    %c4_243 = arith.constant 4 : index
    %c0_244 = arith.constant 0 : index
    %c0_245 = arith.constant 0 : index
    %242 = vector.load %arg6[%c0_242, %c4_243, %c0_244, %c0_245] : memref<1x14x14x128xf32, #tpu.memory_space<vmem>>, vector<1x8x8x128xf32>
    %c4_246 = arith.constant 4 : index
    %c0_247 = arith.constant 0 : index
    %c0_248 = arith.constant 0 : index
    %243 = vector.load %arg2[%c4_246, %c0_247, %c0_248] : memref<7x7x128xf32, #tpu.memory_space<vmem>>, vector<1x1x128xf32>
    %244 = vector.shape_cast %243 : vector<1x1x128xf32> to vector<128xf32>
    %245 = vector.shape_cast %244 : vector<128xf32> to vector<1x1x1x128xf32>
    %246 = vector.broadcast %245 : vector<1x1x1x128xf32> to vector<1x8x8x128xf32>
    %247 = arith.mulf %242, %246 : vector<1x8x8x128xf32>
    %248 = arith.addf %241, %247 : vector<1x8x8x128xf32>
    %c0_249 = arith.constant 0 : index
    %c4_250 = arith.constant 4 : index
    %c1_251 = arith.constant 1 : index
    %c0_252 = arith.constant 0 : index
    %249 = vector.load %arg6[%c0_249, %c4_250, %c1_251, %c0_252] : memref<1x14x14x128xf32, #tpu.memory_space<vmem>>, vector<1x8x8x128xf32>
    %c4_253 = arith.constant 4 : index
    %c1_254 = arith.constant 1 : index
    %c0_255 = arith.constant 0 : index
    %250 = vector.load %arg2[%c4_253, %c1_254, %c0_255] : memref<7x7x128xf32, #tpu.memory_space<vmem>>, vector<1x1x128xf32>
    %251 = vector.shape_cast %250 : vector<1x1x128xf32> to vector<128xf32>
    %252 = vector.shape_cast %251 : vector<128xf32> to vector<1x1x1x128xf32>
    %253 = vector.broadcast %252 : vector<1x1x1x128xf32> to vector<1x8x8x128xf32>
    %254 = arith.mulf %249, %253 : vector<1x8x8x128xf32>
    %255 = arith.addf %248, %254 : vector<1x8x8x128xf32>
    %c0_256 = arith.constant 0 : index
    %c4_257 = arith.constant 4 : index
    %c2_258 = arith.constant 2 : index
    %c0_259 = arith.constant 0 : index
    %256 = vector.load %arg6[%c0_256, %c4_257, %c2_258, %c0_259] : memref<1x14x14x128xf32, #tpu.memory_space<vmem>>, vector<1x8x8x128xf32>
    %c4_260 = arith.constant 4 : index
    %c2_261 = arith.constant 2 : index
    %c0_262 = arith.constant 0 : index
    %257 = vector.load %arg2[%c4_260, %c2_261, %c0_262] : memref<7x7x128xf32, #tpu.memory_space<vmem>>, vector<1x1x128xf32>
    %258 = vector.shape_cast %257 : vector<1x1x128xf32> to vector<128xf32>
    %259 = vector.shape_cast %258 : vector<128xf32> to vector<1x1x1x128xf32>
    %260 = vector.broadcast %259 : vector<1x1x1x128xf32> to vector<1x8x8x128xf32>
    %261 = arith.mulf %256, %260 : vector<1x8x8x128xf32>
    %262 = arith.addf %255, %261 : vector<1x8x8x128xf32>
    %263 = vector.shape_cast %256 : vector<1x8x8x128xf32> to vector<64x128xf32>
    %c6_263 = arith.constant 6 : index
    %c0_264 = arith.constant 0 : index
    %c0_265 = arith.constant 0 : index
    %264 = vector.load %arg4[%c6_263, %c0_264, %c0_265] : memref<9x128x128xf32, #tpu.memory_space<vmem>>, vector<1x128x128xf32>
    %265 = vector.shape_cast %264 : vector<1x128x128xf32> to vector<128x128xf32>
    %cst_266 = arith.constant dense<0.000000e+00> : vector<64x128xf32>
    %266 = tpu.matmul %263, %265, %cst_266 {dimension_numbers = #tpu.dot_dimension_numbers<[1], [0], [0], [1], [0, 0, 1, 1], [], []>} : vector<64x128xf32>, vector<128x128xf32>, vector<64x128xf32> -> vector<64x128xf32>
    %267 = arith.addf %227, %266 : vector<64x128xf32>
    %c0_267 = arith.constant 0 : index
    %c4_268 = arith.constant 4 : index
    %c3_269 = arith.constant 3 : index
    %c0_270 = arith.constant 0 : index
    %268 = vector.load %arg6[%c0_267, %c4_268, %c3_269, %c0_270] : memref<1x14x14x128xf32, #tpu.memory_space<vmem>>, vector<1x8x8x128xf32>
    %c4_271 = arith.constant 4 : index
    %c3_272 = arith.constant 3 : index
    %c0_273 = arith.constant 0 : index
    %269 = vector.load %arg2[%c4_271, %c3_272, %c0_273] : memref<7x7x128xf32, #tpu.memory_space<vmem>>, vector<1x1x128xf32>
    %270 = vector.shape_cast %269 : vector<1x1x128xf32> to vector<128xf32>
    %271 = vector.shape_cast %270 : vector<128xf32> to vector<1x1x1x128xf32>
    %272 = vector.broadcast %271 : vector<1x1x1x128xf32> to vector<1x8x8x128xf32>
    %273 = arith.mulf %268, %272 : vector<1x8x8x128xf32>
    %274 = arith.addf %262, %273 : vector<1x8x8x128xf32>
    %275 = vector.shape_cast %268 : vector<1x8x8x128xf32> to vector<64x128xf32>
    %c7 = arith.constant 7 : index
    %c0_274 = arith.constant 0 : index
    %c0_275 = arith.constant 0 : index
    %276 = vector.load %arg4[%c7, %c0_274, %c0_275] : memref<9x128x128xf32, #tpu.memory_space<vmem>>, vector<1x128x128xf32>
    %277 = vector.shape_cast %276 : vector<1x128x128xf32> to vector<128x128xf32>
    %cst_276 = arith.constant dense<0.000000e+00> : vector<64x128xf32>
    %278 = tpu.matmul %275, %277, %cst_276 {dimension_numbers = #tpu.dot_dimension_numbers<[1], [0], [0], [1], [0, 0, 1, 1], [], []>} : vector<64x128xf32>, vector<128x128xf32>, vector<64x128xf32> -> vector<64x128xf32>
    %279 = arith.addf %267, %278 : vector<64x128xf32>
    %c0_277 = arith.constant 0 : index
    %c4_278 = arith.constant 4 : index
    %c4_279 = arith.constant 4 : index
    %c0_280 = arith.constant 0 : index
    %280 = vector.load %arg6[%c0_277, %c4_278, %c4_279, %c0_280] : memref<1x14x14x128xf32, #tpu.memory_space<vmem>>, vector<1x8x8x128xf32>
    %c4_281 = arith.constant 4 : index
    %c4_282 = arith.constant 4 : index
    %c0_283 = arith.constant 0 : index
    %281 = vector.load %arg2[%c4_281, %c4_282, %c0_283] : memref<7x7x128xf32, #tpu.memory_space<vmem>>, vector<1x1x128xf32>
    %282 = vector.shape_cast %281 : vector<1x1x128xf32> to vector<128xf32>
    %283 = vector.shape_cast %282 : vector<128xf32> to vector<1x1x1x128xf32>
    %284 = vector.broadcast %283 : vector<1x1x1x128xf32> to vector<1x8x8x128xf32>
    %285 = arith.mulf %280, %284 : vector<1x8x8x128xf32>
    %286 = arith.addf %274, %285 : vector<1x8x8x128xf32>
    %287 = vector.shape_cast %280 : vector<1x8x8x128xf32> to vector<64x128xf32>
    %c8 = arith.constant 8 : index
    %c0_284 = arith.constant 0 : index
    %c0_285 = arith.constant 0 : index
    %288 = vector.load %arg4[%c8, %c0_284, %c0_285] : memref<9x128x128xf32, #tpu.memory_space<vmem>>, vector<1x128x128xf32>
    %289 = vector.shape_cast %288 : vector<1x128x128xf32> to vector<128x128xf32>
    %cst_286 = arith.constant dense<0.000000e+00> : vector<64x128xf32>
    %290 = tpu.matmul %287, %289, %cst_286 {dimension_numbers = #tpu.dot_dimension_numbers<[1], [0], [0], [1], [0, 0, 1, 1], [], []>} : vector<64x128xf32>, vector<128x128xf32>, vector<64x128xf32> -> vector<64x128xf32>
    %291 = arith.addf %279, %290 : vector<64x128xf32>
    %c0_287 = arith.constant 0 : index
    %c4_288 = arith.constant 4 : index
    %c5_289 = arith.constant 5 : index
    %c0_290 = arith.constant 0 : index
    %292 = vector.load %arg6[%c0_287, %c4_288, %c5_289, %c0_290] : memref<1x14x14x128xf32, #tpu.memory_space<vmem>>, vector<1x8x8x128xf32>
    %c4_291 = arith.constant 4 : index
    %c5_292 = arith.constant 5 : index
    %c0_293 = arith.constant 0 : index
    %293 = vector.load %arg2[%c4_291, %c5_292, %c0_293] : memref<7x7x128xf32, #tpu.memory_space<vmem>>, vector<1x1x128xf32>
    %294 = vector.shape_cast %293 : vector<1x1x128xf32> to vector<128xf32>
    %295 = vector.shape_cast %294 : vector<128xf32> to vector<1x1x1x128xf32>
    %296 = vector.broadcast %295 : vector<1x1x1x128xf32> to vector<1x8x8x128xf32>
    %297 = arith.mulf %292, %296 : vector<1x8x8x128xf32>
    %298 = arith.addf %286, %297 : vector<1x8x8x128xf32>
    %c0_294 = arith.constant 0 : index
    %c4_295 = arith.constant 4 : index
    %c6_296 = arith.constant 6 : index
    %c0_297 = arith.constant 0 : index
    %299 = vector.load %arg6[%c0_294, %c4_295, %c6_296, %c0_297] : memref<1x14x14x128xf32, #tpu.memory_space<vmem>>, vector<1x8x8x128xf32>
    %c4_298 = arith.constant 4 : index
    %c6_299 = arith.constant 6 : index
    %c0_300 = arith.constant 0 : index
    %300 = vector.load %arg2[%c4_298, %c6_299, %c0_300] : memref<7x7x128xf32, #tpu.memory_space<vmem>>, vector<1x1x128xf32>
    %301 = vector.shape_cast %300 : vector<1x1x128xf32> to vector<128xf32>
    %302 = vector.shape_cast %301 : vector<128xf32> to vector<1x1x1x128xf32>
    %303 = vector.broadcast %302 : vector<1x1x1x128xf32> to vector<1x8x8x128xf32>
    %304 = arith.mulf %299, %303 : vector<1x8x8x128xf32>
    %305 = arith.addf %298, %304 : vector<1x8x8x128xf32>
    %c0_301 = arith.constant 0 : index
    %c5_302 = arith.constant 5 : index
    %c0_303 = arith.constant 0 : index
    %c0_304 = arith.constant 0 : index
    %306 = vector.load %arg6[%c0_301, %c5_302, %c0_303, %c0_304] : memref<1x14x14x128xf32, #tpu.memory_space<vmem>>, vector<1x8x8x128xf32>
    %c5_305 = arith.constant 5 : index
    %c0_306 = arith.constant 0 : index
    %c0_307 = arith.constant 0 : index
    %307 = vector.load %arg2[%c5_305, %c0_306, %c0_307] : memref<7x7x128xf32, #tpu.memory_space<vmem>>, vector<1x1x128xf32>
    %308 = vector.shape_cast %307 : vector<1x1x128xf32> to vector<128xf32>
    %309 = vector.shape_cast %308 : vector<128xf32> to vector<1x1x1x128xf32>
    %310 = vector.broadcast %309 : vector<1x1x1x128xf32> to vector<1x8x8x128xf32>
    %311 = arith.mulf %306, %310 : vector<1x8x8x128xf32>
    %312 = arith.addf %305, %311 : vector<1x8x8x128xf32>
    %c0_308 = arith.constant 0 : index
    %c5_309 = arith.constant 5 : index
    %c1_310 = arith.constant 1 : index
    %c0_311 = arith.constant 0 : index
    %313 = vector.load %arg6[%c0_308, %c5_309, %c1_310, %c0_311] : memref<1x14x14x128xf32, #tpu.memory_space<vmem>>, vector<1x8x8x128xf32>
    %c5_312 = arith.constant 5 : index
    %c1_313 = arith.constant 1 : index
    %c0_314 = arith.constant 0 : index
    %314 = vector.load %arg2[%c5_312, %c1_313, %c0_314] : memref<7x7x128xf32, #tpu.memory_space<vmem>>, vector<1x1x128xf32>
    %315 = vector.shape_cast %314 : vector<1x1x128xf32> to vector<128xf32>
    %316 = vector.shape_cast %315 : vector<128xf32> to vector<1x1x1x128xf32>
    %317 = vector.broadcast %316 : vector<1x1x1x128xf32> to vector<1x8x8x128xf32>
    %318 = arith.mulf %313, %317 : vector<1x8x8x128xf32>
    %319 = arith.addf %312, %318 : vector<1x8x8x128xf32>
    %c0_315 = arith.constant 0 : index
    %c5_316 = arith.constant 5 : index
    %c2_317 = arith.constant 2 : index
    %c0_318 = arith.constant 0 : index
    %320 = vector.load %arg6[%c0_315, %c5_316, %c2_317, %c0_318] : memref<1x14x14x128xf32, #tpu.memory_space<vmem>>, vector<1x8x8x128xf32>
    %c5_319 = arith.constant 5 : index
    %c2_320 = arith.constant 2 : index
    %c0_321 = arith.constant 0 : index
    %321 = vector.load %arg2[%c5_319, %c2_320, %c0_321] : memref<7x7x128xf32, #tpu.memory_space<vmem>>, vector<1x1x128xf32>
    %322 = vector.shape_cast %321 : vector<1x1x128xf32> to vector<128xf32>
    %323 = vector.shape_cast %322 : vector<128xf32> to vector<1x1x1x128xf32>
    %324 = vector.broadcast %323 : vector<1x1x1x128xf32> to vector<1x8x8x128xf32>
    %325 = arith.mulf %320, %324 : vector<1x8x8x128xf32>
    %326 = arith.addf %319, %325 : vector<1x8x8x128xf32>
    %c0_322 = arith.constant 0 : index
    %c5_323 = arith.constant 5 : index
    %c3_324 = arith.constant 3 : index
    %c0_325 = arith.constant 0 : index
    %327 = vector.load %arg6[%c0_322, %c5_323, %c3_324, %c0_325] : memref<1x14x14x128xf32, #tpu.memory_space<vmem>>, vector<1x8x8x128xf32>
    %c5_326 = arith.constant 5 : index
    %c3_327 = arith.constant 3 : index
    %c0_328 = arith.constant 0 : index
    %328 = vector.load %arg2[%c5_326, %c3_327, %c0_328] : memref<7x7x128xf32, #tpu.memory_space<vmem>>, vector<1x1x128xf32>
    %329 = vector.shape_cast %328 : vector<1x1x128xf32> to vector<128xf32>
    %330 = vector.shape_cast %329 : vector<128xf32> to vector<1x1x1x128xf32>
    %331 = vector.broadcast %330 : vector<1x1x1x128xf32> to vector<1x8x8x128xf32>
    %332 = arith.mulf %327, %331 : vector<1x8x8x128xf32>
    %333 = arith.addf %326, %332 : vector<1x8x8x128xf32>
    %c0_329 = arith.constant 0 : index
    %c5_330 = arith.constant 5 : index
    %c4_331 = arith.constant 4 : index
    %c0_332 = arith.constant 0 : index
    %334 = vector.load %arg6[%c0_329, %c5_330, %c4_331, %c0_332] : memref<1x14x14x128xf32, #tpu.memory_space<vmem>>, vector<1x8x8x128xf32>
    %c5_333 = arith.constant 5 : index
    %c4_334 = arith.constant 4 : index
    %c0_335 = arith.constant 0 : index
    %335 = vector.load %arg2[%c5_333, %c4_334, %c0_335] : memref<7x7x128xf32, #tpu.memory_space<vmem>>, vector<1x1x128xf32>
    %336 = vector.shape_cast %335 : vector<1x1x128xf32> to vector<128xf32>
    %337 = vector.shape_cast %336 : vector<128xf32> to vector<1x1x1x128xf32>
    %338 = vector.broadcast %337 : vector<1x1x1x128xf32> to vector<1x8x8x128xf32>
    %339 = arith.mulf %334, %338 : vector<1x8x8x128xf32>
    %340 = arith.addf %333, %339 : vector<1x8x8x128xf32>
    %c0_336 = arith.constant 0 : index
    %c5_337 = arith.constant 5 : index
    %c5_338 = arith.constant 5 : index
    %c0_339 = arith.constant 0 : index
    %341 = vector.load %arg6[%c0_336, %c5_337, %c5_338, %c0_339] : memref<1x14x14x128xf32, #tpu.memory_space<vmem>>, vector<1x8x8x128xf32>
    %c5_340 = arith.constant 5 : index
    %c5_341 = arith.constant 5 : index
    %c0_342 = arith.constant 0 : index
    %342 = vector.load %arg2[%c5_340, %c5_341, %c0_342] : memref<7x7x128xf32, #tpu.memory_space<vmem>>, vector<1x1x128xf32>
    %343 = vector.shape_cast %342 : vector<1x1x128xf32> to vector<128xf32>
    %344 = vector.shape_cast %343 : vector<128xf32> to vector<1x1x1x128xf32>
    %345 = vector.broadcast %344 : vector<1x1x1x128xf32> to vector<1x8x8x128xf32>
    %346 = arith.mulf %341, %345 : vector<1x8x8x128xf32>
    %347 = arith.addf %340, %346 : vector<1x8x8x128xf32>
    %c0_343 = arith.constant 0 : index
    %c5_344 = arith.constant 5 : index
    %c6_345 = arith.constant 6 : index
    %c0_346 = arith.constant 0 : index
    %348 = vector.load %arg6[%c0_343, %c5_344, %c6_345, %c0_346] : memref<1x14x14x128xf32, #tpu.memory_space<vmem>>, vector<1x8x8x128xf32>
    %c5_347 = arith.constant 5 : index
    %c6_348 = arith.constant 6 : index
    %c0_349 = arith.constant 0 : index
    %349 = vector.load %arg2[%c5_347, %c6_348, %c0_349] : memref<7x7x128xf32, #tpu.memory_space<vmem>>, vector<1x1x128xf32>
    %350 = vector.shape_cast %349 : vector<1x1x128xf32> to vector<128xf32>
    %351 = vector.shape_cast %350 : vector<128xf32> to vector<1x1x1x128xf32>
    %352 = vector.broadcast %351 : vector<1x1x1x128xf32> to vector<1x8x8x128xf32>
    %353 = arith.mulf %348, %352 : vector<1x8x8x128xf32>
    %354 = arith.addf %347, %353 : vector<1x8x8x128xf32>
    %c0_350 = arith.constant 0 : index
    %c6_351 = arith.constant 6 : index
    %c0_352 = arith.constant 0 : index
    %c0_353 = arith.constant 0 : index
    %355 = vector.load %arg6[%c0_350, %c6_351, %c0_352, %c0_353] : memref<1x14x14x128xf32, #tpu.memory_space<vmem>>, vector<1x8x8x128xf32>
    %c6_354 = arith.constant 6 : index
    %c0_355 = arith.constant 0 : index
    %c0_356 = arith.constant 0 : index
    %356 = vector.load %arg2[%c6_354, %c0_355, %c0_356] : memref<7x7x128xf32, #tpu.memory_space<vmem>>, vector<1x1x128xf32>
    %357 = vector.shape_cast %356 : vector<1x1x128xf32> to vector<128xf32>
    %358 = vector.shape_cast %357 : vector<128xf32> to vector<1x1x1x128xf32>
    %359 = vector.broadcast %358 : vector<1x1x1x128xf32> to vector<1x8x8x128xf32>
    %360 = arith.mulf %355, %359 : vector<1x8x8x128xf32>
    %361 = arith.addf %354, %360 : vector<1x8x8x128xf32>
    %c0_357 = arith.constant 0 : index
    %c6_358 = arith.constant 6 : index
    %c1_359 = arith.constant 1 : index
    %c0_360 = arith.constant 0 : index
    %362 = vector.load %arg6[%c0_357, %c6_358, %c1_359, %c0_360] : memref<1x14x14x128xf32, #tpu.memory_space<vmem>>, vector<1x8x8x128xf32>
    %c6_361 = arith.constant 6 : index
    %c1_362 = arith.constant 1 : index
    %c0_363 = arith.constant 0 : index
    %363 = vector.load %arg2[%c6_361, %c1_362, %c0_363] : memref<7x7x128xf32, #tpu.memory_space<vmem>>, vector<1x1x128xf32>
    %364 = vector.shape_cast %363 : vector<1x1x128xf32> to vector<128xf32>
    %365 = vector.shape_cast %364 : vector<128xf32> to vector<1x1x1x128xf32>
    %366 = vector.broadcast %365 : vector<1x1x1x128xf32> to vector<1x8x8x128xf32>
    %367 = arith.mulf %362, %366 : vector<1x8x8x128xf32>
    %368 = arith.addf %361, %367 : vector<1x8x8x128xf32>
    %c0_364 = arith.constant 0 : index
    %c6_365 = arith.constant 6 : index
    %c2_366 = arith.constant 2 : index
    %c0_367 = arith.constant 0 : index
    %369 = vector.load %arg6[%c0_364, %c6_365, %c2_366, %c0_367] : memref<1x14x14x128xf32, #tpu.memory_space<vmem>>, vector<1x8x8x128xf32>
    %c6_368 = arith.constant 6 : index
    %c2_369 = arith.constant 2 : index
    %c0_370 = arith.constant 0 : index
    %370 = vector.load %arg2[%c6_368, %c2_369, %c0_370] : memref<7x7x128xf32, #tpu.memory_space<vmem>>, vector<1x1x128xf32>
    %371 = vector.shape_cast %370 : vector<1x1x128xf32> to vector<128xf32>
    %372 = vector.shape_cast %371 : vector<128xf32> to vector<1x1x1x128xf32>
    %373 = vector.broadcast %372 : vector<1x1x1x128xf32> to vector<1x8x8x128xf32>
    %374 = arith.mulf %369, %373 : vector<1x8x8x128xf32>
    %375 = arith.addf %368, %374 : vector<1x8x8x128xf32>
    %c0_371 = arith.constant 0 : index
    %c6_372 = arith.constant 6 : index
    %c3_373 = arith.constant 3 : index
    %c0_374 = arith.constant 0 : index
    %376 = vector.load %arg6[%c0_371, %c6_372, %c3_373, %c0_374] : memref<1x14x14x128xf32, #tpu.memory_space<vmem>>, vector<1x8x8x128xf32>
    %c6_375 = arith.constant 6 : index
    %c3_376 = arith.constant 3 : index
    %c0_377 = arith.constant 0 : index
    %377 = vector.load %arg2[%c6_375, %c3_376, %c0_377] : memref<7x7x128xf32, #tpu.memory_space<vmem>>, vector<1x1x128xf32>
    %378 = vector.shape_cast %377 : vector<1x1x128xf32> to vector<128xf32>
    %379 = vector.shape_cast %378 : vector<128xf32> to vector<1x1x1x128xf32>
    %380 = vector.broadcast %379 : vector<1x1x1x128xf32> to vector<1x8x8x128xf32>
    %381 = arith.mulf %376, %380 : vector<1x8x8x128xf32>
    %382 = arith.addf %375, %381 : vector<1x8x8x128xf32>
    %c0_378 = arith.constant 0 : index
    %c6_379 = arith.constant 6 : index
    %c4_380 = arith.constant 4 : index
    %c0_381 = arith.constant 0 : index
    %383 = vector.load %arg6[%c0_378, %c6_379, %c4_380, %c0_381] : memref<1x14x14x128xf32, #tpu.memory_space<vmem>>, vector<1x8x8x128xf32>
    %c6_382 = arith.constant 6 : index
    %c4_383 = arith.constant 4 : index
    %c0_384 = arith.constant 0 : index
    %384 = vector.load %arg2[%c6_382, %c4_383, %c0_384] : memref<7x7x128xf32, #tpu.memory_space<vmem>>, vector<1x1x128xf32>
    %385 = vector.shape_cast %384 : vector<1x1x128xf32> to vector<128xf32>
    %386 = vector.shape_cast %385 : vector<128xf32> to vector<1x1x1x128xf32>
    %387 = vector.broadcast %386 : vector<1x1x1x128xf32> to vector<1x8x8x128xf32>
    %388 = arith.mulf %383, %387 : vector<1x8x8x128xf32>
    %389 = arith.addf %382, %388 : vector<1x8x8x128xf32>
    %c0_385 = arith.constant 0 : index
    %c6_386 = arith.constant 6 : index
    %c5_387 = arith.constant 5 : index
    %c0_388 = arith.constant 0 : index
    %390 = vector.load %arg6[%c0_385, %c6_386, %c5_387, %c0_388] : memref<1x14x14x128xf32, #tpu.memory_space<vmem>>, vector<1x8x8x128xf32>
    %c6_389 = arith.constant 6 : index
    %c5_390 = arith.constant 5 : index
    %c0_391 = arith.constant 0 : index
    %391 = vector.load %arg2[%c6_389, %c5_390, %c0_391] : memref<7x7x128xf32, #tpu.memory_space<vmem>>, vector<1x1x128xf32>
    %392 = vector.shape_cast %391 : vector<1x1x128xf32> to vector<128xf32>
    %393 = vector.shape_cast %392 : vector<128xf32> to vector<1x1x1x128xf32>
    %394 = vector.broadcast %393 : vector<1x1x1x128xf32> to vector<1x8x8x128xf32>
    %395 = arith.mulf %390, %394 : vector<1x8x8x128xf32>
    %396 = arith.addf %389, %395 : vector<1x8x8x128xf32>
    %c0_392 = arith.constant 0 : index
    %c6_393 = arith.constant 6 : index
    %c6_394 = arith.constant 6 : index
    %c0_395 = arith.constant 0 : index
    %397 = vector.load %arg6[%c0_392, %c6_393, %c6_394, %c0_395] : memref<1x14x14x128xf32, #tpu.memory_space<vmem>>, vector<1x8x8x128xf32>
    %c6_396 = arith.constant 6 : index
    %c6_397 = arith.constant 6 : index
    %c0_398 = arith.constant 0 : index
    %398 = vector.load %arg2[%c6_396, %c6_397, %c0_398] : memref<7x7x128xf32, #tpu.memory_space<vmem>>, vector<1x1x128xf32>
    %399 = vector.shape_cast %398 : vector<1x1x128xf32> to vector<128xf32>
    %400 = vector.shape_cast %399 : vector<128xf32> to vector<1x1x1x128xf32>
    %401 = vector.broadcast %400 : vector<1x1x1x128xf32> to vector<1x8x8x128xf32>
    %402 = arith.mulf %397, %401 : vector<1x8x8x128xf32>
    %403 = arith.addf %396, %402 : vector<1x8x8x128xf32>
    %404 = vector.shape_cast %291 : vector<64x128xf32> to vector<1x8x8x128xf32>
    %405 = arith.addf %403, %404 : vector<1x8x8x128xf32>
    %c0_399 = arith.constant 0 : index
    %c0_400 = arith.constant 0 : index
    %c0_401 = arith.constant 0 : index
    %c0_402 = arith.constant 0 : index
    %406 = vector.load %arg5[%c0_399, %c0_400, %c0_401, %c0_402] : memref<1x8x8x128xf32, #tpu.memory_space<vmem>>, vector<1x8x8x128xf32>
    tpu.vector_store %arg5[%c0_399, %c0_400, %c0_401, %c0_402], %405 {strides = array<i32>} : memref<1x8x8x128xf32, #tpu.memory_space<vmem>>, vector<1x8x8x128xf32>,
    return
  }
  func.func @transform_0(%arg0: i32) -> (i32, i32, i32, i32) {
    %c0_i32 = arith.constant 0 : i32
    %c0_i32_0 = arith.constant 0 : i32
    %c0_i32_1 = arith.constant 0 : i32
    %c0_i32_2 = arith.constant 0 : i32
    return %arg0, %c0_i32, %c0_i32_0, %c0_i32_1 : i32, i32, i32, i32
  }
  func.func @transform_1(%arg0: i32) -> (i32, i32, i32) {
    %c0_i32 = arith.constant 0 : i32
    %c0_i32_0 = arith.constant 0 : i32
    %c0_i32_1 = arith.constant 0 : i32
    %c0_i32_2 = arith.constant 0 : i32
    return %c0_i32, %c0_i32_0, %c0_i32_1 : i32, i32, i32
  }
  func.func @transform_2(%arg0: i32) -> (i32, i32) {
    %c0_i32 = arith.constant 0 : i32
    %c0_i32_0 = arith.constant 0 : i32
    %c0_i32_1 = arith.constant 0 : i32
    return %c0_i32, %c0_i32_0 : i32, i32
  }
  func.func @transform_3(%arg0: i32) -> (i32, i32, i32) {
    %c0_i32 = arith.constant 0 : i32
    %c0_i32_0 = arith.constant 0 : i32
    %c0_i32_1 = arith.constant 0 : i32
    %c0_i32_2 = arith.constant 0 : i32
    return %c0_i32, %c0_i32_0, %c0_i32_1 : i32, i32, i32
  }
  func.func @transform_4(%arg0: i32) -> (i32, i32, i32, i32) {
    %c0_i32 = arith.constant 0 : i32
    %c0_i32_0 = arith.constant 0 : i32
    %c0_i32_1 = arith.constant 0 : i32
    %c0_i32_2 = arith.constant 0 : i32
    return %arg0, %c0_i32, %c0_i32_0, %c0_i32_1 : i32, i32, i32, i32
  }
}

</mosaic_0001>

<bundles_post_ra>
// kernel: ppeg_forward.1
= control target key start
LH: loop header
LB: loop body
LE: loop exit
PB: predicated region body
PF: predicated region fallthrough
CT: control target
= control target key end

     0   :  { %9 = vsyncpa [#allocation4], 0  ;;  %s3790_s15 = smov 0   ;;  %s5748_s0 = inlined_call_operand.vmem [shape: f32[2,8,8,128], index: 0, kind: input, shape index: {}]   ;;  %s5749_s1 = inlined_call_operand.vmem [shape: f32[7,7,128], index: 1, kind: input, shape index: {}]   ;;  %s5750_s2 = inlined_call_operand.vmem [shape: f32[1,128], index: 2, kind: input, shape index: {}]   ;;  %s5751_s3 = inlined_call_operand.hbm [shape: f32[9,128,128], index: 3, kind: input, shape index: {}]   ;;  %s5752_s4 = inlined_call_operand.vmem [shape: f32[2,8,8,128], index: 4, kind: output, shape index: {}]  }
   0x1 LB: > { %s3796_s16 = sadd.s32 4294967295, %s3759_s15   ;;  %p2936_p0 = scmp.ge.s32.totalorder %s3759_s15, 1  ;;  %s3759_s15 = sphi %s3790_s15, %s15_s15  }
   0x2   : > { %p135_p1 = scmp.lt.s32.totalorder %s3759_s15, 3  ;;  %s3761_s17 = smov [#allocation3]  }
   0x3   : > { %s153_s18 = sshll.u32 %s3761_s17, 4  ;;  %p3693_p3 = scmp.eq.s32.totalorder %s3796_s16, 0  ;;  %s154_s18 = int_to_ptr.vmem [resolvable:$true] %s153_s18 }
   0x4   : > { %p3800_p2 = pnand %p2936_p0, %p135_p1  ;;  %s3734_s20 = scalar_lea.vmem %s154_s18, 18432 }
   0x5   : > { %p3735_p7 = scmp.ne.s32.totalorder %s154_s18, %s3734_s20  ;;  %p3742_p10 = scmp.lt.s32.totalorder %s154_s18, %s154_s18 }
   0x6   : > { %p3689_p4 = pneg %p3800_p2  ;;  %p3743_p11 = scmp.lt.s32.totalorder %s3734_s20, %s3734_s20 }
   0x8   : > { %p3690_p5 = pnand %p3693_p3, %p3689_p4  ;;  %p3744_p12 = por %p3743_p11, %p3742_p10 }
   0xa   : > { %p3725_p6 = pneg %p3690_p5 }
   0xc   : > { %p3737_p8 = pnand %p3735_p7, %p3725_p6 }
   0xe   : > { %p3738_p9 = pneg %p3737_p8 }
  0x10   : > { %p3745_p13 = pnand %p3744_p12, %p3738_p9 }
  0x12   : > { %3748 = shalt.err (!%p3745_p13)
}
  0x13   : > { %s3762_s21 = smov 128   ;;  %s3763_s22 = smov 8  }
  0x14   : > { %3692 = dma.hbm_to_vmem [thread:$0]  (!%p3690_p5), %s5751_s3, 18432, %s154_s18, [#allocation4], %s3762_s21, %s3762_s21, %s3763_s22  }
  0x15   : > { %177 = sbr.rel (%p3800_p2) target bundleno = 460 (0x1cc), region = 36 }
  0x1a   : > { %3754 = dma.done.wait (%p3693_p3), [#allocation4], 18432  }
  0x1b   : > { %3756 = vsyncadd (%p3693_p3), [#allocation4], 4294948864  ;;  %v3764_v0 = vmov 0.0   ;;  %v824_v1 = vld [vmem:[#allocation3 + $0xf8] sm:$0xff]  ;;  %v823_v3 = vld [vmem:[#allocation3 + $0xf0] sm:$0xff]  ;;  %p203_p0 = scmp.lt.s32.totalorder %s3796_s16, 1 }
  0x1c   : > { %217 = vst [vmem:[#allocation2 + $0x20] sm:$0xff] %v3764_v0  ;;  %218 = vst [vmem:[#allocation2 + $0x28] sm:$0x3f] %v3764_v0  ;;  %v778_v2 = vld [vmem:[#allocation3 + $0x78] sm:$0xff]  ;;  %3257 = vmatprep.subr.mxu0 %v824_v1  ;;  %v777_v4 = vld [vmem:[#allocation3 + $0x70] sm:$0xff] }
  0x1d   : > { %213 = vst [vmem:[#allocation2] sm:$0xff] %v3764_v0  ;;  %214 = vst [vmem:[#allocation2 + $0x8] sm:$0x3f] %v3764_v0  ;;  %3301 = vmatprep.subr.mxu1 %v778_v2  ;;  %3258 = vmatpush3.msra.mxu0 %v824_v1  ;;  %v822_v5 = vld [vmem:[#allocation3 + $0xe8] sm:$0xff]  ;;  %v821_v7 = vld [vmem:[#allocation3 + $0xe0] sm:$0xff]  ;;  %s6035_s16 = smov (!%p203_p0, %s3796_s16), 1 }
  0x1e   : > { %215 = vst [vmem:[#allocation2 + $0x10] sm:$0xff] %v3764_v0  ;;  %216 = vst [vmem:[#allocation2 + $0x18] sm:$0x3f] %v3764_v0  ;;  %3302 = vmatpush3.msra.mxu1 %v778_v2  ;;  %v776_v6 = vld [vmem:[#allocation3 + $0x68] sm:$0xff]  ;;  %3259 = vmatprep.subr.mxu0 %v823_v3  ;;  %v775_v8 = vld [vmem:[#allocation3 + $0x60] sm:$0xff]  ;;  %s3039_s23 = sshll.u32 %s6035_s16, 6 }
  0x1f   : > { %220 = vst [vmem:[#allocation2 + $0xb0] sm:$0xff] %v3764_v0  ;;  %221 = vst [vmem:[#allocation2 + $0xb8] sm:$0x3f] %v3764_v0  ;;  %3303 = vmatprep.subr.mxu1 %v777_v4  ;;  %3260 = vmatpush3.msra.mxu0 %v823_v3  ;;  %v820_v9 = vld [vmem:[#allocation3 + $0xd8] sm:$0xff]  ;;  %v819_v11 = vld [vmem:[#allocation3 + $0xd0] sm:$0xff]  ;;  %s3949_s8 = scalar_lea.vmem %s5748_s0, %s3039_s23  ;;  %s5726_s29 = scalar_lea.vmem %s5752_s4, %s3039_s23 }
  0x20   : > { %222 = vst [vmem:[#allocation2 + $0xc0] sm:$0xff] %v3764_v0  ;;  %223 = vst [vmem:[#allocation2 + $0xc8] sm:$0x3f] %v3764_v0  ;;  %3304 = vmatpush3.msra.mxu1 %v777_v4  ;;  %3261 = vmatprep.subr.mxu0 %v822_v5  ;;  %v774_v10 = vld [vmem:[#allocation3 + $0x58] sm:$0xff]  ;;  %v773_v12 = vld [vmem:[#allocation3 + $0x50] sm:$0xff] }
  0x21   : > { %224 = vst [vmem:[#allocation2 + $0xd0] sm:$0xff] %v3764_v0  ;;  %225 = vst [vmem:[#allocation2 + $0xd8] sm:$0x3f] %v3764_v0  ;;  %3305 = vmatprep.subr.mxu1 %v776_v6  ;;  %3262 = vmatpush3.msra.mxu0 %v822_v5  ;;  %v818_v13 = vld [vmem:[#allocation3 + $0xc8] sm:$0xff]  ;;  %v817_v15 = vld [vmem:[#allocation3 + $0xc0] sm:$0xff] }
  0x22   : > { %227 = vst [vmem:[#allocation2 + $0x30] sm:$0x7] %v3764_v0  ;;  %228 = vst [vmem:[#allocation2 + $0x40] sm:$0x7] %v3764_v0  ;;  %3306 = vmatpush3.msra.mxu1 %v776_v6  ;;  %3263 = vmatprep.subr.mxu0 %v821_v7  ;;  %v772_v14 = vld [vmem:[#allocation3 + $0x48] sm:$0xff]  ;;  %v771_v16 = vld [vmem:[#allocation3 + $0x40] sm:$0xff] }
  0x23   : > { %229 = vst [vmem:[#allocation2 + $0x50] sm:$0x7] %v3764_v0  ;;  %230 = vst [vmem:[#allocation2 + $0x60] sm:$0x7] %v3764_v0  ;;  %3307 = vmatprep.subr.mxu1 %v775_v8  ;;  %3264 = vmatpush3.msra.mxu0 %v821_v7  ;;  %v3819_v17 = vld [vmem:[#allocation2 + $0x23] sm:$0xff]  ;;  %v816_v21 = vld [vmem:[#allocation3 + $0xb8] sm:$0xff] }
  0x24   : > { %231 = vst [vmem:[#allocation2 + $0x70] sm:$0x7] %v3764_v0  ;;  %232 = vst [vmem:[#allocation2 + $0x80] sm:$0x7] %v3764_v0  ;;  %3308 = vmatpush3.msra.mxu1 %v775_v8  ;;  %3265 = vmatprep.subr.mxu0 %v820_v9  ;;  %v3824_v18 = vld [vmem:[%s5749_s1 + $0x13] ss:$0 sm:$0xff] }
  0x25   : > { %233 = vst [vmem:[#allocation2 + $0x90] sm:$0x7] %v3764_v0  ;;  %234 = vst [vmem:[#allocation2 + $0xa0] sm:$0x7] %v3764_v0  ;;  %3309 = vmatprep.subr.mxu1 %v774_v10  ;;  %3266 = vmatpush3.msra.mxu0 %v820_v9  ;;  %v3829_v19 = vld [vmem:[%s5750_s2] ss:$0 sm:$0xff]  ;;  %v3860_v33 = vmul.f32 %v3824_v18, %v3819_v17 }
  0x26   : > { %235 = vst [vmem:[#allocation2 + $0x3b] sm:$0x7] %v3764_v0  ;;  %236 = vst [vmem:[#allocation2 + $0x4b] sm:$0x7] %v3764_v0  ;;  %3310 = vmatpush3.msra.mxu1 %v774_v10  ;;  %3267 = vmatprep.subr.mxu0 %v819_v11  ;;  %v3834_v20 = vld [vmem:[%s5749_s1] ss:$0 sm:$0xff] }
  0x27   : > { %237 = vst [vmem:[#allocation2 + $0x5b] sm:$0x7] %v3764_v0  ;;  %238 = vst [vmem:[#allocation2 + $0x6b] sm:$0x7] %v3764_v0  ;;  %3311 = vmatprep.subr.mxu1 %v773_v12  ;;  %3268 = vmatpush3.msra.mxu0 %v819_v11  ;;  %v770_v22 = vld [vmem:[#allocation3 + $0x38] sm:$0xff]  ;;  %v279_v23 = vmul.f32 0.0, %v3834_v20 }
  0x28   : > { %239 = vst [vmem:[#allocation2 + $0x7b] sm:$0x7] %v3764_v0  ;;  %240 = vst [vmem:[#allocation2 + $0x8b] sm:$0x7] %v3764_v0  ;;  %3312 = vmatpush3.msra.mxu1 %v773_v12  ;;  %v295_v24 = vld [vmem:[#allocation2 + $0x1] sm:$0xff]  ;;  %3269 = vmatprep.subr.mxu0 %v818_v13  ;;  %v815_v31 = vld [vmem:[#allocation3 + $0xb0] sm:$0xff] }
  0x29   : > { %241 = vst [vmem:[#allocation2 + $0x9b] sm:$0x7] %v3764_v0  ;;  %242 = vst [vmem:[#allocation2 + $0xab] sm:$0x7] %v3764_v0  ;;  %v3840_v25 = vld [vmem:[%s5749_s1 + $0x1] ss:$0 sm:$0xff]  ;;  %3313 = vmatprep.subr.mxu1 %v772_v14  ;;  %3270 = vmatpush3.msra.mxu0 %v818_v13  ;;  %v3863_v34 = vadd.f32 %v3829_v19, %v279_v23 }
  0x2a   : > { %v324_v26 = vld [vmem:[#allocation2 + $0x2] sm:$0xff]  ;;  %v308_v27 = vmul.f32 %v3840_v25, %v295_v24  ;;  %3314 = vmatpush3.msra.mxu1 %v772_v14  ;;  %v769_v32 = vld [vmem:[#allocation3 + $0x30] sm:$0xff]  ;;  %3271 = vmatprep.subr.mxu0 %v817_v15  ;;  %v3916_v56 = vld [vmem:[%s5749_s1 + $0xa] ss:$0 sm:$0xff] }
  0x2b   : > { %v3851_v28 = vld [vmem:[%s5749_s1 + $0x2] ss:$0 sm:$0xff]  ;;  %v353_v29 = vld [vmem:[#allocation2 + $0x3] sm:$0xff]  ;;  %3315 = vmatprep.subr.mxu1 %v771_v16  ;;  %3272 = vmatpush3.msra.mxu0 %v817_v15  ;;  %v500_v51 = vld [vmem:[#allocation2 + $0x11] sm:$0xff] }
  0x2c   : > { %v3856_v30 = vld [vmem:[%s5749_s1 + $0x3] ss:$0 sm:$0xff]  ;;  %v337_v35 = vmul.f32 %v3851_v28, %v324_v26  ;;  %v382_v36 = vld [vmem:[#allocation2 + $0x4] sm:$0xff]  ;;  %3316 = vmatpush3.msra.mxu1 %v771_v16  ;;  %v316_v47 = vadd.f32 %v308_v27, %v3863_v34  ;;  %3273 = vmatprep.subr.mxu0 %v816_v21  ;;  %v529_v55 = vld [vmem:[#allocation2 + $0x12] sm:$0xff]  ;;  %v309_v58 = vmul.f32 %v3840_v25, %v500_v51 }
  0x2d   : > { %v3869_v37 = vld [vmem:[%s5749_s1 + $0x4] ss:$0 sm:$0xff]  ;;  %v411_v38 = vld [vmem:[#allocation2 + $0x5] sm:$0xff]  ;;  %v366_v39 = vmul.f32 %v3856_v30, %v353_v29  ;;  %v3887_v44 = vmul.f32 %v3856_v30, %v3819_v17  ;;  %3317 = vmatprep.subr.mxu1 %v770_v22  ;;  %v558_v57 = vld [vmem:[#allocation2 + $0x13] sm:$0xff]  ;;  %3274 = vmatpush3.msra.mxu0 %v816_v21  ;;  %v3920_v62 = vmul.f32 %v3916_v56, %v529_v55 }
  0x2e   : > { %v3873_v40 = vmul.f32 %v3869_v37, %v382_v36  ;;  %v3878_v41 = vld [vmem:[%s5749_s1 + $0x5] ss:$0 sm:$0xff]  ;;  %v440_v42 = vld [vmem:[#allocation2 + $0x6] sm:$0xff]  ;;  %3318 = vmatpush3.msra.mxu1 %v770_v22  ;;  %v345_v61 = vadd.f32 %v337_v35, %v316_v47  ;;  %v587_v0 = vld [vmem:[#allocation2 + $0x14] sm:$0xff]  ;;  %v338_v2 = vmul.f32 %v3851_v28, %v529_v55  ;;  %3275 = vmatprep.subr.mxu0 %v815_v31 }
  0x2f   : > { %v3883_v43 = vld [vmem:[%s5749_s1 + $0x6] ss:$0 sm:$0xff]  ;;  %v814_v45 = vld [vmem:[#allocation3 + $0xa8] sm:$0xff]  ;;  %v3891_v48 = vmul.f32 %v3878_v41, %v411_v38  ;;  %3319 = vmatprep.subr.mxu1 %v769_v32  ;;  %v616_v5 = vld [vmem:[#allocation2 + $0x15] sm:$0xff]  ;;  %v317_v8 = vadd.f32 %v309_v58, %v3863_v34  ;;  %3276 = vmatpush3.msra.mxu0 %v815_v31  ;;  %v367_v14 = vmul.f32 %v3856_v30, %v558_v57 }
  0x30   : > { %v768_v46 = vld [vmem:[#allocation3 + $0x28] sm:$0xff]  ;;  %v3894_v49 = vmul.f32 %v3883_v43, %v440_v42  ;;  %v813_v59 = vld [vmem:[#allocation3 + $0xa0] sm:$0xff]  ;;  %v645_v7 = vld [vmem:[#allocation2 + $0x16] sm:$0xff]  ;;  %3320 = vmatpush3.msra.mxu1 %v769_v32  ;;  %v374_v9 = vadd.f32 %v366_v39, %v345_v61  ;;  %3277 = vmatprep.subr.mxu0 %v814_v45  ;;  %v396_v39 = vmul.f32 %v3869_v37, %v587_v0 }
  0x31   : > { %v3899_v50 = vld [vmem:[%s5749_s1 + $0x8] ss:$0 sm:$0xff]  ;;  %v3904_v52 = vld [vmem:[%s5749_s1 + $0x9] ss:$0 sm:$0xff]  ;;  %v767_v60 = vld [vmem:[#allocation3 + $0x20] sm:$0xff]  ;;  %3321 = vmatprep.subr.mxu1 %v768_v46  ;;  %v346_v24 = vadd.f32 %v338_v2, %v317_v8  ;;  %3278 = vmatpush3.msra.mxu0 %v814_v45  ;;  %v454_v47 = vmul.f32 %v3883_v43, %v645_v7 }
  0x32   : > { %v3908_v53 = vmul.f32 0.0, %v3899_v50  ;;  %v3911_v54 = vmul.f32 %v3904_v52, %v500_v51  ;;  %v3925_v63 = vld [vmem:[%s5749_s1 + $0xb] ss:$0 sm:$0xff]  ;;  %v3930_v1 = vld [vmem:[%s5749_s1 + $0xc] ss:$0 sm:$0xff]  ;;  %v705_v13 = vld [vmem:[#allocation2 + $0x21] sm:$0xff]  ;;  %3322 = vmatpush3.msra.mxu1 %v768_v46  ;;  %v403_v29 = vadd.f32 %v3873_v40, %v374_v9  ;;  %3279 = vmatprep.subr.mxu0 %v813_v59  ;;  %v425_v46 = vmul.f32 %v3878_v41, %v616_v5 }
  0x33   : > { %v3934_v3 = vmul.f32 %v3925_v63, %v558_v57  ;;  %v3937_v4 = vmul.f32 %v3930_v1, %v587_v0  ;;  %v3942_v6 = vld [vmem:[%s5749_s1 + $0xd] ss:$0 sm:$0xff]  ;;  %v3958_v11 = vld [vmem:[%s5749_s1 + $0xe] ss:$0 sm:$0xff]  ;;  %v3963_v12 = vld [vmem:[%s5749_s1 + $0x10] ss:$0 sm:$0xff]  ;;  %3323 = vmatprep.subr.mxu1 %v767_v60  ;;  %v375_v38 = vadd.f32 %v367_v14, %v346_v24  ;;  %3280 = vmatpush3.msra.mxu0 %v813_v59 }
  0x34   : > { %v3953_v10 = vmul.f32 %v3942_v6, %v616_v5  ;;  %v3967_v15 = vmul.f32 %v3958_v11, %v645_v7  ;;  %v3970_v16 = vmul.f32 0.0, %v3963_v12  ;;  %v3975_v21 = vld [vmem:[%s5749_s1 + $0x11] ss:$0 sm:$0xff]  ;;  %v3977_v22 = vld [vmem:[#allocation2 + $0x22] sm:$0xff]  ;;  %v3982_v23 = vld [vmem:[%s5749_s1 + $0x12] ss:$0 sm:$0xff]  ;;  %3324 = vmatpush3.msra.mxu1 %v767_v60  ;;  %v432_v45 = vadd.f32 %v3891_v48, %v403_v29  ;;  %3289 = vmatprep.mubr.f32.mxu0 %v3819_v17 }
  0x35   : > { %v812_v26 = vld [vmem:[#allocation3 + $0x98] sm:$0xff]  ;;  %v3986_v31 = vmul.f32 %v3975_v21, %v705_v13  ;;  %v3990_v32 = vmul.f32 %v3982_v23, %v3977_v22  ;;  %v3993_v35 = vld [vmem:[%s3949_s8] sm:$0xff]  ;;  %v811_v40 = vld [vmem:[#allocation3 + $0x90] sm:$0xff]  ;;  %v404_v55 = vadd.f32 %v396_v39, %v375_v38  ;;  %v514_v57 = vmul.f32 %v3904_v52, %v705_v13  ;;  %3333 = vmatprep.mubr.f32.mxu1 %v3977_v22 }
  0x36   : > { %v766_v27 = vld [vmem:[#allocation3 + $0x18] sm:$0xff]  ;;  %251 = vst [vmem:[#allocation2 + $0x33] sm:$0xff] %v3993_v35  ;;  %v3998_v36 = vmul.f32 %v3824_v18, %v3993_v35  ;;  %v765_v42 = vld [vmem:[#allocation3 + $0x10] sm:$0xff]  ;;  %3281 = vmatprep.subr.mxu0 %v812_v26  ;;  %v810_v51 = vld [vmem:[#allocation3 + $0x88] sm:$0xff]  ;;  %v4007_v58 = vmul.f32 %v3916_v56, %v3977_v22  ;;  %v461_v48 = vadd.f32 %v3894_v49, %v432_v45 }
  0x37   : > { %3325 = vmatprep.subr.mxu1 %v766_v27  ;;  %v4009_v59 = vld [vmem:[#allocation2 + $0x24] sm:$0xff]  ;;  %3282 = vmatpush3.msra.mxu0 %v812_v26  ;;  %v4014_v61 = vmul.f32 %v3925_v63, %v3819_v17  ;;  %v433_v7 = vadd.f32 %v425_v46, %v404_v55  ;;  %v310_v26 = vmul.f32 %v3840_v25, %v705_v13 }
  0x38   : > { %5820 = vst [vmem:[#allocation6_spill] sm:$0xff] %v3998_v36  ;;  %5821 = vst [vmem:[#allocation7_spill] sm:$0xff] %v4009_v59  ;;  %3326 = vmatpush3.msra.mxu1 %v766_v27  ;;  %v764_v60 = vld [vmem:[#allocation3 + $0x8] sm:$0xff]  ;;  %v4018_v0 = vmul.f32 %v3930_v1, %v4009_v59  ;;  %3283 = vmatprep.subr.mxu0 %v811_v40  ;;  %v809_v9 = vld [vmem:[#allocation3 + $0x80] sm:$0xff]  ;;  %v492_v24 = vadd.f32 %v3908_v53, %v461_v48 }
  0x39   : > { %v4020_v2 = vld [vmem:[#allocation2 + $0x25] sm:$0xff]  ;;  %3327 = vmatprep.subr.mxu1 %v765_v42  ;;  %3284 = vmatpush3.msra.mxu0 %v811_v40  ;;  %v339_v27 = vmul.f32 %v3851_v28, %v3977_v22  ;;  %v462_v29 = vadd.f32 %v454_v47, %v433_v7  ;;  %v397_v39 = vmul.f32 %v3869_v37, %v4009_v59  ;;  %v1356_v7 = vld [vmem:[#allocation3 + $0x1f8] sm:$0xff]  ;;  %v1355_v22 = vld [vmem:[#allocation3 + $0x1f0] sm:$0xff] }
  0x3a   : > { %5822 = vst [vmem:[#allocation8_spill] sm:$0xff] %v4020_v2  ;;  %v4022_v5 = vld [vmem:[#allocation2 + $0x26] sm:$0xff]  ;;  %v4026_v8 = vmul.f32 %v3942_v6, %v4020_v2  ;;  %3328 = vmatpush3.msra.mxu1 %v765_v42  ;;  %3285 = vmatprep.subr.mxu0 %v810_v51  ;;  %v4043_v40 = vmul.f32 %v3878_v41, %v4020_v2  ;;  %v4125_v36 = vld [vmem:[%s3949_s8 + $0x30] sm:$0xff] }
  0x3b   : > { %5823 = vst [vmem:[#allocation9_spill] sm:$0xff] %v4022_v5  ;;  %v4030_v49 = vmul.f32 %v3958_v11, %v4022_v5  ;;  %v763_v14 = vld [vmem:[#allocation3] sm:$0xff]  ;;  %3329 = vmatprep.subr.mxu1 %v764_v60  ;;  %v4037_v38 = vld [vmem:[%s3949_s8 + $0x8] sm:$0xff]  ;;  %3286 = vmatpush3.msra.mxu0 %v810_v51  ;;  %v521_v42 = vadd.f32 %v3911_v54, %v492_v24  ;;  %5834 = vst [vmem:[#allocation20_spill] sm:$0xff] %v4125_v36 }
  0x3c   : > { %3330 = vmatpush3.msra.mxu1 %v764_v60  ;;  %252 = vst [vmem:[#allocation2 + $0x43] sm:$0xff] %v4037_v38  ;;  %v4053_v46 = vmul.f32 %v3824_v18, %v4037_v38  ;;  %v318_v47 = vadd.f32 %v310_v26, %v3863_v34  ;;  %3287 = vmatprep.subr.mxu0 %v809_v9  ;;  %v4074_v26 = vld [vmem:[%s3949_s8 + $0x10] sm:$0xff]  ;;  %257 = vst [vmem:[#allocation2 + $0x93] sm:$0xff] %v4125_v36 }
  0x3d   : > { %v4046_v13 = vld [vmem:[#allocation2 + $0x30] sm:$0xff]  ;;  %3331 = vmatprep.subr.mxu1 %v763_v14  ;;  %v493_v51 = vadd.f32 %v3908_v53, %v462_v29  ;;  %3288 = vmatpush3.msra.mxu0 %v809_v9  ;;  %v550_v34 = vadd.f32 %v3920_v62, %v521_v42  ;;  %v1080_v53 = vld [vmem:[#allocation3 + $0x178] sm:$0xff]  ;;  %v455_v17 = vmul.f32 %v3883_v43, %v4022_v5  ;;  %v4112_v5 = vld [vmem:[%s3949_s8 + $0x28] sm:$0xff] }
  0x3e   : > { %5824 = vst [vmem:[#allocation10_spill] sm:$0xff] %v4046_v13  ;;  %v4048_v45 = vld [vmem:[#allocation2 + $0x31] sm:$0xff]  ;;  %5826 = vst [vmem:[#allocation12_spill] sm:$0xff] %v4053_v46  ;;  %v4059_v54 = vmul.f32 %v3963_v12, %v4046_v13  ;;  %v347_v24 = vadd.f32 %v339_v27, %v318_v47  ;;  %3332 = vmatpush3.msra.mxu1 %v763_v14  ;;  %v4081_v62 = vmul.f32 %v3899_v50, %v4046_v13  ;;  %v4097_v47 = vld [vmem:[%s3949_s8 + $0x20] sm:$0xff] }
  0x3f   : > { %5825 = vst [vmem:[#allocation11_spill] sm:$0xff] %v4048_v45  ;;  %v4063_v55 = vmul.f32 %v3975_v21, %v4048_v45  ;;  %v4065_v60 = vld [vmem:[#allocation2 + $0x32] sm:$0xff]  ;;  %v522_v29 = vadd.f32 %v514_v57, %v493_v51  ;;  %253 = vst [vmem:[#allocation2 + $0x53] sm:$0xff] %v4074_v26  ;;  %v579_v27 = vadd.f32 %v3934_v3, %v550_v34  ;;  %3290 = vmatmul.mubr.f32.vlgmr.msra.gmra.mxu0 %v3993_v35  ;;  %v1078_v57 = vld [vmem:[#allocation3 + $0x168] sm:$0xff] }
  0x40   : > { %5827 = vst [vmem:[#allocation13_spill] sm:$0xff] %v4065_v60  ;;  %v4071_v48 = vmul.f32 %v3982_v23, %v4065_v60  ;;  %v1079_v46 = vld [vmem:[#allocation3 + $0x170] sm:$0xff]  ;;  %v4085_v9 = vld [vmem:[%s3949_s8 + $0x18] sm:$0xff]  ;;  %3334 = vmatmul.mubr.f32.vlgmr.msra.gmra.mxu1 %v4065_v60  ;;  %v376_v14 = vadd.f32 %v3887_v44, %v347_v24  ;;  %v4093_v42 = vmul.f32 %v3904_v52, %v4048_v45  ;;  %5829 = vst [vmem:[#allocation15_spill] sm:$0xff] %v4097_v47 }
  0x41   : > { %5828 = vst [vmem:[#allocation14_spill] sm:$0xff] %v4085_v9  ;;  %254 = vst [vmem:[#allocation2 + $0x63] sm:$0xff] %v4085_v9  ;;  %v551_v51 = vadd.f32 %v4007_v58, %v522_v29  ;;  %3345 = vmatprep.subr.mxu0 %v1080_v53  ;;  %3389 = vmatprep.subr.mxu1 %v1356_v7  ;;  %v1354_v3 = vld [vmem:[#allocation3 + $0x1e8] sm:$0xff]  ;;  %v4102_v34 = vmul.f32 %v3916_v56, %v4065_v60  ;;  %v4108_v24 = vld [vmem:[#allocation2 + $0x34] sm:$0xff] }
  0x42   : > { %v4106_v44 = vmul.f32 %v3925_v63, %v3993_v35  ;;  %5830 = vst [vmem:[#allocation16_spill] sm:$0xff] %v4108_v24  ;;  %255 = vst [vmem:[#allocation2 + $0x73] sm:$0xff] %v4097_v47  ;;  %v608_v58 = vadd.f32 %v3937_v4, %v579_v27  ;;  %3346 = vmatpush3.msra.mxu0 %v1080_v53  ;;  %3390 = vmatpush3.msra.mxu1 %v1356_v7  ;;  %v4119_v59 = vld [vmem:[#allocation2 + $0x35] sm:$0xff]  ;;  %v1077_v4 = vld [vmem:[#allocation3 + $0x160] sm:$0xff] }
  0x43   : > { %5831 = vst [vmem:[#allocation17_spill] sm:$0xff] %v4112_v5  ;;  %v405_v29 = vadd.f32 %v397_v39, %v376_v14  ;;  %v4117_v2 = vmul.f32 %v3930_v1, %v4108_v24  ;;  %5832 = vst [vmem:[#allocation18_spill] sm:$0xff] %v4119_v59  ;;  %v4121_v9 = vld [vmem:[#allocation2 + $0x36] sm:$0xff]  ;;  %v580_v47 = vadd.f32 %v4014_v61, %v551_v51  ;;  %3347 = vmatprep.subr.mxu0 %v1079_v46  ;;  %v4136_v7 = vld [vmem:[#allocation2 + $0x40] sm:$0xff] }
  0x44   : > { %5833 = vst [vmem:[#allocation19_spill] sm:$0xff] %v4121_v9  ;;  %256 = vst [vmem:[#allocation2 + $0x83] sm:$0xff] %v4112_v5  ;;  %3391 = vmatprep.subr.mxu1 %v1355_v22  ;;  %v4130_v39 = vmul.f32 %v3942_v6, %v4119_v59  ;;  %v4134_v53 = vmul.f32 %v3958_v11, %v4121_v9  ;;  %v637_v27 = vadd.f32 %v3953_v10, %v608_v58  ;;  %v1353_v61 = vld [vmem:[#allocation3 + $0x1e0] sm:$0xff]  ;;  %v1352_v58 = vld [vmem:[#allocation3 + $0x1d8] sm:$0xff] }
  0x45   : > { %5837 = vst [vmem:[#allocation23_spill] sm:$0xff] %v4136_v7  ;;  %3348 = vmatpush3.msra.mxu0 %v1079_v46  ;;  %3392 = vmatpush3.msra.mxu1 %v1355_v22  ;;  %v434_v14 = vadd.f32 %v4043_v40, %v405_v29  ;;  %v4143_v51 = vmul.f32 %v3963_v12, %v4136_v7  ;;  %v4145_v5 = vld [vmem:[#allocation2 + $0x41] sm:$0xff]  ;;  %v1076_v22 = vld [vmem:[#allocation3 + $0x158] sm:$0xff] }
  0x46   : > { %5835 = vst [vmem:[#allocation21_spill] sm:$0xff] %v4130_v39  ;;  %5836 = vst [vmem:[#allocation22_spill] sm:$0xff] %v4134_v53  ;;  %v4147_v39 = vld [vmem:[#allocation2 + $0x42] sm:$0xff]  ;;  %v609_v53 = vadd.f32 %v4018_v0, %v580_v47  ;;  %3349 = vmatprep.subr.mxu0 %v1078_v57  ;;  %3393 = vmatprep.subr.mxu1 %v1354_v3  ;;  %v4152_v10 = vmul.f32 %v3975_v21, %v4145_v5 }
  0x47   : > { %5838 = vst [vmem:[#allocation24_spill] sm:$0xff] %v4145_v5  ;;  %5839 = vst [vmem:[#allocation25_spill] sm:$0xff] %v4147_v39  ;;  %v4156_v46 = vmul.f32 %v3982_v23, %v4147_v39  ;;  %v666_v40 = vadd.f32 %v3967_v15, %v637_v27  ;;  %3350 = vmatpush3.msra.mxu0 %v1078_v57  ;;  %3394 = vmatpush3.msra.mxu1 %v1354_v3  ;;  %v1075_v57 = vld [vmem:[#allocation3 + $0x150] sm:$0xff] }
  0x48   : > { %v463_v29 = vadd.f32 %v455_v17, %v434_v14  ;;  %v4161_v0 = vmul.f32 %v3824_v18, %v4074_v26  ;;  %v638_v47 = vadd.f32 %v4026_v8, %v609_v53  ;;  %3351 = vmatprep.subr.mxu0 %v1077_v4  ;;  %3395 = vmatprep.subr.mxu1 %v1353_v61  ;;  %v1351_v17 = vld [vmem:[#allocation3 + $0x1d0] sm:$0xff] }
  0x49   : > { %5840 = vst [vmem:[#allocation26_spill] sm:$0xff] %v4156_v46  ;;  %v282_v36 = vmul.f32 %v3834_v20, %v4046_v13  ;;  %v311_v46 = vmul.f32 %v3840_v25, %v4048_v45  ;;  %v697_v15 = vadd.f32 %v3970_v16, %v666_v40  ;;  %3352 = vmatpush3.msra.mxu0 %v1077_v4  ;;  %v1074_v4 = vld [vmem:[#allocation3 + $0x148] sm:$0xff] }
  0x4a   : > { %5841 = vst [vmem:[#allocation27_spill] sm:$0xff] %v4161_v0  ;;  %3396 = vmatpush3.msra.mxu1 %v1353_v61  ;;  %v494_v3 = vadd.f32 %v4081_v62, %v463_v29  ;;  %v340_v27 = vmul.f32 %v3851_v28, %v4065_v60  ;;  %v667_v8 = vadd.f32 %v4030_v49, %v638_v47  ;;  %v1350_v61 = vld [vmem:[#allocation3 + $0x1c8] sm:$0xff]  ;;  %v4394_v60 = vld [vmem:[#allocation2 + $0x70] sm:$0xff] }
  0x4b   : > { %3353 = vmatprep.subr.mxu0 %v1076_v22  ;;  %3397 = vmatprep.subr.mxu1 %v1352_v58  ;;  %v290_v53 = vadd.f32 %v3829_v19, %v282_v36  ;;  %v369_v14 = vmul.f32 %v3856_v30, %v3993_v35  ;;  %v726_v16 = vadd.f32 %v3986_v31, %v697_v15  ;;  %v1073_v31 = vld [vmem:[#allocation3 + $0x140] sm:$0xff] }
  0x4c   : > { %3354 = vmatpush3.msra.mxu0 %v1076_v22  ;;  %3398 = vmatpush3.msra.mxu1 %v1352_v58  ;;  %v523_v62 = vadd.f32 %v4093_v42, %v494_v3  ;;  %v398_v40 = vmul.f32 %v3869_v37, %v4108_v24  ;;  %v698_v49 = vadd.f32 %v4059_v54, %v667_v8  ;;  %v1349_v22 = vld [vmem:[#allocation3 + $0x1c0] sm:$0xff] }
  0x4d   : > { %3355 = vmatprep.subr.mxu0 %v1075_v57  ;;  %3399 = vmatprep.subr.mxu1 %v1351_v17  ;;  %v319_v29 = vadd.f32 %v311_v46, %v290_v53  ;;  %v427_v36 = vmul.f32 %v3878_v41, %v4119_v59  ;;  %v755_v35 = vadd.f32 %v3990_v32, %v726_v16  ;;  %v1072_v32 = vld [vmem:[#allocation3 + $0x138] sm:$0xff]  ;;  %v5845_v16 = vld [vmem:[#allocation6_spill] sm:$0xff]  ;;  %v5865_v59 = vld [vmem:[#allocation15_spill] sm:$0xff] }
  0x4e   : > { %3356 = vmatpush3.msra.mxu0 %v1075_v57  ;;  %3400 = vmatpush3.msra.mxu1 %v1351_v17  ;;  %v552_v58 = vadd.f32 %v4102_v34, %v523_v62  ;;  %v456_v42 = vmul.f32 %v3883_v43, %v4121_v9  ;;  %v727_v47 = vadd.f32 %v4063_v55, %v698_v49  ;;  %v1348_v57 = vld [vmem:[#allocation3 + $0x1b8] sm:$0xff]  ;;  %v4223_v49 = vld [vmem:[#allocation2 + $0x46] sm:$0xff] }
  0x4f   : > { %3357 = vmatprep.subr.mxu0 %v1074_v4  ;;  %3401 = vmatprep.subr.mxu1 %v1350_v61  ;;  %v348_v54 = vadd.f32 %v340_v27, %v319_v29  ;;  %v487_v46 = vmul.f32 %v3899_v50, %v4136_v7  ;;  %v4191_v15 = vadd.f32 %v3860_v33, %v755_v35  ;;  %v4203_v33 = vld [vmem:[#allocation2 + $0x44] sm:$0xff]  ;;  %v4225_v29 = vld [vmem:[#allocation2 + $0x50] sm:$0xff]  ;;  %v5849_v35 = vld [vmem:[#allocation21_spill] sm:$0xff] }
  0x50   : > { %3358 = vmatpush3.msra.mxu0 %v1074_v4  ;;  %3402 = vmatpush3.msra.mxu1 %v1350_v61  ;;  %v581_v34 = vadd.f32 %v4106_v44, %v552_v58  ;;  %v4196_v17 = vmul.f32 %v3904_v52, %v4145_v5  ;;  %v756_v55 = vadd.f32 %v4071_v48, %v727_v47  ;;  %v1071_v44 = vld [vmem:[#allocation3 + $0x130] sm:$0xff] }
  0x51   : > { %5842 = vst [vmem:[#allocation28_spill] sm:$0xff] %v4191_v15  ;;  %3359 = vmatprep.subr.mxu0 %v1073_v31  ;;  %3403 = vmatprep.subr.mxu1 %v1349_v22  ;;  %v377_v3 = vadd.f32 %v369_v14, %v348_v54  ;;  %v4201_v27 = vmul.f32 %v3916_v56, %v4147_v39  ;;  %5843 = vst [vmem:[#allocation29_spill] sm:$0xff] %v4203_v33  ;;  %v4214_v14 = vld [vmem:[#allocation2 + $0x45] sm:$0xff]  ;;  %v1347_v61 = vld [vmem:[#allocation3 + $0x1b0] sm:$0xff] }
  0x52   : > { %3360 = vmatpush3.msra.mxu0 %v1073_v31  ;;  %3404 = vmatpush3.msra.mxu1 %v1349_v22  ;;  %v610_v8 = vadd.f32 %v4117_v2, %v581_v34  ;;  %v4208_v53 = vmul.f32 %v3925_v63, %v4037_v38  ;;  %v4212_v48 = vmul.f32 %v3930_v1, %v4203_v33  ;;  %v4238_v47 = vld [vmem:[#allocation2 + $0x52] sm:$0xff]  ;;  %v5852_v34 = vld [vmem:[#allocation22_spill] sm:$0xff] }
  0x53   : > { %5844 = vst [vmem:[#allocation30_spill] sm:$0xff] %v4214_v14  ;;  %v4217_v4 = vadd.f32 %v5845_v16, %v756_v55  ;;  %3361 = vmatprep.subr.mxu0 %v1072_v32  ;;  %3405 = vmatprep.subr.mxu1 %v1348_v57  ;;  %v406_v62 = vadd.f32 %v398_v40, %v377_v3  ;;  %5847 = vst [vmem:[#allocation31_spill] sm:$0xff] %v4223_v49  ;;  %v4236_v40 = vld [vmem:[#allocation2 + $0x51] sm:$0xff]  ;;  %v1070_v3 = vld [vmem:[#allocation3 + $0x128] sm:$0xff] }
  0x54   : > { %v4221_v2 = vmul.f32 %v3942_v6, %v4214_v14  ;;  %5848 = vst [vmem:[#allocation32_spill] sm:$0xff] %v4225_v29  ;;  %3362 = vmatpush3.msra.mxu0 %v1072_v32  ;;  %3406 = vmatpush3.msra.mxu1 %v1348_v57  ;;  %v639_v31 = vadd.f32 %v5849_v35, %v610_v8  ;;  %5850 = vst [vmem:[#allocation21_spill] sm:$0xff] %v4236_v40  ;;  %v1346_v8 = vld [vmem:[#allocation3 + $0x1a8] sm:$0xff]  ;;  %v5853_v16 = vld [vmem:[#allocation14_spill] sm:$0xff] }
  0x55   : > { %5846 = vst [vmem:[#allocation6_spill] sm:$0xff] %v4217_v4  ;;  %v4230_v22 = vmul.f32 %v3958_v11, %v4223_v49  ;;  %v4234_v58 = vmul.f32 %v3963_v12, %v4225_v29  ;;  %5851 = vst [vmem:[#allocation33_spill] sm:$0xff] %v4238_v47  ;;  %3292 = vmatprep.mubr.f32.mxu0 %v4037_v38  ;;  %3336 = vmatprep.mubr.f32.mxu1 %v4147_v39 }
  0x56   : > { %v435_v54 = vadd.f32 %v427_v36, %v406_v62  ;;  %v4244_v32 = vmul.f32 %v3975_v21, %v4236_v40  ;;  %v4248_v57 = vmul.f32 %v3982_v23, %v4238_v47  ;;  %v668_v55 = vadd.f32 %v5852_v34, %v639_v31  ;;  %3363 = vmatprep.subr.mxu0 %v1071_v44 }
  0x57   : > { %3407 = vmatprep.subr.mxu1 %v1347_v61  ;;  %v4253_v35 = vmul.f32 %v3824_v18, %v5853_v16  ;;  %v283_v36 = vmul.f32 %v3834_v20, %v4136_v7  ;;  %3293 = vmatmul.mubr.f32.gmra.mxu0 %v4074_v26  ;;  %v312_v31 = vmul.f32 %v3840_v25, %v4145_v5  ;;  %v250_v7 = vld [vmem:[%s3949_s8 + $0x38] sm:$0xff]  ;;  %v4272_v5 = vld [vmem:[#allocation2 + $0x62] sm:$0xff] }
  0x58   : > { %v464_v62 = vadd.f32 %v456_v42, %v435_v54  ;;  %3337 = vmatmul.mubr.f32.gmra.mxu1 %v4238_v47  ;;  %v341_v34 = vmul.f32 %v3851_v28, %v4147_v39  ;;  %v699_v0 = vadd.f32 %v4143_v51, %v668_v55  ;;  %3364 = vmatpush3.msra.mxu0 %v1071_v44 }
  0x59   : > { %5854 = vst [vmem:[#allocation22_spill] sm:$0xff] %v4253_v35  ;;  %3408 = vmatpush3.msra.mxu1 %v1347_v61  ;;  %v291_v35 = vadd.f32 %v3829_v19, %v283_v36  ;;  %v370_v4 = vmul.f32 %v3856_v30, %v4037_v38  ;;  %3365 = vmatprep.subr.mxu0 %v1070_v3  ;;  %5855 = vst [vmem:[#allocation14_spill] sm:$0xff] %v4272_v5 }
  0x5a   : > { %v495_v9 = vadd.f32 %v487_v46, %v464_v62  ;;  %3409 = vmatprep.subr.mxu1 %v1346_v8  ;;  %v399_v42 = vmul.f32 %v3869_v37, %v4203_v33  ;;  %v428_v54 = vmul.f32 %v3878_v41, %v4214_v14  ;;  %258 = vst [vmem:[#allocation2 + $0xa3] sm:$0xff] %v250_v7  ;;  %v1069_v46 = vld [vmem:[#allocation3 + $0x120] sm:$0xff]  ;;  %v4304_v62 = vld [vmem:[#allocation2 + $0x55] sm:$0xff] }
  0x5b   : > { %v728_v51 = vadd.f32 %v4152_v10, %v699_v0  ;;  %3366 = vmatpush3.msra.mxu0 %v1070_v3  ;;  %3410 = vmatpush3.msra.mxu1 %v1346_v8  ;;  %v320_v44 = vadd.f32 %v312_v31, %v291_v35  ;;  %v457_v38 = vmul.f32 %v3883_v43, %v4223_v49  ;;  %v4291_v0 = vld [vmem:[#allocation2 + $0x54] sm:$0xff]  ;;  %v1345_v3 = vld [vmem:[#allocation3 + $0x1a0] sm:$0xff] }
  0x5c   : > { %v524_v61 = vadd.f32 %v4196_v17, %v495_v9  ;;  %3295 = vmatprep.mubr.f32.mxu0 %v5853_v16  ;;  %v4281_v55 = vmul.f32 %v3899_v50, %v4225_v29  ;;  %v4285_v7 = vmul.f32 %v3904_v52, %v4236_v40  ;;  %v4289_v10 = vmul.f32 %v3916_v56, %v4238_v47  ;;  %v5857_v8 = vld [vmem:[#allocation26_spill] sm:$0xff]  ;;  %v4306_v31 = vld [vmem:[#allocation2 + $0x56] sm:$0xff] }
  0x5d   : > { %5856 = vst [vmem:[#allocation34_spill] sm:$0xff] %v4291_v0  ;;  %v4294_v35 = vadd.f32 %v5857_v8, %v728_v51  ;;  %v349_v9 = vadd.f32 %v341_v34, %v320_v44  ;;  %v4298_v17 = vmul.f32 %v3925_v63, %v4074_v26  ;;  %v4302_v36 = vmul.f32 %v3930_v1, %v4291_v0  ;;  %v4308_v49 = vld [vmem:[#allocation2 + $0x60] sm:$0xff]  ;;  %v4326_v33 = vld [vmem:[#allocation2 + $0x72] sm:$0xff] }
  0x5e   : > { %5859 = vst [vmem:[#allocation35_spill] sm:$0xff] %v4304_v62  ;;  %5860 = vst [vmem:[#allocation36_spill] sm:$0xff] %v4306_v31  ;;  %3339 = vmatprep.mubr.f32.mxu1 %v4272_v5  ;;  %v553_v51 = vadd.f32 %v4201_v27, %v524_v61  ;;  %v4314_v34 = vmul.f32 %v3942_v6, %v4304_v62  ;;  %v4318_v44 = vmul.f32 %v3958_v11, %v4306_v31  ;;  %v4324_v14 = vld [vmem:[#allocation2 + $0x61] sm:$0xff] }
  0x5f   : > { %5858 = vst [vmem:[#allocation26_spill] sm:$0xff] %v4294_v35  ;;  %5861 = vst [vmem:[#allocation37_spill] sm:$0xff] %v4308_v49  ;;  %v4322_v8 = vmul.f32 %v3963_v12, %v4308_v49  ;;  %3367 = vmatprep.subr.mxu0 %v1069_v46  ;;  %v378_v35 = vadd.f32 %v370_v4, %v349_v9  ;;  %v4330_v27 = vmul.f32 %v3975_v21, %v4324_v14 }
  0x60   : > { %5862 = vst [vmem:[#allocation38_spill] sm:$0xff] %v4324_v14  ;;  %v4334_v61 = vmul.f32 %v3982_v23, %v4272_v5  ;;  %3411 = vmatprep.subr.mxu1 %v1345_v3  ;;  %v4338_v39 = vmul.f32 %v3824_v18, %v5865_v59  ;;  %v582_v45 = vadd.f32 %v4208_v53, %v553_v51  ;;  %v1068_v51 = vld [vmem:[#allocation3 + $0x118] sm:$0xff] }
  0x61   : > { %5863 = vst [vmem:[#allocation39_spill] sm:$0xff] %v4330_v27  ;;  %3296 = vmatmul.mubr.f32.gmra.mxu0 %v5865_v59  ;;  %v284_v4 = vmul.f32 %v3834_v20, %v4225_v29  ;;  %v313_v9 = vmul.f32 %v3840_v25, %v4236_v40  ;;  %v342_v15 = vmul.f32 %v3851_v28, %v4238_v47  ;;  %v4396_v27 = vld [vmem:[#allocation2 + $0x71] sm:$0xff] }
  0x62   : > { %5864 = vst [vmem:[#allocation40_spill] sm:$0xff] %v4334_v61  ;;  %5866 = vst [vmem:[#allocation15_spill] sm:$0xff] %v4338_v39  ;;  %v407_v24 = vadd.f32 %v399_v42, %v378_v35  ;;  %v371_v13 = vmul.f32 %v3856_v30, %v4074_v26  ;;  %v400_v39 = vmul.f32 %v3869_v37, %v4291_v0  ;;  %3340 = vmatmul.mubr.f32.gmra.mxu1 %v4326_v33  ;;  %v1344_v35 = vld [vmem:[#allocation3 + $0x198] sm:$0xff]  ;;  %v4392_v61 = vld [vmem:[#allocation2 + $0x66] sm:$0xff] }
  0x63   : > { %v4354_v53 = vmul.f32 %v3878_v41, %v4304_v62  ;;  %v611_v29 = vadd.f32 %v4212_v48, %v582_v45  ;;  %v292_v40 = vadd.f32 %v3829_v19, %v284_v4  ;;  %v4361_v42 = vmul.f32 %v3883_v43, %v4306_v31  ;;  %3368 = vmatpush3.msra.mxu0 %v1069_v46  ;;  %v4379_v4 = vld [vmem:[#allocation2 + $0x64] sm:$0xff] }
  0x64   : > { %v4365_v26 = vmul.f32 %v3899_v50, %v4308_v49  ;;  %v436_v47 = vadd.f32 %v428_v54, %v407_v24  ;;  %v4369_v62 = vmul.f32 %v3904_v52, %v4324_v14  ;;  %v4373_v45 = vmul.f32 %v3916_v56, %v4272_v5  ;;  %5868 = vst [vmem:[#allocation42_spill] sm:$0xff] %v4379_v4  ;;  %v4381_v31 = vld [vmem:[#allocation2 + $0x65] sm:$0xff] }
  0x65   : > { %v4377_v48 = vmul.f32 %v3925_v63, %v5853_v16  ;;  %5869 = vst [vmem:[#allocation43_spill] sm:$0xff] %v4381_v31  ;;  %3412 = vmatpush3.msra.mxu1 %v1345_v3  ;;  %v640_v46 = vadd.f32 %v4221_v2, %v611_v29  ;;  %v321_v24 = vadd.f32 %v313_v9, %v292_v40  ;;  %5872 = vst [vmem:[#allocation46_spill] sm:$0xff] %v4392_v61  ;;  %v4410_v3 = vld [vmem:[#allocation2 + $0x82] sm:$0xff] }
  0x66   : > { %v4386_v54 = vmul.f32 %v3930_v1, %v4379_v4  ;;  %v4390_v0 = vmul.f32 %v3942_v6, %v4381_v31  ;;  %3369 = vmatprep.subr.mxu0 %v1068_v51  ;;  %v4400_v2 = vmul.f32 %v3958_v11, %v4392_v61  ;;  %v4404_v29 = vmul.f32 %v3963_v12, %v4394_v60 }
  0x67   : > { %5867 = vst [vmem:[#allocation41_spill] sm:$0xff] %v4377_v48  ;;  %v465_v48 = vadd.f32 %v457_v38, %v436_v47  ;;  %v4408_v40 = vmul.f32 %v3975_v21, %v4396_v27  ;;  %3413 = vmatprep.subr.mxu1 %v1344_v35  ;;  %v669_v9 = vadd.f32 %v4230_v22, %v640_v46  ;;  %v1067_v38 = vld [vmem:[#allocation3 + $0x110] sm:$0xff] }
  0x68   : > { %5870 = vst [vmem:[#allocation44_spill] sm:$0xff] %v4386_v54  ;;  %5871 = vst [vmem:[#allocation45_spill] sm:$0xff] %v4390_v0  ;;  %v350_v0 = vadd.f32 %v342_v15, %v321_v24  ;;  %v4415_v47 = vmul.f32 %v3982_v23, %v4326_v33  ;;  %3370 = vmatpush3.msra.mxu0 %v1068_v51  ;;  %3414 = vmatpush3.msra.mxu1 %v1344_v35  ;;  %v1343_v22 = vld [vmem:[#allocation3 + $0x190] sm:$0xff] }
  0x69   : > { %5873 = vst [vmem:[#allocation47_spill] sm:$0xff] %v4400_v2  ;;  %5874 = vst [vmem:[#allocation48_spill] sm:$0xff] %v4404_v29  ;;  %v496_v2 = vadd.f32 %v4281_v55, %v465_v48  ;;  %v5876_v29 = vld [vmem:[#allocation17_spill] sm:$0xff]  ;;  %v314_v15 = vmul.f32 %v3840_v25, %v4324_v14  ;;  %v700_v46 = vadd.f32 %v4234_v58, %v669_v9  ;;  %3342 = vmatprep.mubr.f32.mxu1 %v4410_v3 }
  0x6a   : > { %5875 = vst [vmem:[#allocation49_spill] sm:$0xff] %v4408_v40  ;;  %v4420_v54 = vmul.f32 %v3824_v18, %v5876_v29  ;;  %3298 = vmatprep.mubr.f32.mxu0 %v5876_v29  ;;  %v285_v40 = vmul.f32 %v3834_v20, %v4308_v49  ;;  %v379_v51 = vadd.f32 %v371_v13, %v350_v0  ;;  %v4439_v13 = vld [vmem:[#allocation2 + $0x92] sm:$0xff]  ;;  %v1342_v49 = vld [vmem:[#allocation3 + $0x188] sm:$0xff] }
  0x6b   : > { %v343_v35 = vmul.f32 %v3851_v28, %v4272_v5  ;;  %v372_v55 = vmul.f32 %v3856_v30, %v5853_v16  ;;  %v525_v48 = vadd.f32 %v4285_v7, %v496_v2  ;;  %v430_v14 = vmul.f32 %v3878_v41, %v4381_v31  ;;  %3371 = vmatprep.subr.mxu0 %v1067_v38  ;;  %v1066_v31 = vld [vmem:[#allocation3 + $0x108] sm:$0xff] }
  0x6c   : > { %5877 = vst [vmem:[#allocation17_spill] sm:$0xff] %v4420_v54  ;;  %v293_v24 = vadd.f32 %v3829_v19, %v285_v40  ;;  %v401_v54 = vmul.f32 %v3869_v37, %v4379_v4  ;;  %5878 = vst [vmem:[#allocation50_spill] sm:$0xff] %v4439_v13  ;;  %v729_v58 = vadd.f32 %v4244_v32, %v700_v46  ;;  %3415 = vmatprep.subr.mxu1 %v1343_v22  ;;  %v5879_v46 = vld [vmem:[#allocation20_spill] sm:$0xff]  ;;  %v4488_v4 = vld [vmem:[#allocation2 + $0x80] sm:$0xff] }
  0x6d   : > { %v408_v0 = vadd.f32 %v400_v39, %v379_v51  ;;  %v4444_v16 = vmul.f32 %v3883_v43, %v4392_v61  ;;  %v4448_v7 = vmul.f32 %v3899_v50, %v4394_v60  ;;  %v554_v2 = vadd.f32 %v4289_v10, %v525_v48  ;;  %v4459_v39 = vld [vmem:[#allocation2 + $0x74] sm:$0xff]  ;;  %3299 = vmatmul.mubr.f32.gmra.mxu0 %v5879_v46  ;;  %v4490_v5 = vld [vmem:[#allocation2 + $0x81] sm:$0xff] }
  0x6e   : > { %v322_v40 = vadd.f32 %v314_v15, %v293_v24  ;;  %v4453_v9 = vmul.f32 %v3904_v52, %v4396_v27  ;;  %v4457_v32 = vmul.f32 %v3916_v56, %v4326_v33  ;;  %v4463_v51 = vadd.f32 %v4248_v57, %v729_v58  ;;  %v4474_v48 = vld [vmem:[#allocation2 + $0x75] sm:$0xff]  ;;  %3343 = vmatmul.mubr.f32.gmra.mxu1 %v4439_v13 }
  0x6f   : > { %v437_v61 = vadd.f32 %v4354_v53, %v408_v0  ;;  %v4468_v10 = vmul.f32 %v3925_v63, %v5865_v59  ;;  %v4472_v15 = vmul.f32 %v3930_v1, %v4459_v39  ;;  %v4476_v24 = vld [vmem:[#allocation2 + $0x76] sm:$0xff]  ;;  %v583_v57 = vadd.f32 %v4298_v17, %v554_v2  ;;  %3372 = vmatpush3.msra.mxu0 %v1067_v38 }
  0x70   : > { %5880 = vst [vmem:[#allocation20_spill] sm:$0xff] %v4463_v51  ;;  %v351_v58 = vadd.f32 %v343_v35, %v322_v40  ;;  %v4482_v53 = vmul.f32 %v3942_v6, %v4474_v48  ;;  %v4486_v0 = vmul.f32 %v3958_v11, %v4476_v24  ;;  %v4495_v17 = vmul.f32 %v3963_v12, %v4488_v4 }
  0x71   : > { %v466_v51 = vadd.f32 %v4361_v42, %v437_v61  ;;  %v4499_v35 = vmul.f32 %v3975_v21, %v4490_v5  ;;  %v4503_v2 = vmul.f32 %v3982_v23, %v4410_v3  ;;  %3416 = vmatpush3.msra.mxu1 %v1343_v22  ;;  %v612_v40 = vadd.f32 %v4302_v36, %v583_v57  ;;  %v1065_v22 = vld [vmem:[#allocation3 + $0x100] sm:$0xff] }
  0x72   : > { %5881 = vst [vmem:[#allocation51_spill] sm:$0xff] %v4486_v0  ;;  %v380_v0 = vadd.f32 %v372_v55, %v351_v58  ;;  %v4508_v38 = vmul.f32 %v3824_v18, %v5879_v46  ;;  %v286_v61 = vmul.f32 %v3834_v20, %v4394_v60  ;;  %3373 = vmatprep.subr.mxu0 %v1066_v31 }
  0x73   : > { %5882 = vst [vmem:[#allocation52_spill] sm:$0xff] %v4499_v35  ;;  %5883 = vst [vmem:[#allocation53_spill] sm:$0xff] %v4503_v2  ;;  %v497_v42 = vadd.f32 %v4365_v26, %v466_v51  ;;  %v315_v35 = vmul.f32 %v3840_v25, %v4396_v27  ;;  %v344_v2 = vmul.f32 %v3851_v28, %v4326_v33  ;;  %3417 = vmatprep.subr.mxu1 %v1342_v49  ;;  %v1341_v26 = vld [vmem:[#allocation3 + $0x180] sm:$0xff]  ;;  %v4547_v51 = vld [vmem:[#allocation2 + $0x91] sm:$0xff] }
  0x74   : > { %5884 = vst [vmem:[#allocation54_spill] sm:$0xff] %v4508_v38  ;;  %v373_v36 = vmul.f32 %v3856_v30, %v5865_v59  ;;  %v641_v18 = vadd.f32 %v4314_v34, %v612_v40  ;;  %v409_v55 = vadd.f32 %v401_v54, %v380_v0  ;;  %v294_v46 = vadd.f32 %v3829_v19, %v286_v61  ;;  %v4534_v34 = vld [vmem:[#allocation2 + $0x84] sm:$0xff] }
  0x75   : > { %v402_v20 = vmul.f32 %v3869_v37, %v4459_v39  ;;  %3374 = vmatpush3.msra.mxu0 %v1066_v31  ;;  %v526_v25 = vadd.f32 %v4369_v62, %v497_v42  ;;  %v431_v28 = vmul.f32 %v3878_v41, %v4474_v48  ;;  %v4528_v30 = vmul.f32 %v3883_v43, %v4476_v24  ;;  %v4536_v19 = vld [vmem:[#allocation2 + $0x85] sm:$0xff]  ;;  %v4545_v43 = vld [vmem:[#allocation2 + $0x90] sm:$0xff] }
  0x76   : > { %v4532_v59 = vmul.f32 %v3899_v50, %v4488_v4  ;;  %3418 = vmatpush3.msra.mxu1 %v1342_v49  ;;  %v670_v37 = vadd.f32 %v4318_v44, %v641_v18  ;;  %v438_v31 = vadd.f32 %v430_v14, %v409_v55  ;;  %v323_v62 = vadd.f32 %v315_v35, %v294_v46  ;;  %v4543_v54 = vld [vmem:[#allocation2 + $0x86] sm:$0xff]  ;;  %v5891_v42 = vld [vmem:[#allocation8_spill] sm:$0xff]  ;;  %v4613_v55 = vld [vmem:[%s5749_s1 + $0x18] ss:$0 sm:$0xff] }
  0x77   : > { %v4541_v41 = vmul.f32 %v3904_v52, %v4490_v5  ;;  %5885 = vst [vmem:[#allocation55_spill] sm:$0xff] %v4545_v43  ;;  %5886 = vst [vmem:[#allocation56_spill] sm:$0xff] %v4547_v51  ;;  %3375 = vmatprep.subr.mxu0 %v1065_v22  ;;  %v555_v50 = vadd.f32 %v4373_v45, %v526_v25  ;;  %v4552_v49 = vmul.f32 %v3916_v56, %v4410_v3  ;;  %v5887_v56 = vld [vmem:[#allocation41_spill] sm:$0xff] }
  0x78   : > { %v4556_v14 = vmul.f32 %v3925_v63, %v5876_v29  ;;  %v4560_v52 = vmul.f32 %v3930_v1, %v4534_v34  ;;  %3419 = vmatprep.subr.mxu1 %v1341_v26  ;;  %v701_v44 = vadd.f32 %v4322_v8, %v670_v37  ;;  %v467_v57 = vadd.f32 %v4444_v16, %v438_v31  ;;  %v5888_v29 = vld [vmem:[#allocation7_spill] sm:$0xff]  ;;  %v5893_v46 = vld [vmem:[#allocation13_spill] sm:$0xff] }
  0x79   : > { %v352_v58 = vadd.f32 %v344_v2, %v323_v62  ;;  %v4566_v45 = vmul.f32 %v3942_v6, %v4536_v19  ;;  %3376 = vmatpush3.msra.mxu0 %v1065_v22  ;;  %v584_v0 = vadd.f32 %v5887_v56, %v555_v50  ;;  %v4571_v63 = vmul.f32 %v3958_v11, %v4543_v54  ;;  %v5889_v16 = vld [vmem:[#allocation39_spill] sm:$0xff]  ;;  %v4591_v11 = vld [vmem:[%s5749_s1 + $0x14] ss:$0 sm:$0xff]  ;;  %v5892_v22 = vld [vmem:[#allocation9_spill] sm:$0xff] }
  0x7a   : > { %v4575_v1 = vmul.f32 %v3963_v12, %v4545_v43  ;;  %v4579_v8 = vmul.f32 %v3975_v21, %v4547_v51  ;;  %3377 = vmatprep.mubr.f32.mxu0 %v5888_v29  ;;  %v730_v6 = vadd.f32 %v5889_v16, %v701_v44  ;;  %v498_v35 = vadd.f32 %v4448_v7, %v467_v57  ;;  %v4596_v12 = vld [vmem:[%s5749_s1 + $0x15] ss:$0 sm:$0xff]  ;;  %v4601_v21 = vld [vmem:[%s5749_s1 + $0x16] ss:$0 sm:$0xff]  ;;  %v1515_v25 = vld [vmem:[#allocation3 + $0x278] sm:$0xff] }
  0x7b   : > { %v381_v2 = vadd.f32 %v373_v36, %v352_v58  ;;  %v4586_v40 = vmul.f32 %v3982_v23, %v4439_v13  ;;  %3420 = vmatpush3.msra.mxu1 %v1341_v26  ;;  %v5890_v7 = vld [vmem:[#allocation44_spill] sm:$0xff]  ;;  %v1048_v23 = vmul.f32 %v4591_v11, %v5888_v29  ;;  %v1207_v36 = vmul.f32 %v4596_v12, %v5891_v42  ;;  %v5895_v50 = vld [vmem:[#allocation10_spill] sm:$0xff]  ;;  %v4625_v57 = vld [vmem:[%s5749_s1 + $0x19] ss:$0 sm:$0xff] }
  0x7c   : > { %v613_v61 = vadd.f32 %v5890_v7, %v584_v0  ;;  %v1236_v18 = vmul.f32 %v4601_v21, %v5892_v22  ;;  %3421 = vmatprep.mubr.f32.mxu1 %v5893_v46  ;;  %v5894_v26 = vld [vmem:[#allocation40_spill] sm:$0xff]  ;;  %v527_v31 = vadd.f32 %v4453_v9, %v498_v35  ;;  %v1266_v44 = vmul.f32 %v4613_v55, %v5895_v50  ;;  %v4630_v58 = vld [vmem:[%s5749_s1 + $0x1a] ss:$0 sm:$0xff]  ;;  %v5901_v50 = vld [vmem:[#allocation18_spill] sm:$0xff] }
  0x7d   : > { %v4617_v37 = vadd.f32 %v5894_v26, %v730_v6  ;;  %v410_v62 = vadd.f32 %v402_v20, %v381_v2  ;;  %v5896_v56 = vld [vmem:[#allocation16_spill] sm:$0xff]  ;;  %v1674_v0 = vld [vmem:[#allocation3 + $0x2f8] sm:$0xff]  ;;  %v5899_v6 = vld [vmem:[#allocation11_spill] sm:$0xff]  ;;  %v1324_v2 = vmul.f32 %v4630_v58, %v5893_v46  ;;  %v1208_v51 = vmul.f32 %v4596_v12, %v5901_v50  ;;  %3433 = vmatprep.subr.mxu0 %v1515_v25 }
  0x7e   : > { %3378 = vmatmul.mubr.f32.vlgmr.msra.gmra.mxu0 %v5896_v56  ;;  %v5897_v29 = vld [vmem:[#allocation45_spill] sm:$0xff]  ;;  %v5898_v9 = vld [vmem:[#allocation28_spill] sm:$0xff]  ;;  %v1295_v35 = vmul.f32 %v4625_v57, %v5899_v6  ;;  %v556_v42 = vadd.f32 %v4457_v32, %v527_v31  ;;  %v1049_v26 = vmul.f32 %v4591_v11, %v5896_v56  ;;  %v5903_v6 = vld [vmem:[#allocation19_spill] sm:$0xff]  ;;  %3477 = vmatprep.subr.mxu1 %v1674_v0 }
  0x7f   : > { %v642_v16 = vadd.f32 %v5897_v29, %v613_v61  ;;  %v1056_v20 = vadd.f32 %v1048_v23, %v5898_v9  ;;  %v5900_v7 = vld [vmem:[#allocation25_spill] sm:$0xff]  ;;  %v439_v22 = vadd.f32 %v431_v28, %v410_v62  ;;  %v1514_v61 = vld [vmem:[#allocation3 + $0x270] sm:$0xff]  ;;  %v5902_v23 = vld [vmem:[#allocation47_spill] sm:$0xff]  ;;  %v1237_v13 = vmul.f32 %v4601_v21, %v5903_v6  ;;  %3434 = vmatpush3.msra.mxu0 %v1515_v25 }
  0x80   : > { %3422 = vmatmul.mubr.f32.vlgmr.msra.gmra.mxu1 %v5900_v7  ;;  %v5904_v46 = vld [vmem:[#allocation23_spill] sm:$0xff]  ;;  %v1673_v32 = vld [vmem:[#allocation3 + $0x2f0] sm:$0xff]  ;;  %v585_v28 = vadd.f32 %v4468_v10, %v556_v42  ;;  %v5905_v62 = vld [vmem:[#allocation6_spill] sm:$0xff]  ;;  %3435 = vmatprep.subr.mxu0 %v1514_v61 }
  0x81   : > { %v671_v29 = vadd.f32 %v5902_v23, %v642_v16  ;;  %v1215_v9 = vadd.f32 %v1207_v36, %v1056_v20  ;;  %v1267_v43 = vmul.f32 %v4613_v55, %v5904_v46  ;;  %v468_v31 = vadd.f32 %v4528_v30, %v439_v22  ;;  %v5906_v50 = vld [vmem:[#allocation24_spill] sm:$0xff]  ;;  %3478 = vmatpush3.msra.mxu1 %v1674_v0  ;;  %v5908_v30 = vld [vmem:[#allocation26_spill] sm:$0xff]  ;;  %v5910_v46 = vld [vmem:[#allocation49_spill] sm:$0xff] }
  0x82   : > { %v1057_v56 = vadd.f32 %v1049_v26, %v5905_v62  ;;  %v1296_v38 = vmul.f32 %v4625_v57, %v5906_v50  ;;  %v5907_v16 = vld [vmem:[#allocation48_spill] sm:$0xff]  ;;  %v1325_v23 = vmul.f32 %v4630_v58, %v5900_v7  ;;  %v614_v6 = vadd.f32 %v4472_v15, %v585_v28  ;;  %3479 = vmatprep.subr.mxu1 %v1673_v32  ;;  %v5911_v50 = vld [vmem:[#allocation29_spill] sm:$0xff]  ;;  %v5912_v7 = vld [vmem:[#allocation30_spill] sm:$0xff] }
  0x83   : > { %v702_v36 = vadd.f32 %v5907_v16, %v671_v29  ;;  %v1244_v20 = vadd.f32 %v1236_v18, %v1215_v9  ;;  %v499_v10 = vadd.f32 %v4532_v59, %v468_v31  ;;  %v5909_v22 = vld [vmem:[#allocation12_spill] sm:$0xff]  ;;  %v1050_v18 = vmul.f32 %v4591_v11, %v5911_v50  ;;  %3380 = vmatprep.mubr.f32.mxu0 %v5911_v50  ;;  %v5913_v29 = vld [vmem:[#allocation31_spill] sm:$0xff] }
  0x84   : > { %v1216_v42 = vadd.f32 %v1208_v51, %v1057_v56  ;;  %v802_v26 = vadd.f32 %v5909_v22, %v5908_v30  ;;  %v1209_v0 = vmul.f32 %v4596_v12, %v5912_v7  ;;  %v643_v15 = vadd.f32 %v4482_v53, %v614_v6  ;;  %3436 = vmatpush3.msra.mxu0 %v1514_v61  ;;  %v1513_v28 = vld [vmem:[#allocation3 + $0x268] sm:$0xff]  ;;  %v5914_v16 = vld [vmem:[#allocation20_spill] sm:$0xff] }
  0x85   : > { %v731_v62 = vadd.f32 %v5910_v46, %v702_v36  ;;  %v1274_v25 = vadd.f32 %v1266_v44, %v1244_v20  ;;  %v528_v59 = vadd.f32 %v4541_v41, %v499_v10  ;;  %v1238_v9 = vmul.f32 %v4601_v21, %v5913_v29  ;;  %3480 = vmatpush3.msra.mxu1 %v1673_v32  ;;  %v5915_v36 = vld [vmem:[#allocation27_spill] sm:$0xff]  ;;  %v5919_v10 = vld [vmem:[#allocation36_spill] sm:$0xff] }
  0x86   : > { %v1245_v51 = vadd.f32 %v1237_v13, %v1216_v42  ;;  %v1058_v56 = vadd.f32 %v1050_v18, %v802_v26  ;;  %v803_v20 = vadd.f32 %v5915_v36, %v5914_v16  ;;  %v1672_v30 = vld [vmem:[#allocation3 + $0x2e8] sm:$0xff]  ;;  %v5917_v13 = vld [vmem:[#allocation34_spill] sm:$0xff]  ;;  %v1239_v42 = vmul.f32 %v4601_v21, %v5919_v10  ;;  %3437 = vmatprep.subr.mxu0 %v1513_v28  ;;  %v5920_v50 = vld [vmem:[#allocation32_spill] sm:$0xff] }
  0x87   : > { %v760_v44 = vadd.f32 %v4415_v47, %v731_v62  ;;  %v1303_v31 = vadd.f32 %v1295_v35, %v1274_v25  ;;  %v5916_v22 = vld [vmem:[#allocation51_spill] sm:$0xff]  ;;  %v557_v53 = vadd.f32 %v4552_v49, %v528_v59  ;;  %v1051_v6 = vmul.f32 %v4591_v11, %v5917_v13  ;;  %3381 = vmatmul.mubr.f32.gmra.mxu0 %v5917_v13  ;;  %v5921_v18 = vld [vmem:[#allocation21_spill] sm:$0xff]  ;;  %v1512_v59 = vld [vmem:[#allocation3 + $0x260] sm:$0xff] }
  0x88   : > { %v672_v46 = vadd.f32 %v5916_v22, %v643_v15  ;;  %v1275_v41 = vadd.f32 %v1267_v43, %v1245_v51  ;;  %v1217_v47 = vadd.f32 %v1209_v0, %v1058_v56  ;;  %v5918_v35 = vld [vmem:[#allocation35_spill] sm:$0xff]  ;;  %3481 = vmatprep.subr.mxu1 %v1672_v30  ;;  %v1297_v7 = vmul.f32 %v4625_v57, %v5921_v18  ;;  %v5922_v0 = vld [vmem:[#allocation33_spill] sm:$0xff]  ;;  %v5923_v51 = vld [vmem:[#allocation52_spill] sm:$0xff] }
  0x89   : > { %v4680_v61 = vadd.f32 %v1324_v2, %v1303_v31  ;;  %v1210_v32 = vmul.f32 %v4596_v12, %v5918_v35  ;;  %v586_v49 = vadd.f32 %v4556_v14, %v557_v53  ;;  %v1059_v62 = vadd.f32 %v1051_v6, %v803_v20  ;;  %3424 = vmatprep.mubr.f32.mxu1 %v5922_v0  ;;  %v5924_v56 = vld [vmem:[#allocation37_spill] sm:$0xff]  ;;  %v5925_v36 = vld [vmem:[#allocation38_spill] sm:$0xff]  ;;  %v5930_v10 = vld [vmem:[#allocation43_spill] sm:$0xff] }
  0x8a   : > { %v703_v26 = vadd.f32 %v4495_v17, %v672_v46  ;;  %v1304_v43 = vadd.f32 %v1296_v38, %v1275_v41  ;;  %v1246_v25 = vadd.f32 %v1238_v9, %v1217_v47  ;;  %v1268_v2 = vmul.f32 %v4613_v55, %v5920_v50  ;;  %3438 = vmatpush3.msra.mxu0 %v1513_v28  ;;  %v1671_v9 = vld [vmem:[#allocation3 + $0x2e0] sm:$0xff]  ;;  %v5927_v53 = vld [vmem:[#allocation53_spill] sm:$0xff] }
  0x8b   : > { %v1326_v15 = vmul.f32 %v4630_v58, %v5922_v0  ;;  %v615_v14 = vadd.f32 %v4560_v52, %v586_v49  ;;  %v1218_v29 = vadd.f32 %v1210_v32, %v1059_v62  ;;  %3482 = vmatpush3.msra.mxu1 %v1672_v30  ;;  %v1269_v16 = vmul.f32 %v4613_v55, %v5924_v56  ;;  %v5926_v22 = vld [vmem:[#allocation14_spill] sm:$0xff]  ;;  %v1511_v49 = vld [vmem:[#allocation3 + $0x258] sm:$0xff] }
  0x8c   : > { %v732_v17 = vadd.f32 %v5923_v51, %v703_v26  ;;  %v4697_v38 = vadd.f32 %v1325_v23, %v1304_v43  ;;  %v1276_v31 = vadd.f32 %v1268_v2, %v1246_v25  ;;  %v1298_v20 = vmul.f32 %v4625_v57, %v5925_v36  ;;  %3425 = vmatmul.mubr.f32.gmra.mxu1 %v5926_v22  ;;  %v5928_v30 = vld [vmem:[#allocation22_spill] sm:$0xff]  ;;  %v1670_v43 = vld [vmem:[#allocation3 + $0x2d8] sm:$0xff]  ;;  %v5932_v25 = vld [vmem:[#allocation15_spill] sm:$0xff] }
  0x8d   : > { %v1327_v46 = vmul.f32 %v4630_v58, %v5926_v22  ;;  %v644_v52 = vadd.f32 %v4566_v45, %v615_v14  ;;  %v1247_v23 = vadd.f32 %v1239_v42, %v1218_v29  ;;  %3439 = vmatprep.subr.mxu0 %v1512_v59  ;;  %3483 = vmatprep.subr.mxu1 %v1671_v9  ;;  %v5929_v6 = vld [vmem:[#allocation42_spill] sm:$0xff]  ;;  %v1510_v51 = vld [vmem:[#allocation3 + $0x250] sm:$0xff] }
  0x8e   : > { %v761_v41 = vadd.f32 %v5927_v53, %v732_v17  ;;  %v1305_v28 = vadd.f32 %v1297_v7, %v1276_v31  ;;  %v804_v13 = vadd.f32 %v5928_v30, %v4617_v37  ;;  %v1052_v47 = vmul.f32 %v4591_v11, %v5929_v6  ;;  %3383 = vmatprep.mubr.f32.mxu0 %v5929_v6  ;;  %v5931_v42 = vld [vmem:[#allocation46_spill] sm:$0xff] }
  0x8f   : > { %v673_v35 = vadd.f32 %v4571_v63, %v644_v52  ;;  %v1277_v32 = vadd.f32 %v1269_v16, %v1247_v23  ;;  %v1211_v45 = vmul.f32 %v4596_v12, %v5930_v10  ;;  %v1240_v26 = vmul.f32 %v4601_v21, %v5931_v42  ;;  %3440 = vmatpush3.msra.mxu0 %v1512_v59  ;;  %v5934_v53 = vld [vmem:[#allocation54_spill] sm:$0xff]  ;;  %v1668_v23 = vld [vmem:[#allocation3 + $0x2c8] sm:$0xff] }
  0x90   : > { %v4718_v62 = vadd.f32 %v1326_v15, %v1305_v28  ;;  %v1060_v37 = vadd.f32 %v1052_v47, %v804_v13  ;;  %3484 = vmatpush3.msra.mxu1 %v1671_v9  ;;  %v805_v50 = vadd.f32 %v5932_v25, %v760_v44  ;;  %v1053_v2 = vmul.f32 %v4591_v11, %v4459_v39  ;;  %v1669_v9 = vld [vmem:[#allocation3 + $0x2d0] sm:$0xff]  ;;  %v5935_v47 = vld [vmem:[#allocation55_spill] sm:$0xff] }
  0x91   : > { %v704_v63 = vadd.f32 %v4575_v1, %v673_v35  ;;  %v1306_v18 = vadd.f32 %v1298_v20, %v1277_v32  ;;  %3384 = vmatmul.mubr.f32.gmra.mxu0 %v4459_v39  ;;  %v1212_v7 = vmul.f32 %v4596_v12, %v4474_v48  ;;  %v1241_v0 = vmul.f32 %v4601_v21, %v4476_v24  ;;  %v5933_v20 = vld [vmem:[#allocation17_spill] sm:$0xff] }
  0x92   : > { %v1219_v15 = vadd.f32 %v1211_v45, %v1060_v37  ;;  %v1061_v59 = vadd.f32 %v1053_v2, %v805_v50  ;;  %3441 = vmatprep.subr.mxu0 %v1511_v49  ;;  %3485 = vmatprep.subr.mxu1 %v1670_v43  ;;  %v1270_v44 = vmul.f32 %v4613_v55, %v4394_v60  ;;  %v1507_v37 = vld [vmem:[#allocation3 + $0x238] sm:$0xff]  ;;  %v5937_v2 = vld [vmem:[#allocation56_spill] sm:$0xff] }
  0x93   : > { %v733_v17 = vadd.f32 %v4579_v8, %v704_v63  ;;  %v4732_v1 = vadd.f32 %v1327_v46, %v1306_v18  ;;  %v1299_v14 = vmul.f32 %v4625_v57, %v4396_v27  ;;  %v1328_v29 = vmul.f32 %v4630_v58, %v4326_v33  ;;  %3427 = vmatprep.mubr.f32.mxu1 %v4326_v33  ;;  %v4770_v25 = vld [vmem:[#allocation2 + $0x33] sm:$0xff]  ;;  %v4779_v18 = vld [vmem:[%s5749_s1 + $0x1b] ss:$0 sm:$0xff] }
  0x94   : > { %v1248_v31 = vadd.f32 %v1240_v26, %v1219_v15  ;;  %v1220_v56 = vadd.f32 %v1212_v7, %v1061_v59  ;;  %3442 = vmatpush3.msra.mxu0 %v1511_v49  ;;  %3486 = vmatpush3.msra.mxu1 %v1670_v43  ;;  %v1271_v60 = vmul.f32 %v4613_v55, %v4488_v4  ;;  %v4750_v4 = vld [vmem:[#allocation2 + $0x94] sm:$0xff]  ;;  %v4767_v26 = vld [vmem:[#allocation2 + $0xa2] sm:$0xff] }
  0x95   : > { %v762_v8 = vadd.f32 %v4586_v40, %v733_v17  ;;  %v1300_v16 = vmul.f32 %v4625_v57, %v4490_v5  ;;  %v1329_v27 = vmul.f32 %v4630_v58, %v4410_v3  ;;  %3428 = vmatmul.mubr.f32.gmra.mxu1 %v4410_v3  ;;  %3443 = vmatprep.subr.mxu0 %v1510_v51  ;;  %v1509_v40 = vld [vmem:[#allocation3 + $0x248] sm:$0xff]  ;;  %v1508_v49 = vld [vmem:[#allocation3 + $0x240] sm:$0xff]  ;;  %v4781_v7 = vld [vmem:[#allocation2 + $0x34] sm:$0xff] }
  0x96   : > { %v1249_v33 = vadd.f32 %v1241_v0, %v1220_v56  ;;  %v1278_v36 = vadd.f32 %v1270_v44, %v1248_v31  ;;  %3487 = vmatprep.subr.mxu1 %v1669_v9  ;;  %v806_v22 = vadd.f32 %v5933_v20, %v761_v41  ;;  %v1054_v46 = vmul.f32 %v4591_v11, %v4534_v34  ;;  %v5936_v43 = vld [vmem:[#allocation50_spill] sm:$0xff]  ;;  %v4786_v0 = vld [vmem:[%s5749_s1 + $0x1c] ss:$0 sm:$0xff]  ;;  %v1506_v17 = vld [vmem:[#allocation3 + $0x230] sm:$0xff] }
  0x97   : > { %3386 = vmatprep.mubr.f32.mxu0 %v4534_v34  ;;  %v1213_v5 = vmul.f32 %v4596_v12, %v4536_v19  ;;  %v1242_v3 = vmul.f32 %v4601_v21, %v4543_v54  ;;  %3444 = vmatpush3.msra.mxu0 %v1510_v51  ;;  %v807_v52 = vadd.f32 %v5934_v53, %v762_v8  ;;  %v1666_v15 = vld [vmem:[#allocation3 + $0x2b8] sm:$0xff] }
  0x98   : > { %v1307_v28 = vadd.f32 %v1299_v14, %v1278_v36  ;;  %v1279_v41 = vadd.f32 %v1271_v60, %v1249_v33  ;;  %v1062_v30 = vadd.f32 %v1054_v46, %v806_v22  ;;  %3488 = vmatpush3.msra.mxu1 %v1669_v9  ;;  %v1055_v13 = vmul.f32 %v4591_v11, %v4750_v4  ;;  %v1667_v11 = vld [vmem:[#allocation3 + $0x2c0] sm:$0xff]  ;;  %v1505_v60 = vld [vmem:[#allocation3 + $0x228] sm:$0xff]  ;;  %v1503_v20 = vld [vmem:[#allocation3 + $0x218] sm:$0xff] }
  0x99   : > { %3387 = vmatmul.mubr.f32.gmra.mxu0 %v4750_v4  ;;  %3445 = vmatprep.subr.mxu0 %v1509_v40  ;;  %v1272_v12 = vmul.f32 %v4613_v55, %v5935_v47  ;;  %v1301_v63 = vmul.f32 %v4625_v57, %v5937_v2  ;;  %v1483_v57 = vmul.f32 %v4779_v18, %v4770_v25  ;;  %v4795_v14 = vld [vmem:[#allocation2 + $0x43] sm:$0xff]  ;;  %v1788_v22 = vld [vmem:[#allocation2 + $0x35] sm:$0xff]  ;;  %v4827_v47 = vld [vmem:[%s5749_s1 + $0x1e] ss:$0 sm:$0xff] }
  0x9a   : > { %v4763_v35 = vadd.f32 %v1328_v29, %v1307_v28  ;;  %v1308_v21 = vadd.f32 %v1300_v16, %v1279_v41  ;;  %v1221_v32 = vadd.f32 %v1213_v5, %v1062_v30  ;;  %v4765_v45 = vadd.f32 %v1055_v13, %v807_v52  ;;  %3489 = vmatprep.subr.mxu1 %v1668_v23  ;;  %v1665_v29 = vld [vmem:[#allocation3 + $0x2b0] sm:$0xff]  ;;  %v1504_v33 = vld [vmem:[#allocation3 + $0x220] sm:$0xff] }
  0x9b   : > { %3430 = vmatprep.mubr.f32.mxu1 %v5936_v43  ;;  %3446 = vmatpush3.msra.mxu0 %v1509_v40  ;;  %v1642_v59 = vmul.f32 %v4786_v0, %v4781_v7  ;;  %v1330_v51 = vmul.f32 %v4630_v58, %v5936_v43  ;;  %v1491_v9 = vadd.f32 %v1483_v57, %v4680_v61  ;;  %v1664_v58 = vld [vmem:[#allocation3 + $0x2a8] sm:$0xff]  ;;  %v1663_v36 = vld [vmem:[#allocation3 + $0x2a0] sm:$0xff]  ;;  %v4803_v61 = vld [vmem:[#allocation2 + $0x53] sm:$0xff] }
  0x9c   : > { %v4772_v50 = vadd.f32 %v1329_v27, %v1308_v21  ;;  %v1250_v55 = vadd.f32 %v1242_v3, %v1221_v32  ;;  %3490 = vmatpush3.msra.mxu1 %v1668_v23  ;;  %3447 = vmatprep.subr.mxu0 %v1508_v49  ;;  %v1484_v31 = vmul.f32 %v4779_v18, %v4795_v14  ;;  %v4807_v40 = vld [vmem:[#allocation2 + $0x63] sm:$0xff]  ;;  %v1817_v5 = vld [vmem:[#allocation2 + $0x36] sm:$0xff] }
  0x9d   : > { %3431 = vmatmul.mubr.f32.gmra.mxu1 %v4767_v26  ;;  %3491 = vmatprep.subr.mxu1 %v1667_v11  ;;  %v1650_v8 = vadd.f32 %v1642_v59, %v1491_v9  ;;  %v1485_v46 = vmul.f32 %v4779_v18, %v4803_v61  ;;  %v4809_v3 = vld [vmem:[#allocation2 + $0x44] sm:$0xff]  ;;  %v1486_v53 = vmul.f32 %v4779_v18, %v4807_v40  ;;  %v1502_v52 = vld [vmem:[#allocation3 + $0x210] sm:$0xff]  ;;  %v4816_v23 = vld [vmem:[%s5749_s1 + $0x1d] ss:$0 sm:$0xff] }
  0x9e   : > { %v1280_v44 = vadd.f32 %v1272_v12, %v1250_v55  ;;  %3448 = vmatpush3.msra.mxu0 %v1508_v49  ;;  %3492 = vmatpush3.msra.mxu1 %v1667_v11  ;;  %v1492_v16 = vadd.f32 %v1484_v31, %v4697_v38  ;;  %v1662_v38 = vld [vmem:[#allocation3 + $0x298] sm:$0xff]  ;;  %v1643_v28 = vmul.f32 %v4786_v0, %v4809_v3  ;;  %v4820_v41 = vld [vmem:[#allocation2 + $0x45] sm:$0xff]  ;;  %v1661_v49 = vld [vmem:[#allocation3 + $0x290] sm:$0xff] }
  0x9f   : > { %3449 = vmatprep.subr.mxu0 %v1507_v37  ;;  %3493 = vmatprep.subr.mxu1 %v1666_v15  ;;  %v1493_v30 = vadd.f32 %v1485_v46, %v4718_v62  ;;  %v1801_v13 = vmul.f32 %v4816_v23, %v1788_v22  ;;  %v4829_v12 = vld [vmem:[#allocation2 + $0x46] sm:$0xff]  ;;  %v1494_v21 = vadd.f32 %v1486_v53, %v4732_v1  ;;  %v4832_v32 = vld [vmem:[#allocation2 + $0x54] sm:$0xff] }
  0xa0   : > { %v1309_v56 = vadd.f32 %v1301_v63, %v1280_v44  ;;  %3450 = vmatpush3.msra.mxu0 %v1507_v37  ;;  %3494 = vmatpush3.msra.mxu1 %v1666_v15  ;;  %v1830_v62 = vmul.f32 %v4827_v47, %v1817_v5  ;;  %v1644_v43 = vmul.f32 %v4786_v0, %v4832_v32  ;;  %v4837_v11 = vld [vmem:[#allocation2 + $0x73] sm:$0xff]  ;;  %v1501_v37 = vld [vmem:[#allocation3 + $0x208] sm:$0xff] }
  0xa1   : > { %3451 = vmatprep.subr.mxu0 %v1506_v17  ;;  %3495 = vmatprep.subr.mxu1 %v1665_v29  ;;  %v1802_v55 = vmul.f32 %v4816_v23, %v4820_v41  ;;  %v4841_v2 = vld [vmem:[#allocation2 + $0x55] sm:$0xff]  ;;  %v1645_v1 = vmul.f32 %v4786_v0, %v5929_v6  ;;  %v1487_v63 = vmul.f32 %v4779_v18, %v4837_v11  ;;  %v1660_v15 = vld [vmem:[#allocation3 + $0x288] sm:$0xff] }
  0xa2   : > { %v4801_v27 = vadd.f32 %v1330_v51, %v1309_v56  ;;  %3452 = vmatpush3.msra.mxu0 %v1506_v17  ;;  %3496 = vmatpush3.msra.mxu1 %v1665_v29  ;;  %v1651_v57 = vadd.f32 %v1643_v28, %v1492_v16  ;;  %v1831_v59 = vmul.f32 %v4827_v47, %v4829_v12  ;;  %v4849_v44 = vld [vmem:[#allocation2 + $0x83] sm:$0xff]  ;;  %v4869_v53 = vld [vmem:[#allocation2 + $0x93] sm:$0xff] }
  0xa3   : > { %3453 = vmatprep.subr.mxu0 %v1505_v60  ;;  %3497 = vmatprep.subr.mxu1 %v1664_v58  ;;  %v1488_v51 = vmul.f32 %v4849_v44, %v4779_v18  ;;  %v1500_v17 = vld [vmem:[#allocation3 + $0x200] sm:$0xff]  ;;  %v1809_v29 = vadd.f32 %v1801_v13, %v1650_v8  ;;  %v1495_v9 = vadd.f32 %v1487_v63, %v4763_v35 }
  0xa4   : > { %3454 = vmatpush3.msra.mxu0 %v1505_v60  ;;  %3498 = vmatpush3.msra.mxu1 %v1664_v58  ;;  %v1646_v31 = vmul.f32 %v4786_v0, %v4459_v39  ;;  %v1659_v56 = vld [vmem:[#allocation3 + $0x280] sm:$0xff]  ;;  %v1652_v60 = vadd.f32 %v1644_v43, %v1493_v30  ;;  %v1803_v58 = vmul.f32 %v4816_v23, %v4841_v2  ;;  %v2109_v43 = vld [vmem:[#allocation3 + $0x3f0] sm:$0xff] }
  0xa5   : > { %3455 = vmatprep.subr.mxu0 %v1504_v33  ;;  %3499 = vmatprep.subr.mxu1 %v1663_v36  ;;  %v1496_v16 = vadd.f32 %v1488_v51, %v4772_v50  ;;  %v1804_v35 = vmul.f32 %v4816_v23, %v5930_v10  ;;  %v1647_v8 = vmul.f32 %v4786_v0, %v4534_v34  ;;  %v1951_v50 = vld [vmem:[#allocation3 + $0x378] sm:$0xff]  ;;  %v2108_v51 = vld [vmem:[#allocation3 + $0x3e8] sm:$0xff] }
  0xa6   : > { %3456 = vmatpush3.msra.mxu0 %v1504_v33  ;;  %3500 = vmatpush3.msra.mxu1 %v1663_v36  ;;  %v4859_v33 = vld [vmem:[#allocation2 + $0x56] sm:$0xff]  ;;  %v1653_v36 = vadd.f32 %v1645_v1, %v1494_v21  ;;  %v1654_v22 = vadd.f32 %v1646_v31, %v1495_v9  ;;  %v1805_v46 = vmul.f32 %v4816_v23, %v4474_v48  ;;  %v1847_v21 = vld [vmem:[#allocation2 + $0x40] sm:$0xff] }
  0xa7   : > { %3457 = vmatprep.subr.mxu0 %v1503_v20  ;;  %3501 = vmatprep.subr.mxu1 %v1662_v38  ;;  %v1806_v5 = vmul.f32 %v4816_v23, %v4536_v19  ;;  %v1489_v10 = vmul.f32 %v4869_v53, %v4779_v18  ;;  %v1832_v28 = vmul.f32 %v4827_v47, %v4859_v33  ;;  %v1950_v19 = vld [vmem:[#allocation3 + $0x370] sm:$0xff]  ;;  %v4907_v9 = vld [vmem:[#allocation2 + $0x42] sm:$0xff] }
  0xa8   : > { %3458 = vmatpush3.msra.mxu0 %v1503_v20  ;;  %3502 = vmatpush3.msra.mxu1 %v1662_v38  ;;  %v1810_v20 = vadd.f32 %v1802_v55, %v1651_v57  ;;  %v1655_v38 = vadd.f32 %v1647_v8, %v1496_v16  ;;  %v1833_v48 = vmul.f32 %v4827_v47, %v5931_v42  ;;  %v4901_v57 = vld [vmem:[#allocation2 + $0x50] sm:$0xff]  ;;  %v4912_v31 = vld [vmem:[%s5749_s1 + $0x22] ss:$0 sm:$0xff]  ;;  %v4921_v16 = vld [vmem:[%s5749_s1 + $0x23] ss:$0 sm:$0xff] }
  0xa9   : > { %3459 = vmatprep.subr.mxu0 %v1502_v52  ;;  %3503 = vmatprep.subr.mxu1 %v1661_v49  ;;  %v1648_v30 = vmul.f32 %v4786_v0, %v4750_v4  ;;  %v1811_v13 = vadd.f32 %v1803_v58, %v1652_v60  ;;  %v1812_v18 = vadd.f32 %v1804_v35, %v1653_v36  ;;  %v1877_v0 = vld [vmem:[#allocation2 + $0x41] sm:$0xff] }
  0xaa   : > { %3460 = vmatpush3.msra.mxu0 %v1502_v52  ;;  %3504 = vmatpush3.msra.mxu1 %v1661_v49  ;;  %v2110_v52 = vld [vmem:[#allocation3 + $0x3f8] sm:$0xff]  ;;  %v1838_v49 = vadd.f32 %v1830_v62, %v1809_v29  ;;  %v1834_v42 = vmul.f32 %v4827_v47, %v4476_v24  ;;  %v1814_v55 = vadd.f32 %v1806_v5, %v1655_v38  ;;  %v4923_v36 = vld [vmem:[#allocation2 + $0x60] sm:$0xff] }
  0xab   : > { %3461 = vmatprep.subr.mxu0 %v1501_v37  ;;  %3505 = vmatprep.subr.mxu1 %v1660_v15  ;;  %v1835_v1 = vmul.f32 %v4827_v47, %v4543_v54  ;;  %v1839_v62 = vadd.f32 %v1831_v59, %v1810_v20  ;;  %v4903_v54 = vld [vmem:[#allocation2 + $0x51] sm:$0xff]  ;;  %v1841_v29 = vadd.f32 %v1833_v48, %v1812_v18  ;;  %v1948_v35 = vld [vmem:[#allocation3 + $0x360] sm:$0xff] }
  0xac   : > { %3462 = vmatpush3.msra.mxu0 %v1501_v37  ;;  %3506 = vmatpush3.msra.mxu1 %v1660_v15  ;;  %v1813_v37 = vadd.f32 %v1805_v46, %v1654_v22  ;;  %v4899_v15 = vld [vmem:[%s5749_s1 + $0x21] ss:$0 sm:$0xff]  ;;  %5938 = vst [vmem:[#allocation41_spill] sm:$0xff] %v4912_v31  ;;  %v1919_v58 = vmul.f32 %v4912_v31, %v4907_v9  ;;  %5939 = vst [vmem:[#allocation7_spill] sm:$0xff] %v4921_v16  ;;  %v4932_v46 = vld [vmem:[#allocation2 + $0x52] sm:$0xff] }
  0xad   : > { %3463 = vmatprep.subr.mxu0 %v1500_v17  ;;  %3507 = vmatprep.subr.mxu1 %v1659_v56  ;;  %v1890_v59 = vmul.f32 %v4899_v15, %v1877_v0  ;;  %v4926_v8 = vadd.f32 %v1835_v1, %v1814_v55  ;;  %v1891_v22 = vmul.f32 %v4899_v15, %v4903_v54  ;;  %v2107_v38 = vld [vmem:[#allocation3 + $0x3e0] sm:$0xff]  ;;  %v4949_v18 = vld [vmem:[#allocation2 + $0x71] sm:$0xff] }
  0xae   : > { %3464 = vmatpush3.msra.mxu0 %v1500_v17  ;;  %3465 = vmatprep.mubr.f32.mxu0 %v4770_v25  ;;  %v1497_v25 = vadd.f32 %v1489_v10, %v4801_v27  ;;  %v4893_v27 = vld [vmem:[%s5749_s1 + $0x20] ss:$0 sm:$0xff]  ;;  %v1840_v17 = vadd.f32 %v1832_v28, %v1811_v13  ;;  %v2078_v10 = vmul.f32 %v4921_v16, %v4795_v14  ;;  %v4941_v28 = vld [vmem:[#allocation2 + $0x70] sm:$0xff]  ;;  %v4947_v13 = vld [vmem:[#allocation2 + $0x62] sm:$0xff] }
  0xaf   : > { %3508 = vmatpush3.msra.mxu1 %v1659_v56  ;;  %3509 = vmatprep.mubr.f32.mxu1 %v4781_v7  ;;  %v1949_v7 = vld [vmem:[#allocation3 + $0x368] sm:$0xff]  ;;  %v1861_v24 = vmul.f32 %v4893_v27, %v1847_v21  ;;  %v4914_v56 = vadd.f32 %v1834_v42, %v1813_v37  ;;  %v1862_v20 = vmul.f32 %v4893_v27, %v4901_v57  ;;  %v2106_v37 = vld [vmem:[#allocation3 + $0x3d8] sm:$0xff] }
  0xb0   : > { %3466 = vmatmul.mubr.f32.vlgmr.msra.gmra.mxu0 %v4795_v14  ;;  %3510 = vmatmul.mubr.f32.vlgmr.msra.gmra.mxu1 %v4809_v3  ;;  %v4888_v63 = vadd.f32 %v1648_v30, %v1497_v25  ;;  %v2079_v30 = vmul.f32 %v4921_v16, %v4803_v61  ;;  %v1947_v25 = vld [vmem:[#allocation3 + $0x358] sm:$0xff] }
  0xb1   : > { %3521 = vmatprep.subr.mxu0 %v1951_v50  ;;  %3565 = vmatprep.subr.mxu1 %v2110_v52  ;;  %v1869_v60 = vadd.f32 %v1861_v24, %v1838_v49  ;;  %v1870_v48 = vadd.f32 %v1862_v20, %v1839_v62  ;;  %v4959_v55 = vld [vmem:[#allocation2 + $0x72] sm:$0xff]  ;;  %v1893_v62 = vmul.f32 %v4899_v15, %v4949_v18 }
  0xb2   : > { %3522 = vmatpush3.msra.mxu0 %v1951_v50  ;;  %3566 = vmatpush3.msra.mxu1 %v2110_v52  ;;  %v4934_v50 = vld [vmem:[#allocation2 + $0x61] sm:$0xff]  ;;  %v1920_v52 = vmul.f32 %v4912_v31, %v4932_v46  ;;  %v1922_v24 = vmul.f32 %v4912_v31, %v4959_v55  ;;  %v2080_v20 = vmul.f32 %v4921_v16, %v4807_v40 }
  0xb3   : > { %3523 = vmatprep.subr.mxu0 %v1950_v19  ;;  %3567 = vmatprep.subr.mxu1 %v2109_v43  ;;  %v1898_v5 = vadd.f32 %v1890_v59, %v1869_v60  ;;  %v1892_v49 = vmul.f32 %v4899_v15, %v4934_v50  ;;  %v1899_v42 = vadd.f32 %v1891_v22, %v1870_v48  ;;  %v1945_v48 = vld [vmem:[#allocation3 + $0x348] sm:$0xff] }
  0xb4   : > { %3468 = vmatprep.mubr.f32.mxu0 %v4803_v61  ;;  %3524 = vmatpush3.msra.mxu0 %v1950_v19  ;;  %v1863_v19 = vmul.f32 %v4893_v27, %v4923_v36  ;;  %v2081_v22 = vmul.f32 %v4921_v16, %v4837_v11 }
  0xb5   : > { %3568 = vmatpush3.msra.mxu1 %v2109_v43  ;;  %3469 = vmatmul.mubr.f32.gmra.mxu0 %v4807_v40  ;;  %v1927_v21 = vadd.f32 %v1919_v58, %v1898_v5  ;;  %v1921_v43 = vmul.f32 %v4912_v31, %v4947_v13  ;;  %v4970_v58 = vld [vmem:[#allocation2 + $0x81] sm:$0xff] }
  0xb6   : > { %3525 = vmatprep.subr.mxu0 %v1949_v7  ;;  %3569 = vmatprep.subr.mxu1 %v2108_v51  ;;  %v1871_v0 = vadd.f32 %v1863_v19, %v1840_v17  ;;  %v1928_v17 = vadd.f32 %v1920_v52, %v1899_v42  ;;  %v4983_v52 = vld [vmem:[#allocation2 + $0x82] sm:$0xff] }
  0xb7   : > { %3512 = vmatprep.mubr.f32.mxu1 %v4832_v32  ;;  %3526 = vmatpush3.msra.mxu0 %v1949_v7  ;;  %v1864_v7 = vmul.f32 %v4893_v27, %v4941_v28  ;;  %v4963_v1 = vadd.f32 %v2078_v10, %v1927_v21  ;;  %v1894_v21 = vmul.f32 %v4899_v15, %v4970_v58 }
  0xb8   : > { %3570 = vmatpush3.msra.mxu1 %v2108_v51  ;;  %3527 = vmatprep.subr.mxu0 %v1948_v35  ;;  %v1946_v51 = vld [vmem:[#allocation3 + $0x350] sm:$0xff]  ;;  %v1900_v59 = vadd.f32 %v1892_v49, %v1871_v0 }
  0xb9   : > { %3513 = vmatmul.mubr.f32.gmra.mxu1 %v5929_v6  ;;  %3571 = vmatprep.subr.mxu1 %v2107_v38  ;;  %v4961_v6 = vld [vmem:[#allocation2 + $0x80] sm:$0xff]  ;;  %v1872_v60 = vadd.f32 %v1864_v7, %v1841_v29  ;;  %v4981_v29 = vadd.f32 %v2079_v30, %v1928_v17  ;;  %v2104_v30 = vld [vmem:[#allocation3 + $0x3c8] sm:$0xff] }
  0xba   : > { %3471 = vmatprep.mubr.f32.mxu0 %v4837_v11  ;;  %3528 = vmatpush3.msra.mxu0 %v1948_v35  ;;  %v2105_v35 = vld [vmem:[#allocation3 + $0x3d0] sm:$0xff]  ;;  %v1929_v5 = vadd.f32 %v1921_v43, %v1900_v59  ;;  %v5004_v7 = vld [vmem:[#allocation2 + $0x83] sm:$0xff] }
  0xbb   : > { %3572 = vmatpush3.msra.mxu1 %v2107_v38  ;;  %3472 = vmatmul.mubr.f32.gmra.mxu0 %v4849_v44  ;;  %v1865_v44 = vmul.f32 %v4893_v27, %v4961_v6  ;;  %v4979_v38 = vld [vmem:[#allocation2 + $0x90] sm:$0xff]  ;;  %v1901_v10 = vadd.f32 %v1893_v62, %v1872_v60  ;;  %v5009_v62 = vld [vmem:[#allocation2 + $0xa4] sm:$0xff]  ;;  %v2082_v59 = vmul.f32 %v4921_v16, %v5004_v7 }
  0xbc   : > { %3529 = vmatprep.subr.mxu0 %v1947_v25  ;;  %3573 = vmatprep.subr.mxu1 %v2106_v37  ;;  %v4994_v43 = vadd.f32 %v2080_v20, %v1929_v5  ;;  %v2103_v60 = vld [vmem:[#allocation3 + $0x3c0] sm:$0xff]  ;;  %v5017_v20 = vld [vmem:[#allocation2 + $0x93] sm:$0xff] }
  0xbd   : > { %3515 = vmatprep.mubr.f32.mxu1 %v4459_v39  ;;  %3530 = vmatpush3.msra.mxu0 %v1947_v25  ;;  %v4985_v39 = vld [vmem:[#allocation2 + $0x91] sm:$0xff]  ;;  %v1873_v19 = vadd.f32 %v1865_v44, %v4914_v56  ;;  %v1923_v25 = vmul.f32 %v4912_v31, %v4983_v52  ;;  %v1930_v49 = vadd.f32 %v1922_v24, %v1901_v10  ;;  %v1944_v24 = vld [vmem:[#allocation3 + $0x340] sm:$0xff] }
  0xbe   : > { %3574 = vmatpush3.msra.mxu1 %v2106_v37  ;;  %3531 = vmatprep.subr.mxu0 %v1946_v51  ;;  %v4998_v37 = vld [vmem:[#allocation2 + $0x92] sm:$0xff]  ;;  %v1895_v42 = vmul.f32 %v4899_v15, %v4985_v39 }
  0xbf   : > { %3516 = vmatmul.mubr.f32.gmra.mxu1 %v4534_v34  ;;  %3575 = vmatprep.subr.mxu1 %v2105_v35  ;;  %v1866_v34 = vmul.f32 %v4893_v27, %v4979_v38  ;;  %v1902_v56 = vadd.f32 %v1894_v21, %v1873_v19  ;;  %v1924_v0 = vmul.f32 %v4912_v31, %v4998_v37  ;;  %v1943_v44 = vld [vmem:[#allocation3 + $0x338] sm:$0xff]  ;;  %v1942_v19 = vld [vmem:[#allocation3 + $0x330] sm:$0xff] }
  0xc0   : > { %3474 = vmatprep.mubr.f32.mxu0 %v4869_v53  ;;  %3532 = vmatpush3.msra.mxu0 %v1946_v51  ;;  %v5006_v53 = vld [vmem:[#allocation2 + $0xa3] sm:$0xff]  ;;  %v5011_v17 = vadd.f32 %v2081_v22, %v1930_v49  ;;  %v2083_v22 = vmul.f32 %v4921_v16, %v5017_v20  ;;  %v2101_v21 = vld [vmem:[#allocation3 + $0x3b0] sm:$0xff] }
  0xc1   : > { %3576 = vmatpush3.msra.mxu1 %v2105_v35  ;;  %3475 = vmatmul.mubr.f32.gmra.mxu0 %v5006_v53  ;;  %v1874_v51 = vadd.f32 %v1866_v34, %v4926_v8  ;;  %v1931_v35 = vadd.f32 %v1923_v25, %v1902_v56  ;;  %v2102_v8 = vld [vmem:[#allocation3 + $0x3b8] sm:$0xff]  ;;  %v1941_v25 = vld [vmem:[#allocation3 + $0x328] sm:$0xff]  ;;  %v5034_v34 = vld [vmem:[%s5749_s1 + $0x25] ss:$0 sm:$0xff] }
  0xc2   : > { %3533 = vmatprep.subr.mxu0 %v1945_v48  ;;  %3577 = vmatprep.subr.mxu1 %v2104_v30  ;;  %v2100_v56 = vld [vmem:[#allocation3 + $0x3a8] sm:$0xff] }
  0xc3   : > { %3518 = vmatprep.mubr.f32.mxu1 %v4750_v4  ;;  %3534 = vmatpush3.msra.mxu0 %v1945_v48  ;;  %v1903_v5 = vadd.f32 %v1895_v42, %v1874_v51  ;;  %v2090_v10 = vadd.f32 %v2082_v59, %v1931_v35  ;;  %v5025_v48 = vld [vmem:[%s5749_s1 + $0x24] ss:$0 sm:$0xff]  ;;  %v2396_v42 = vmul.f32 %v5034_v34, %v4820_v41  ;;  %v5049_v41 = vld [vmem:[%s5749_s1 + $0x28] ss:$0 sm:$0xff] }
  0xc4   : > { %3578 = vmatpush3.msra.mxu1 %v2104_v30  ;;  %3535 = vmatprep.subr.mxu0 %v1944_v24  ;;  %v2237_v49 = vmul.f32 %v5025_v48, %v4809_v3  ;;  %v5051_v35 = vld [vmem:[#allocation2 + $0x85] sm:$0xff] }
  0xc5   : > { %3519 = vmatmul.mubr.f32.gmra.mxu1 %v5009_v62  ;;  %3579 = vmatprep.subr.mxu1 %v2103_v60  ;;  %v1932_v4 = vadd.f32 %v1924_v0, %v1903_v5  ;;  %v5041_v0 = vld [vmem:[%s5749_s1 + $0x26] ss:$0 sm:$0xff]  ;;  %5940 = vst [vmem:[#allocation39_spill] sm:$0xff] %v5051_v35  ;;  %v2096_v16 = vld [vmem:[#allocation3 + $0x388] sm:$0xff] }
  0xc6   : > { %3536 = vmatpush3.msra.mxu0 %v1944_v24  ;;  %3580 = vmatpush3.msra.mxu1 %v2103_v60  ;;  %v1940_v24 = vld [vmem:[#allocation3 + $0x320] sm:$0xff]  ;;  %v2245_v51 = vadd.f32 %v2237_v49, %v4963_v1  ;;  %v2425_v59 = vmul.f32 %v5041_v0, %v4829_v12  ;;  %v2456_v1 = vmul.f32 %v5049_v41, %v4901_v57 }
  0xc7   : > { %3537 = vmatprep.subr.mxu0 %v1943_v44  ;;  %3581 = vmatprep.subr.mxu1 %v2102_v8  ;;  %v5027_v30 = vadd.f32 %v2083_v22, %v1932_v4  ;;  %v2099_v60 = vld [vmem:[#allocation3 + $0x3a0] sm:$0xff]  ;;  %v2400_v49 = vmul.f32 %v5034_v34, %v5051_v35 }
  0xc8   : > { %3538 = vmatpush3.msra.mxu0 %v1943_v44  ;;  %3582 = vmatpush3.msra.mxu1 %v2102_v8  ;;  %v1939_v44 = vld [vmem:[#allocation3 + $0x318] sm:$0xff]  ;;  %v2404_v5 = vadd.f32 %v2396_v42, %v2245_v51  ;;  %v5055_v22 = vld [vmem:[#allocation2 + $0x84] sm:$0xff] }
  0xc9   : > { %3539 = vmatprep.subr.mxu0 %v1942_v19  ;;  %3583 = vmatprep.subr.mxu1 %v2101_v21  ;;  %v5057_v12 = vld [vmem:[#allocation2 + $0x86] sm:$0xff]  ;;  %v2098_v8 = vld [vmem:[#allocation3 + $0x398] sm:$0xff]  ;;  %v2241_v4 = vmul.f32 %v5025_v48, %v5055_v22 }
  0xca   : > { %3540 = vmatpush3.msra.mxu0 %v1942_v19  ;;  %3584 = vmatpush3.msra.mxu1 %v2101_v21  ;;  %5941 = vst [vmem:[#allocation44_spill] sm:$0xff] %v5057_v12  ;;  %v5062_v19 = vld [vmem:[%s5749_s1 + $0x29] ss:$0 sm:$0xff]  ;;  %v1938_v21 = vld [vmem:[#allocation3 + $0x310] sm:$0xff]  ;;  %v5073_v42 = vld [vmem:[%s5749_s1 + $0x2a] ss:$0 sm:$0xff] }
  0xcb   : > { %3541 = vmatprep.subr.mxu0 %v1941_v25  ;;  %3585 = vmatprep.subr.mxu1 %v2100_v56  ;;  %v2485_v57 = vmul.f32 %v5062_v19, %v4903_v54  ;;  %v2249_v51 = vadd.f32 %v2241_v4, %v2090_v10  ;;  %v2429_v54 = vmul.f32 %v5041_v0, %v5057_v12 }
  0xcc   : > { %3542 = vmatpush3.msra.mxu0 %v1941_v25  ;;  %3586 = vmatpush3.msra.mxu1 %v2100_v56  ;;  %v2433_v25 = vadd.f32 %v2425_v59, %v2404_v5  ;;  %v2097_v56 = vld [vmem:[#allocation3 + $0x390] sm:$0xff]  ;;  %v1937_v59 = vld [vmem:[#allocation3 + $0x308] sm:$0xff]  ;;  %v2514_v5 = vmul.f32 %v5073_v42, %v4932_v46  ;;  %v2460_v10 = vmul.f32 %v5049_v41, %v4979_v38 }
  0xcd   : > { %3543 = vmatprep.subr.mxu0 %v1940_v24  ;;  %3587 = vmatprep.subr.mxu1 %v2099_v60  ;;  %v2408_v31 = vadd.f32 %v2400_v49, %v2249_v51  ;;  %v2238_v4 = vmul.f32 %v5025_v48, %v4832_v32  ;;  %v2397_v12 = vmul.f32 %v5034_v34, %v4841_v2 }
  0xce   : > { %3544 = vmatpush3.msra.mxu0 %v1940_v24  ;;  %3588 = vmatpush3.msra.mxu1 %v2099_v60  ;;  %v5078_v24 = vld [vmem:[%s5749_s1 + $0x2b] ss:$0 sm:$0xff]  ;;  %v2464_v60 = vadd.f32 %v2456_v1, %v2433_v25  ;;  %v2489_v25 = vmul.f32 %v5062_v19, %v4985_v39  ;;  %v2426_v38 = vmul.f32 %v5041_v0, %v4859_v33 }
  0xcf   : > { %3545 = vmatprep.subr.mxu0 %v1939_v44  ;;  %3589 = vmatprep.subr.mxu1 %v2098_v8  ;;  %v2543_v35 = vmul.f32 %v5078_v24, %v4803_v61  ;;  %v2437_v49 = vadd.f32 %v2429_v54, %v2408_v31  ;;  %v2246_v51 = vadd.f32 %v2238_v4, %v4981_v29  ;;  %v2269_v31 = vld [vmem:[#allocation3 + $0x478] sm:$0xff] }
  0xd0   : > { %3546 = vmatpush3.msra.mxu0 %v1939_v44  ;;  %3590 = vmatpush3.msra.mxu1 %v2098_v8  ;;  %v1936_v44 = vld [vmem:[#allocation3 + $0x300] sm:$0xff]  ;;  %v2493_v1 = vadd.f32 %v2485_v57, %v2464_v60  ;;  %v2518_v57 = vmul.f32 %v5073_v42, %v4998_v37  ;;  %v2457_v2 = vmul.f32 %v5049_v41, %v4923_v36  ;;  %v2268_v36 = vld [vmem:[#allocation3 + $0x470] sm:$0xff] }
  0xd1   : > { %3547 = vmatprep.subr.mxu0 %v1938_v21  ;;  %3591 = vmatprep.subr.mxu1 %v2097_v56  ;;  %v2095_v8 = vld [vmem:[#allocation3 + $0x380] sm:$0xff]  ;;  %v2468_v39 = vadd.f32 %v2460_v10, %v2437_v49  ;;  %v2405_v60 = vadd.f32 %v2397_v12, %v2246_v51  ;;  %v2547_v33 = vmul.f32 %v5078_v24, %v5017_v20 }
  0xd2   : > { %3548 = vmatpush3.msra.mxu0 %v1938_v21  ;;  %3592 = vmatpush3.msra.mxu1 %v2097_v56  ;;  %v2522_v21 = vadd.f32 %v2514_v5, %v2493_v1  ;;  %v5117_v5 = vld [vmem:[#allocation2 + $0x64] sm:$0xff] }
  0xd3   : > { %3549 = vmatprep.subr.mxu0 %v1937_v59  ;;  %3593 = vmatprep.subr.mxu1 %v2096_v16  ;;  %v2497_v56 = vadd.f32 %v2489_v25, %v2468_v39  ;;  %v2434_v54 = vadd.f32 %v2426_v38, %v2405_v60  ;;  %v2239_v4 = vmul.f32 %v5025_v48, %v5117_v5  ;;  %v2266_v49 = vld [vmem:[#allocation3 + $0x460] sm:$0xff]  ;;  %v5143_v60 = vld [vmem:[#allocation2 + $0x75] sm:$0xff] }
  0xd4   : > { %3550 = vmatpush3.msra.mxu0 %v1937_v59  ;;  %3594 = vmatpush3.msra.mxu1 %v2096_v16  ;;  %v5101_v29 = vadd.f32 %v2543_v35, %v2522_v21  ;;  %v2486_v16 = vmul.f32 %v5062_v19, %v4934_v50  ;;  %v2515_v59 = vmul.f32 %v5073_v42, %v4947_v13 }
  0xd5   : > { %3551 = vmatprep.subr.mxu0 %v1936_v44  ;;  %3595 = vmatprep.subr.mxu1 %v2095_v8  ;;  %v2526_v35 = vadd.f32 %v2518_v57, %v2497_v56  ;;  %v2465_v12 = vadd.f32 %v2457_v2, %v2434_v54  ;;  %v2544_v50 = vmul.f32 %v5078_v24, %v4807_v40  ;;  %v2264_v2 = vld [vmem:[#allocation3 + $0x450] sm:$0xff] }
  0xd6   : > { %3552 = vmatpush3.msra.mxu0 %v1936_v44  ;;  %3553 = vmatprep.mubr.f32.mxu0 %v4907_v9  ;;  %v5113_v9 = vld [vmem:[#allocation2 + $0x65] sm:$0xff]  ;;  %v2247_v25 = vadd.f32 %v2239_v4, %v4994_v43  ;;  %v2458_v38 = vmul.f32 %v5049_v41, %v4941_v28  ;;  %v2265_v43 = vld [vmem:[#allocation3 + $0x458] sm:$0xff]  ;;  %v2487_v57 = vmul.f32 %v5062_v19, %v4949_v18 }
  0xd7   : > { %3596 = vmatpush3.msra.mxu1 %v2095_v8  ;;  %3597 = vmatprep.mubr.f32.mxu1 %v4795_v14  ;;  %5942 = vst [vmem:[#allocation8_spill] sm:$0xff] %v5113_v9  ;;  %v5119_v14 = vld [vmem:[#allocation2 + $0x66] sm:$0xff]  ;;  %v2494_v10 = vadd.f32 %v2486_v16, %v2465_v12  ;;  %v2398_v44 = vmul.f32 %v5034_v34, %v5113_v9  ;;  %5943 = vst [vmem:[#allocation9_spill] sm:$0xff] %v5143_v60  ;;  %v5149_v56 = vld [vmem:[#allocation2 + $0x74] sm:$0xff] }
  0xd8   : > { %3554 = vmatmul.mubr.f32.vlgmr.msra.gmra.mxu0 %v4932_v46  ;;  %3598 = vmatmul.mubr.f32.vlgmr.msra.gmra.mxu1 %v4803_v61  ;;  %v2267_v61 = vld [vmem:[#allocation3 + $0x468] sm:$0xff]  ;;  %v5121_v46 = vadd.f32 %v2547_v33, %v2526_v35  ;;  %v2427_v8 = vmul.f32 %v5041_v0, %v5119_v14  ;;  %v2516_v39 = vmul.f32 %v5073_v42, %v4959_v55  ;;  %v5151_v54 = vld [vmem:[#allocation2 + $0x76] sm:$0xff] }
  0xd9   : > { %3609 = vmatprep.subr.mxu0 %v2269_v31  ;;  %3653 = vmatprep.subr.mxu1 %v2269_v31  ;;  %v2523_v1 = vadd.f32 %v2515_v59, %v2494_v10  ;;  %v2545_v33 = vmul.f32 %v5078_v24, %v4837_v11  ;;  %5944 = vst [vmem:[#allocation13_spill] sm:$0xff] %v5151_v54  ;;  %v2263_v35 = vld [vmem:[#allocation3 + $0x448] sm:$0xff] }
  0xda   : > { %3610 = vmatpush3.msra.mxu0 %v2269_v31  ;;  %3669 = vmatpush3.msra.mxu1 %v2269_v31  ;;  %v2240_v16 = vmul.f32 %v5025_v48, %v5149_v56  ;;  %v2428_v59 = vmul.f32 %v5041_v0, %v5151_v54  ;;  %v2459_v4 = vmul.f32 %v5049_v41, %v4961_v6 }
  0xdb   : > { %3611 = vmatprep.subr.mxu0 %v2268_v36  ;;  %3654 = vmatprep.subr.mxu1 %v2268_v36  ;;  %v5133_v51 = vadd.f32 %v2544_v50, %v2523_v1  ;;  %v2260_v1 = vld [vmem:[#allocation3 + $0x430] sm:$0xff]  ;;  %v2517_v6 = vmul.f32 %v5073_v42, %v4983_v52 }
  0xdc   : > { %3556 = vmatprep.mubr.f32.mxu0 %v4947_v13  ;;  %3612 = vmatpush3.msra.mxu0 %v2268_v36  ;;  %v2406_v13 = vadd.f32 %v2398_v44, %v2247_v25  ;;  %v2488_v44 = vmul.f32 %v5062_v19, %v4970_v58  ;;  %v2258_v58 = vld [vmem:[#allocation3 + $0x420] sm:$0xff] }
  0xdd   : > { %3670 = vmatpush3.msra.mxu1 %v2268_v36  ;;  %3557 = vmatmul.mubr.f32.gmra.mxu0 %v4959_v55  ;;  %v5158_v36 = vld [vmem:[#allocation2 + $0xb2] sm:$0xff] }
  0xde   : > { %3613 = vmatprep.subr.mxu0 %v2267_v61  ;;  %3655 = vmatprep.subr.mxu1 %v2267_v61  ;;  %v2435_v21 = vadd.f32 %v2427_v8, %v2406_v13  ;;  %v2259_v8 = vld [vmem:[#allocation3 + $0x428] sm:$0xff]  ;;  %v2546_v13 = vmul.f32 %v5078_v24, %v5004_v7 }
  0xdf   : > { %3600 = vmatprep.mubr.f32.mxu1 %v4807_v40  ;;  %3614 = vmatpush3.msra.mxu0 %v2267_v61 }
  0xe0   : > { %3671 = vmatpush3.msra.mxu1 %v2267_v61  ;;  %3615 = vmatprep.subr.mxu0 %v2266_v49  ;;  %v2466_v40 = vadd.f32 %v2458_v38, %v2435_v21  ;;  %v2262_v61 = vld [vmem:[#allocation3 + $0x440] sm:$0xff]  ;;  %v2256_v21 = vld [vmem:[#allocation3 + $0x410] sm:$0xff] }
  0xe1   : > { %3601 = vmatmul.mubr.f32.gmra.mxu1 %v4837_v11  ;;  %3656 = vmatprep.subr.mxu1 %v2266_v49  ;;  %v2248_v11 = vadd.f32 %v2240_v16, %v5011_v17 }
  0xe2   : > { %3559 = vmatprep.mubr.f32.mxu0 %v4983_v52  ;;  %3616 = vmatpush3.msra.mxu0 %v2266_v49  ;;  %v2495_v31 = vadd.f32 %v2487_v57, %v2466_v40  ;;  %v2257_v52 = vld [vmem:[#allocation3 + $0x418] sm:$0xff]  ;;  %v2254_v57 = vld [vmem:[#allocation3 + $0x400] sm:$0xff] }
  0xe3   : > { %3672 = vmatpush3.msra.mxu1 %v2266_v49  ;;  %3560 = vmatmul.mubr.f32.gmra.mxu0 %v4998_v37  ;;  %v2399_v37 = vmul.f32 %v5034_v34, %v5143_v60  ;;  %v5181_v40 = vld [vmem:[#allocation2 + $0x94] sm:$0xff] }
  0xe4   : > { %3617 = vmatprep.subr.mxu0 %v2265_v43  ;;  %3657 = vmatprep.subr.mxu1 %v2265_v43  ;;  %v2524_v12 = vadd.f32 %v2516_v39, %v2495_v31  ;;  %5945 = vst [vmem:[#allocation40_spill] sm:$0xff] %v5181_v40  ;;  %v5189_v39 = vld [vmem:[#allocation2 + $0xb4] sm:$0xff] }
  0xe5   : > { %3603 = vmatprep.mubr.f32.mxu1 %v5004_v7  ;;  %3618 = vmatpush3.msra.mxu0 %v2265_v43  ;;  %v2407_v10 = vadd.f32 %v2399_v37, %v2248_v11  ;;  %v2255_v7 = vld [vmem:[#allocation3 + $0x408] sm:$0xff]  ;;  %v3711_v37 = vld [vmem:[%s5749_s1 + $0x16] ss:$0 sm:$0xff]  ;;  %v1259_v11 = vld [vmem:[#allocation2 + $0xa0] sm:$0xff] }
  0xe6   : > { %3673 = vmatpush3.msra.mxu1 %v2265_v43  ;;  %3619 = vmatprep.subr.mxu0 %v2264_v2  ;;  %v5164_v50 = vadd.f32 %v2545_v33, %v2524_v12  ;;  %v5271_v60 = vld [vmem:[#allocation2 + $0x96] sm:$0xff] }
  0xe7   : > { %3604 = vmatmul.mubr.f32.gmra.mxu1 %v5017_v20  ;;  %3658 = vmatprep.subr.mxu1 %v2264_v2  ;;  %v5167_v20 = vld [vmem:[#allocation2 + $0xb3] sm:$0xff]  ;;  %v2436_v17 = vadd.f32 %v2428_v59, %v2407_v10 }
  0xe8   : > { %3562 = vmatprep.mubr.f32.mxu0 %v4767_v26  ;;  %3620 = vmatpush3.msra.mxu0 %v2264_v2  ;;  %v2261_v26 = vld [vmem:[#allocation3 + $0x438] sm:$0xff] }
  0xe9   : > { %3674 = vmatpush3.msra.mxu1 %v2264_v2  ;;  %3563 = vmatmul.mubr.f32.gmra.mxu0 %v5158_v36  ;;  %v2467_v25 = vadd.f32 %v2459_v4, %v2436_v17  ;;  %v1201_v2 = vld [vmem:[#allocation2 + $0x95] sm:$0xff]  ;;  %v1289_v17 = vld [vmem:[#allocation2 + $0xa1] sm:$0xff] }
  0xea   : > { %3621 = vmatprep.subr.mxu0 %v2263_v35  ;;  %3659 = vmatprep.subr.mxu1 %v2263_v35  ;;  %v3712_v4 = vld [vmem:[%s5749_s1 + $0x18] ss:$0 sm:$0xff] }
  0xeb   : > { %3606 = vmatprep.mubr.f32.mxu1 %v5006_v53  ;;  %3622 = vmatpush3.msra.mxu0 %v2263_v35  ;;  %v2496_v49 = vadd.f32 %v2488_v44, %v2467_v25  ;;  %v3713_v25 = vld [vmem:[%s5749_s1 + $0x19] ss:$0 sm:$0xff] }
  0xec   : > { %3675 = vmatpush3.msra.mxu1 %v2263_v35  ;;  %3623 = vmatprep.subr.mxu0 %v2262_v61 }
  0xed   : > { %3607 = vmatmul.mubr.f32.gmra.mxu1 %v5167_v20  ;;  %3660 = vmatprep.subr.mxu1 %v2262_v61  ;;  %v2525_v38 = vadd.f32 %v2517_v6, %v2496_v49  ;;  %v1302_v6 = vmul.f32 %v3713_v25, %v1289_v17 }
  0xee   : > { %3624 = vmatpush3.msra.mxu0 %v2262_v61  ;;  %3676 = vmatpush3.msra.mxu1 %v2262_v61 }
  0xef   : > { %3625 = vmatprep.subr.mxu0 %v2261_v26  ;;  %3661 = vmatprep.subr.mxu1 %v2261_v26  ;;  %v5179_v43 = vadd.f32 %v2546_v13, %v2525_v38  ;;  %v3715_v38 = vld [vmem:[#allocation2 + $0xa2] sm:$0xff] }
  0xf0   : > { %3626 = vmatpush3.msra.mxu0 %v2261_v26  ;;  %3677 = vmatpush3.msra.mxu1 %v2261_v26  ;;  %v1273_v26 = vmul.f32 %v3712_v4, %v1259_v11 }
  0xf1   : > { %3627 = vmatprep.subr.mxu0 %v2260_v1  ;;  %3662 = vmatprep.subr.mxu1 %v2260_v1 }
  0xf2   : > { %3628 = vmatpush3.msra.mxu0 %v2260_v1  ;;  %3678 = vmatpush3.msra.mxu1 %v2260_v1 }
  0xf3   : > { %3629 = vmatprep.subr.mxu0 %v2259_v8  ;;  %3663 = vmatprep.subr.mxu1 %v2259_v8 }
  0xf4   : > { %3630 = vmatpush3.msra.mxu0 %v2259_v8  ;;  %3679 = vmatpush3.msra.mxu1 %v2259_v8 }
  0xf5   : > { %3631 = vmatprep.subr.mxu0 %v2258_v58  ;;  %3664 = vmatprep.subr.mxu1 %v2258_v58 }
  0xf6   : > { %3632 = vmatpush3.msra.mxu0 %v2258_v58  ;;  %3680 = vmatpush3.msra.mxu1 %v2258_v58  ;;  %v3714_v58 = vld [vmem:[%s5749_s1 + $0x1a] ss:$0 sm:$0xff] }
  0xf7   : > { %3633 = vmatprep.subr.mxu0 %v2257_v52  ;;  %3665 = vmatprep.subr.mxu1 %v2257_v52 }
  0xf8   : > { %3634 = vmatpush3.msra.mxu0 %v2257_v52  ;;  %3681 = vmatpush3.msra.mxu1 %v2257_v52  ;;  %v1331_v52 = vmul.f32 %v3715_v38, %v3714_v58 }
  0xf9   : > { %3635 = vmatprep.subr.mxu0 %v2256_v21  ;;  %3666 = vmatprep.subr.mxu1 %v2256_v21 }
  0xfa   : > { %3636 = vmatpush3.msra.mxu0 %v2256_v21  ;;  %3682 = vmatpush3.msra.mxu1 %v2256_v21 }
  0xfb   : > { %3637 = vmatprep.subr.mxu0 %v2255_v7  ;;  %3667 = vmatprep.subr.mxu1 %v2255_v7 }
  0xfc   : > { %3638 = vmatpush3.msra.mxu0 %v2255_v7  ;;  %3683 = vmatpush3.msra.mxu1 %v2255_v7 }
  0xfd   : > { %3639 = vmatprep.subr.mxu0 %v2254_v57  ;;  %3668 = vmatprep.subr.mxu1 %v2254_v57 }
  0xfe   : > { %3640 = vmatpush3.msra.mxu0 %v2254_v57  ;;  %3684 = vmatpush3.msra.mxu1 %v2254_v57 }
  0xff   : > { %3641 = vmatprep.mubr.f32.mxu0 %v4809_v3  ;;  %3647 = vmatprep.mubr.f32.mxu1 %v5055_v22  ;;  %v3710_v3 = vld [vmem:[%s5749_s1 + $0x15] ss:$0 sm:$0xff]  ;;  %v5196_v33 = vpop.f32.mrf.mxu0 }
 0x100   : > { %3642 = vmatmul.mubr.f32.vlgmr.msra.gmra.mxu0 %v4832_v32  ;;  %3648 = vmatmul.mubr.f32.vlgmr.msra.gmra.mxu1 %v5181_v40  ;;  %v1214_v31 = vmul.f32 %v3710_v3, %v1201_v2  ;;  %v1230_v32 = vld [vmem:[#allocation2 + $0x96] sm:$0xff]  ;;  %v5206_v61 = vpop.f32.mrf.mxu1 }
 0x101   : > { %3644 = vmatprep.mubr.f32.mxu0 %v5117_v5  ;;  %3650 = vmatprep.mubr.f32.mxu1 %v5009_v62  ;;  %v1243_v35 = vmul.f32 %v3711_v37, %v1230_v32  ;;  %v5202_v12 = vpop.f32.mrf.mxu0  ;;  %v3716_v3 = vld [vmem:[%s5749_s1 + $0x1b] ss:$0 sm:$0xff] }
 0x102   : > { %v1222_v16 = vadd.f32 %v1214_v31, %v4765_v45  ;;  %v5213_v44 = vpop.f32.mrf.mxu1  ;;  %v1490_v31 = vmul.f32 %v3716_v3, %v5006_v53  ;;  %v2242_v3 = vmul.f32 %v5025_v48, %v5181_v40 }
 0x104   : > { %3645 = vmatmul.mubr.f32.gmra.mxu0 %v5149_v56  ;;  %3651 = vmatmul.mubr.f32.gmra.mxu1 %v5189_v39  ;;  %v1251_v10 = vadd.f32 %v1243_v35, %v1222_v16 }
 0x106   : > { %v1281_v1 = vadd.f32 %v1273_v26, %v1251_v10  ;;  %v3717_v10 = vld [vmem:[%s5749_s1 + $0x1c] ss:$0 sm:$0xff]  ;;  %v5241_v26 = vld [vmem:[#allocation2 + $0xa5] sm:$0xff] }
 0x107   : > { %v1649_v4 = vmul.f32 %v3717_v10, %v5009_v62  ;;  %v1808_v58 = vmul.f32 %v4816_v23, %v5241_v26  ;;  %v5258_v10 = vld [vmem:[#allocation2 + $0x95] sm:$0xff] }
 0x108   : > { %v1310_v13 = vadd.f32 %v1302_v6, %v1281_v1  ;;  %v1807_v6 = vmul.f32 %v4816_v23, %v1201_v2 }
 0x10a   : > { %v1339_v57 = vadd.f32 %v1331_v52, %v1310_v13  ;;  %v5250_v52 = vld [vmem:[#allocation2 + $0xa6] sm:$0xff] }
 0x10c   : > { %v1498_v35 = vadd.f32 %v1490_v31, %v1339_v57 }
 0x10e   : > { %v1657_v13 = vadd.f32 %v1649_v4, %v1498_v35  ;;  %v1837_v35 = vmul.f32 %v4827_v47, %v5250_v52  ;;  %v2250_v4 = vadd.f32 %v2242_v3, %v5027_v30 }
 0x110   : > { %v1816_v2 = vadd.f32 %v1808_v58, %v1657_v13  ;;  %v2430_v58 = vmul.f32 %v5041_v0, %v5271_v60 }
 0x117   : > { %v5204_v59 = vpop.f32.mrf.mxu0 }
 0x118   : > { %v5218_v8 = vpop.f32.mrf.mxu1 }
 0x119   : > { %v5211_v45 = vpop.f32.mrf.mxu0 }
 0x11a   : > { %v5225_v21 = vpop.f32.mrf.mxu1 }
 0x121   : > { %v5220_v49 = vpop.f32.mrf.mxu0 }
 0x122   : > { %v5233_v16 = vpop.f32.mrf.mxu1 }
 0x123   : > { %v5227_v7 = vpop.f32.mrf.mxu0 }
 0x124   : > { %5946 = vst [vmem:[#allocation10_spill] sm:$0xff] %v5227_v7  ;;  %v5243_v1 = vpop.f32.mrf.mxu1 }
 0x125   : > { %5948 = vst [vmem:[#allocation45_spill] sm:$0xff] %v5243_v1  ;;  %v1845_v1 = vadd.f32 %v1837_v35, %v1816_v2 }
 0x12d   : > { %v5235_v37 = vpop.f32.mrf.mxu0 }
 0x12e   : > { %5947 = vst [vmem:[#allocation16_spill] sm:$0xff] %v5235_v37  ;;  %v5252_v57 = vpop.f32.mrf.mxu1  ;;  %v1815_v37 = vadd.f32 %v1807_v6, %v4888_v63  ;;  %v1867_v63 = vmul.f32 %v4893_v27, %v1259_v11  ;;  %v5278_v6 = vld [vmem:[#allocation2 + $0xb1] sm:$0xff]  ;;  %v1896_v11 = vmul.f32 %v4899_v15, %v1289_v17 }
 0x12f   : > { %v5245_v25 = vpop.f32.mrf.mxu0  ;;  %5950 = vst [vmem:[#allocation11_spill] sm:$0xff] %v5252_v57  ;;  %v2401_v57 = vmul.f32 %v5034_v34, %v5258_v10  ;;  %v1897_v2 = vmul.f32 %v4899_v15, %v5278_v6 }
 0x130   : > { %5949 = vst [vmem:[#allocation28_spill] sm:$0xff] %v5245_v25  ;;  %v1836_v25 = vmul.f32 %v4827_v47, %v1230_v32  ;;  %v5264_v23 = vpop.f32.mrf.mxu1  ;;  %v5274_v32 = vld [vmem:[#allocation2 + $0x20] sm:$0xff] }
 0x131   : > { %5952 = vst [vmem:[#allocation18_spill] sm:$0xff] %v5264_v23  ;;  %v1868_v47 = vmul.f32 %v5274_v32, %v4893_v27  ;;  %v2409_v30 = vadd.f32 %v2401_v57, %v2250_v4  ;;  %v5286_v23 = vld [vmem:[#allocation2 + $0xa0] sm:$0xff] }
 0x132   : > { %v2461_v57 = vmul.f32 %v5049_v41, %v5286_v23 }
 0x133   : > { %v2438_v35 = vadd.f32 %v2430_v58, %v2409_v30  ;;  %v5308_v58 = vld [vmem:[#allocation2 + $0xa2] sm:$0xff] }
 0x135   : > { %v2469_v15 = vadd.f32 %v2461_v57, %v2438_v35  ;;  %v5320_v35 = vld [vmem:[#allocation2 + $0xa3] sm:$0xff] }
 0x13e   : > { %v5256_v31 = vpop.f32.mrf.mxu0 }
 0x13f   : > { %5951 = vst [vmem:[#allocation25_spill] sm:$0xff] %v5256_v31  ;;  %v1844_v31 = vadd.f32 %v1836_v25, %v1815_v37  ;;  %v1876_v25 = vadd.f32 %v1868_v47, %v1845_v1 }
 0x140   : > { %v5269_v54 = vpop.f32.mrf.mxu0  ;;  %v5280_v13 = vpop.f32.mrf.mxu1 }
 0x141   : > { %5953 = vst [vmem:[#allocation47_spill] sm:$0xff] %v5269_v54  ;;  %5954 = vst [vmem:[#allocation19_spill] sm:$0xff] %v5280_v13  ;;  %v1875_v37 = vadd.f32 %v1867_v63, %v1844_v31  ;;  %v5297_v13 = vld [vmem:[#allocation2 + $0xa1] sm:$0xff]  ;;  %v5959_v31 = vld [vmem:[#allocation41_spill] sm:$0xff]  ;;  %v1905_v17 = vadd.f32 %v1897_v2, %v1876_v25  ;;  %v2519_v25 = vmul.f32 %v5073_v42, %v5308_v58 }
 0x142   : > { %v5291_v27 = vpop.f32.mrf.mxu1  ;;  %v1925_v63 = vmul.f32 %v3715_v38, %v5959_v31  ;;  %v1926_v1 = vmul.f32 %v5959_v31, %v5158_v36  ;;  %v2490_v47 = vmul.f32 %v5062_v19, %v5297_v13 }
 0x143   : > { %5956 = vst [vmem:[#allocation6_spill] sm:$0xff] %v5291_v27  ;;  %v1904_v54 = vadd.f32 %v1896_v11, %v1875_v37 }
 0x144   : > { %v1934_v7 = vadd.f32 %v1926_v1, %v1905_v17  ;;  %v2498_v11 = vadd.f32 %v2490_v47, %v2469_v15  ;;  %v2548_v17 = vmul.f32 %v5078_v24, %v5320_v35  ;;  %v5337_v15 = vld [vmem:[%s5749_s1 + $0x2c] ss:$0 sm:$0xff] }
 0x145   : > { %v1933_v27 = vadd.f32 %v1925_v63, %v1904_v54  ;;  %v2243_v54 = vmul.f32 %v5025_v48, %v5009_v62  ;;  %v5328_v63 = vld [vmem:[#allocation2 + $0xb5] sm:$0xff] }
 0x147   : > { %v5284_v3 = vpop.f32.mrf.mxu0 }
 0x148   : > { %5955 = vst [vmem:[#allocation23_spill] sm:$0xff] %v5284_v3 }
 0x149   : > { %v5295_v4 = vpop.f32.mrf.mxu0 }
 0x14a   : > { %5957 = vst [vmem:[#allocation24_spill] sm:$0xff] %v5295_v4 }
 0x14c   : > { %v5299_v3 = vpop.f32.mrf.mxu1 }
 0x14d   : > { %5958 = vst [vmem:[#allocation48_spill] sm:$0xff] %v5299_v3  ;;  %v5962_v3 = vld [vmem:[#allocation7_spill] sm:$0xff] }
 0x14e   : > { %v5310_v4 = vpop.f32.mrf.mxu1  ;;  %v2084_v37 = vmul.f32 %v5006_v53, %v5962_v3  ;;  %v2085_v38 = vmul.f32 %v5962_v3, %v5167_v20  ;;  %v2244_v53 = vmul.f32 %v5025_v48, %v5189_v39  ;;  %v2527_v3 = vadd.f32 %v2519_v25, %v2498_v11 }
 0x14f   : > { %5961 = vst [vmem:[#allocation12_spill] sm:$0xff] %v5310_v4  ;;  %v2402_v48 = vmul.f32 %v5034_v34, %v5241_v26  ;;  %v5360_v26 = vld [vmem:[%s5749_s1 + $0x2d] ss:$0 sm:$0xff] }
 0x150   : > { %v2092_v31 = vadd.f32 %v2084_v37, %v1933_v27  ;;  %v2093_v4 = vadd.f32 %v2085_v38, %v1934_v7  ;;  %v5341_v27 = vld [vmem:[#allocation2 + $0xa4] sm:$0xff]  ;;  %v2403_v37 = vmul.f32 %v5034_v34, %v5328_v63  ;;  %v5347_v38 = vld [vmem:[#allocation2 + $0xb6] sm:$0xff]  ;;  %v2556_v11 = vadd.f32 %v2548_v17, %v2527_v3 }
 0x151   : > { %v5306_v30 = vpop.f32.mrf.mxu0  ;;  %5967 = vst [vmem:[#allocation20_spill] sm:$0xff] %v5347_v38  ;;  %v3719_v17 = vld [vmem:[#allocation2 + $0x54] sm:$0xff] }
 0x152   : > { %5960 = vst [vmem:[#allocation26_spill] sm:$0xff] %v5306_v30  ;;  %v2251_v62 = vadd.f32 %v2243_v54, %v2092_v31  ;;  %v2252_v47 = vadd.f32 %v2244_v53, %v2093_v4  ;;  %v5362_v4 = vld [vmem:[#allocation2 + $0xa5] sm:$0xff]  ;;  %v2431_v31 = vmul.f32 %v5041_v0, %v5250_v52  ;;  %v2432_v53 = vmul.f32 %v5041_v0, %v5347_v38  ;;  %v5383_v0 = vld [vmem:[%s5749_s1 + $0x2e] ss:$0 sm:$0xff] }
 0x153   : > { %v5318_v2 = vpop.f32.mrf.mxu0  ;;  %5970 = vst [vmem:[#allocation34_spill] sm:$0xff] %v5362_v4  ;;  %v2576_v52 = vmul.f32 %v5337_v15, %v5181_v40  ;;  %v2631_v38 = vmul.f32 %v5383_v0, %v5119_v14 }
 0x154   : > { %5963 = vst [vmem:[#allocation49_spill] sm:$0xff] %v5318_v2  ;;  %v2410_v34 = vadd.f32 %v2402_v48, %v2251_v62  ;;  %v2411_v54 = vadd.f32 %v2403_v37, %v2252_v47  ;;  %v2602_v2 = vmul.f32 %v5360_v26, %v5113_v9  ;;  %v2606_v62 = vmul.f32 %v5360_v26, %v5362_v4  ;;  %v2588_v48 = vld [vmem:[#allocation2 + $0x55] sm:$0xff]  ;;  %v5385_v37 = vld [vmem:[#allocation2 + $0xa6] sm:$0xff] }
 0x155   : > { %v5322_v57 = vpop.f32.mrf.mxu1 }
 0x156   : > { %5964 = vst [vmem:[#allocation29_spill] sm:$0xff] %v5322_v57 }
 0x157   : > { %v5339_v7 = vpop.f32.mrf.mxu1 }
 0x158   : > { %5966 = vst [vmem:[#allocation31_spill] sm:$0xff] %v5339_v7  ;;  %v2577_v7 = vmul.f32 %v5337_v15, %v5341_v27 }
 0x159   : > { %v5332_v1 = vpop.f32.mrf.mxu0 }
 0x15a   : > { %5965 = vst [vmem:[#allocation30_spill] sm:$0xff] %v5332_v1  ;;  %v2573_v1 = vmul.f32 %v5337_v15, %v5117_v5  ;;  %v2585_v30 = vadd.f32 %v2577_v7, %v2556_v11  ;;  %v2440_v7 = vadd.f32 %v2432_v53, %v2411_v54 }
 0x15b   : > { %v5349_v25 = vpop.f32.mrf.mxu0 }
 0x15c   : > { %5968 = vst [vmem:[#allocation27_spill] sm:$0xff] %v5349_v25  ;;  %v2581_v25 = vadd.f32 %v2573_v1, %v5133_v51  ;;  %v2439_v51 = vadd.f32 %v2431_v31, %v2410_v34  ;;  %v2462_v1 = vmul.f32 %v5274_v32, %v5049_v41  ;;  %v2614_v9 = vadd.f32 %v2606_v62, %v2585_v30  ;;  %v2617_v41 = vld [vmem:[#allocation2 + $0x56] sm:$0xff]  ;;  %v5415_v62 = vld [vmem:[#allocation2 + $0xc2] sm:$0xff] }
 0x15d   : > { %v5355_v57 = vpop.f32.mrf.mxu1  ;;  %v2635_v34 = vmul.f32 %v5383_v0, %v5385_v37  ;;  %v2584_v31 = vadd.f32 %v2576_v52, %v5121_v46  ;;  %v2630_v52 = vmul.f32 %v5383_v0, %v2617_v41 }
 0x15e   : > { %5969 = vst [vmem:[#allocation51_spill] sm:$0xff] %v5355_v57  ;;  %v2572_v57 = vmul.f32 %v3719_v17, %v5337_v15  ;;  %v2610_v4 = vadd.f32 %v2602_v2, %v2581_v25  ;;  %v2470_v54 = vadd.f32 %v2462_v1, %v2439_v51  ;;  %v2491_v2 = vmul.f32 %v5062_v19, %v5278_v6 }
 0x15f   : > { %v5378_v47 = vpop.f32.mrf.mxu1  ;;  %v2471_v25 = vadd.f32 %v2462_v1, %v2440_v7  ;;  %v2647_v7 = vld [vmem:[#allocation2 + $0x60] sm:$0xff] }
 0x160   : > { %5972 = vst [vmem:[#allocation36_spill] sm:$0xff] %v5378_v47  ;;  %v2580_v17 = vadd.f32 %v2572_v57, %v5101_v29  ;;  %v2601_v47 = vmul.f32 %v5360_v26, %v2588_v48  ;;  %v5405_v29 = vld [vmem:[%s5749_s1 + $0x30] ss:$0 sm:$0xff]  ;;  %v2605_v57 = vmul.f32 %v5360_v26, %v5258_v10 }
 0x161   : > { %v2662_v51 = vmul.f32 %v5405_v29, %v4941_v28  ;;  %v5424_v1 = vmul.f32 %v5274_v32, %v5405_v29  ;;  %v2520_v28 = vmul.f32 %v5073_v42, %v5158_v36  ;;  %v2521_v32 = vmul.f32 %v5073_v42, %v5415_v62  ;;  %v5454_v42 = vld [vmem:[%s5749_s1 + $0x32] ss:$0 sm:$0xff] }
 0x162   : > { %v2609_v48 = vadd.f32 %v2601_v47, %v2580_v17  ;;  %v2613_v47 = vadd.f32 %v2605_v57, %v2584_v31 }
 0x164   : > { %v2638_v41 = vadd.f32 %v2630_v52, %v2609_v48 }
 0x170   : > { %v5368_v3 = vpop.f32.mrf.mxu0  ;;  %v5394_v40 = vpop.f32.mrf.mxu1 }
 0x171   : > { %5971 = vst [vmem:[#allocation35_spill] sm:$0xff] %v5368_v3  ;;  %v5392_v3 = vld [vmem:[#allocation2 + $0xc1] sm:$0xff]  ;;  %5974 = vst [vmem:[#allocation21_spill] sm:$0xff] %v5394_v40  ;;  %v2639_v40 = vadd.f32 %v2631_v38, %v2610_v4  ;;  %v2634_v38 = vmul.f32 %v5383_v0, %v5271_v60  ;;  %v2499_v4 = vadd.f32 %v2491_v2, %v2470_v54 }
 0x172   : > { %v5389_v11 = vpop.f32.mrf.mxu0  ;;  %v2492_v30 = vmul.f32 %v5062_v19, %v5392_v3  ;;  %v5417_v46 = vpop.f32.mrf.mxu1  ;;  %v2677_v2 = vld [vmem:[#allocation2 + $0x61] sm:$0xff] }
 0x173   : > { %5973 = vst [vmem:[#allocation32_spill] sm:$0xff] %v5389_v11  ;;  %5976 = vst [vmem:[#allocation52_spill] sm:$0xff] %v5417_v46  ;;  %v2643_v11 = vadd.f32 %v2635_v34, %v2614_v9  ;;  %v5441_v34 = vld [vmem:[#allocation2 + $0xc3] sm:$0xff]  ;;  %v2670_v46 = vadd.f32 %v2662_v51, %v2639_v40  ;;  %v2665_v40 = vmul.f32 %v5405_v29, %v5286_v23 }
 0x174   : > { %v2500_v9 = vadd.f32 %v2492_v30, %v2471_v25  ;;  %5979 = vst [vmem:[#allocation14_spill] sm:$0xff] %v5441_v34  ;;  %v2642_v30 = vadd.f32 %v2634_v38, %v2613_v47  ;;  %v2528_v48 = vadd.f32 %v2520_v28, %v2499_v4  ;;  %v5464_v51 = vld [vmem:[#allocation2 + $0xc4] sm:$0xff]  ;;  %v2720_v47 = vmul.f32 %v5454_v42, %v4959_v55 }
 0x175   : > { %v5413_v53 = vpop.f32.mrf.mxu0  ;;  %v2674_v57 = vadd.f32 %v5424_v1, %v2643_v11  ;;  %v2724_v38 = vmul.f32 %v5454_v42, %v5158_v36  ;;  %v2706_v4 = vld [vmem:[#allocation2 + $0x62] sm:$0xff]  ;;  %v2574_v28 = vmul.f32 %v5337_v15, %v5149_v56 }
 0x176   : > { %5975 = vst [vmem:[#allocation33_spill] sm:$0xff] %v5413_v53  ;;  %v5431_v53 = vld [vmem:[%s5749_s1 + $0x31] ss:$0 sm:$0xff]  ;;  %v2529_v11 = vadd.f32 %v2521_v32, %v2500_v9  ;;  %v2673_v55 = vadd.f32 %v2665_v40, %v2642_v30  ;;  %v2735_v40 = vld [vmem:[#allocation2 + $0x63] sm:$0xff] }
 0x177   : > { %v5439_v17 = vpop.f32.mrf.mxu0  ;;  %v2691_v31 = vmul.f32 %v5431_v53, %v4949_v18  ;;  %v2695_v54 = vmul.f32 %v5431_v53, %v5278_v6  ;;  %v2549_v18 = vmul.f32 %v5078_v24, %v5167_v20  ;;  %v2550_v6 = vmul.f32 %v5078_v24, %v5441_v34 }
 0x178   : > { %5978 = vst [vmem:[#allocation38_spill] sm:$0xff] %v5439_v17  ;;  %v2578_v24 = vmul.f32 %v5337_v15, %v5189_v39  ;;  %v2694_v32 = vmul.f32 %v5431_v53, %v5297_v13 }
 0x179   : > { %v5426_v19 = vpop.f32.mrf.mxu1  ;;  %v2699_v17 = vadd.f32 %v2691_v31, %v2670_v46  ;;  %v2703_v23 = vadd.f32 %v2695_v54, %v2674_v57  ;;  %v5480_v46 = vld [vmem:[%s5749_s1 + $0x33] ss:$0 sm:$0xff]  ;;  %v2557_v36 = vadd.f32 %v2549_v18, %v2528_v48  ;;  %v2558_v31 = vadd.f32 %v2550_v6, %v2529_v11 }
 0x17a   : > { %5977 = vst [vmem:[#allocation37_spill] sm:$0xff] %v5426_v19  ;;  %v2661_v19 = vmul.f32 %v5405_v29, %v2647_v7  ;;  %v2579_v57 = vmul.f32 %v5337_v15, %v5464_v51  ;;  %v2753_v13 = vmul.f32 %v5480_v46, %v5167_v20  ;;  %v1002_v20 = vadd.f32 %v5206_v61, %v5196_v33 }
 0x17b   : > { %v5449_v25 = vpop.f32.mrf.mxu1  ;;  %v5462_v52 = vpop.f32.mrf.mxu0  ;;  %v2732_v30 = vadd.f32 %v2724_v38, %v2703_v23  ;;  %v2586_v18 = vadd.f32 %v2578_v24, %v2557_v36  ;;  %v2748_v38 = vmul.f32 %v5480_v46, %v2735_v40  ;;  %v5520_v24 = vadd.f32 %v5218_v8, %v5204_v59  ;;  %v5984_v8 = vld [vmem:[#allocation10_spill] sm:$0xff] }
 0x17c   : > { %5980 = vst [vmem:[#allocation53_spill] sm:$0xff] %v5449_v25  ;;  %5981 = vst [vmem:[#allocation22_spill] sm:$0xff] %v5462_v52  ;;  %v2669_v7 = vadd.f32 %v2661_v19, %v2638_v41  ;;  %v2690_v25 = vmul.f32 %v5431_v53, %v2677_v2  ;;  %v2736_v19 = vld [vmem:[#allocation2 + $0x73] sm:$0xff]  ;;  %v2575_v41 = vmul.f32 %v5337_v15, %v5055_v22 }
 0x17d   : > { %v5488_v54 = vpop.f32.mrf.mxu0  ;;  %v2728_v52 = vadd.f32 %v2720_v47, %v2699_v17  ;;  %v2749_v34 = vmul.f32 %v5480_v46, %v2736_v19  ;;  %v5499_v22 = vld [vmem:[%s5749_s1 + $0x34] ss:$0 sm:$0xff]  ;;  %v2702_v15 = vadd.f32 %v2694_v32, %v2673_v55  ;;  %v2582_v17 = vadd.f32 %v2574_v28, %v5164_v50  ;;  %v5986_v55 = vld [vmem:[#allocation25_spill] sm:$0xff] }
 0x17e   : > { %v2698_v2 = vadd.f32 %v2690_v25, %v2669_v7  ;;  %v2723_v25 = vmul.f32 %v5454_v42, %v5308_v58  ;;  %v2583_v11 = vadd.f32 %v2575_v41, %v5179_v43  ;;  %v2587_v6 = vadd.f32 %v2579_v57, %v2558_v31  ;;  %v5987_v41 = vld [vmem:[#allocation9_spill] sm:$0xff] }
 0x17f   : > { %v5475_v9 = vpop.f32.mrf.mxu1  ;;  %v997_v47 = vadd.f32 %v5213_v44, %v5202_v12  ;;  %v2757_v58 = vadd.f32 %v2749_v34, %v2728_v52  ;;  %v2778_v50 = vmul.f32 %v5499_v22, %v5149_v56  ;;  %v2761_v28 = vadd.f32 %v2753_v13, %v2732_v30  ;;  %v5527_v12 = vld [vmem:[%s5749_s1 + $0x35] ss:$0 sm:$0xff]  ;;  %v5983_v56 = vld [vmem:[#allocation39_spill] sm:$0xff]  ;;  %v5985_v52 = vld [vmem:[#allocation45_spill] sm:$0xff] }
 0x180   : > { %5982 = vst [vmem:[#allocation42_spill] sm:$0xff] %v5475_v9  ;;  %v2719_v9 = vmul.f32 %v5454_v42, %v2706_v4  ;;  %v5512_v4 = vld [vmem:[#allocation2 + $0xc5] sm:$0xff]  ;;  %v2782_v43 = vmul.f32 %v5499_v22, %v5189_v39  ;;  %v2731_v61 = vadd.f32 %v2723_v25, %v2702_v15  ;;  %v2752_v44 = vmul.f32 %v5480_v46, %v5320_v35 }
 0x181   : > { %v5494_v48 = vpop.f32.mrf.mxu1  ;;  %v5505_v7 = vpop.f32.mrf.mxu0  ;;  %v2604_v34 = vmul.f32 %v5360_v26, %v5983_v56  ;;  %v5535_v39 = vadd.f32 %v5225_v21, %v5211_v45  ;;  %v5539_v59 = vadd.f32 %v5233_v16, %v5220_v49  ;;  %v2608_v35 = vmul.f32 %v5360_v26, %v5512_v4  ;;  %v5552_v21 = vld [vmem:[#allocation2 + $0xc6] sm:$0xff] }
 0x182   : > { %v2727_v23 = vadd.f32 %v2719_v9, %v2698_v2  ;;  %v5543_v9 = vadd.f32 %v5985_v52, %v5984_v8  ;;  %v1187_v32 = vadd.f32 %v5986_v55, %v1002_v20  ;;  %v2777_v45 = vmul.f32 %v5499_v22, %v5117_v5  ;;  %v5567_v5 = vld [vmem:[%s5749_s1 + $0x36] ss:$0 sm:$0xff] }
 0x183   : > { %v5545_v19 = vpop.f32.mrf.mxu0  ;;  %v2603_v49 = vmul.f32 %v5360_v26, %v5987_v41  ;;  %v2786_v31 = vadd.f32 %v2778_v50, %v2757_v58  ;;  %v2807_v57 = vmul.f32 %v5527_v12, %v5987_v41  ;;  %v2790_v2 = vadd.f32 %v2782_v43, %v2761_v28  ;;  %v5989_v20 = vld [vmem:[#allocation44_spill] sm:$0xff] }
 0x184   : > { %v2756_v36 = vadd.f32 %v2748_v38, %v2727_v23  ;;  %v2607_v30 = vmul.f32 %v5360_v26, %v5328_v63  ;;  %v2811_v40 = vmul.f32 %v5527_v12, %v5328_v63  ;;  %v2760_v15 = vadd.f32 %v2752_v44, %v2731_v61  ;;  %v5990_v38 = vld [vmem:[#allocation47_spill] sm:$0xff]  ;;  %v2650_v50 = vld [vmem:[#allocation2 + $0x90] sm:$0xff]  ;;  %v5992_v61 = vld [vmem:[#allocation13_spill] sm:$0xff] }
 0x185   : > { %v5522_v33 = vpop.f32.mrf.mxu1  ;;  %v2612_v25 = vadd.f32 %v2604_v34, %v2583_v11  ;;  %v2633_v23 = vmul.f32 %v5383_v0, %v5989_v20  ;;  %v1186_v58 = vadd.f32 %v5990_v38, %v997_v47  ;;  %v2781_v26 = vmul.f32 %v5499_v22, %v5341_v27  ;;  %v5991_v52 = vld [vmem:[#allocation8_spill] sm:$0xff]  ;;  %v5995_v38 = vld [vmem:[#allocation11_spill] sm:$0xff] }
 0x186   : > { %v2616_v28 = vadd.f32 %v2608_v35, %v2587_v6  ;;  %v2637_v43 = vmul.f32 %v5383_v0, %v5552_v21  ;;  %v2785_v8 = vadd.f32 %v2777_v45, %v2756_v36  ;;  %v2806_v63 = vmul.f32 %v5527_v12, %v5991_v52  ;;  %v2649_v6 = vld [vmem:[#allocation2 + $0x80] sm:$0xff]  ;;  %v5993_v55 = vld [vmem:[#allocation20_spill] sm:$0xff] }
 0x187   : > { %v5562_v13 = vpop.f32.mrf.mxu1  ;;  %v2611_v11 = vadd.f32 %v2603_v49, %v2582_v17  ;;  %v2632_v44 = vmul.f32 %v5383_v0, %v5992_v61  ;;  %v2815_v47 = vadd.f32 %v2807_v57, %v2786_v31  ;;  %v2836_v27 = vmul.f32 %v5567_v5, %v5992_v61  ;;  %v5994_v49 = vld [vmem:[#allocation16_spill] sm:$0xff]  ;;  %v5996_v57 = vld [vmem:[#allocation34_spill] sm:$0xff] }
 0x188   : > { %5988 = vst [vmem:[#allocation43_spill] sm:$0xff] %v5562_v13  ;;  %v2615_v35 = vadd.f32 %v2607_v30, %v2586_v18  ;;  %v2636_v41 = vmul.f32 %v5383_v0, %v5993_v55  ;;  %v2819_v20 = vadd.f32 %v2811_v40, %v2790_v2  ;;  %v2840_v36 = vmul.f32 %v5567_v5, %v5993_v55  ;;  %v2680_v13 = vld [vmem:[#allocation2 + $0x91] sm:$0xff]  ;;  %v5999_v55 = vld [vmem:[#allocation18_spill] sm:$0xff] }
 0x189   : > { %v2641_v45 = vadd.f32 %v2633_v23, %v2612_v25  ;;  %v2664_v17 = vmul.f32 %v5405_v29, %v2650_v50  ;;  %v5595_v52 = vadd.f32 %v5995_v38, %v5994_v49  ;;  %v2789_v31 = vadd.f32 %v2781_v26, %v2760_v15  ;;  %v2684_v40 = vld [vmem:[#allocation2 + $0xd1] sm:$0xff]  ;;  %v6000_v15 = vld [vmem:[#allocation19_spill] sm:$0xff]  ;;  %v6001_v38 = vld [vmem:[#allocation6_spill] sm:$0xff] }
 0x18a   : > { %v2810_v61 = vmul.f32 %v5527_v12, %v5996_v57  ;;  %v2645_v18 = vadd.f32 %v2637_v43, %v2616_v28  ;;  %v2814_v0 = vadd.f32 %v2806_v63, %v2785_v8  ;;  %v2835_v2 = vmul.f32 %v5567_v5, %v5119_v14  ;;  %v5998_v50 = vld [vmem:[#allocation28_spill] sm:$0xff]  ;;  %v2679_v8 = vld [vmem:[#allocation2 + $0x81] sm:$0xff] }
 0x18b   : > { %v2640_v25 = vadd.f32 %v2632_v44, %v2611_v11  ;;  %v2663_v23 = vmul.f32 %v5405_v29, %v2649_v6  ;;  %v5606_v49 = vadd.f32 %v5999_v55, %v5998_v50  ;;  %v1463_v26 = vadd.f32 %v6000_v15, %v1187_v32  ;;  %v2709_v43 = vld [vmem:[#allocation2 + $0x92] sm:$0xff] }
 0x18c   : > { %v5610_v57 = vadd.f32 %v6001_v38, %v1186_v58  ;;  %v2644_v63 = vadd.f32 %v2636_v41, %v2615_v35  ;;  %v5616_v14 = vadd.f32 %v2836_v27, %v2815_v47  ;;  %v5618_v11 = vadd.f32 %v2840_v36, %v2819_v20  ;;  %v2738_v6 = vld [vmem:[#allocation2 + $0x93] sm:$0xff] }
 0x18d   : > { %v2672_v29 = vadd.f32 %v2664_v17, %v2641_v45  ;;  %v2693_v44 = vmul.f32 %v5431_v53, %v2680_v13  ;;  %v2818_v50 = vadd.f32 %v2810_v61, %v2789_v31  ;;  %v2839_v32 = vmul.f32 %v5567_v5, %v5385_v37  ;;  %v2713_v47 = vld [vmem:[#allocation2 + $0xd2] sm:$0xff]  ;;  %v2708_v31 = vld [vmem:[#allocation2 + $0x82] sm:$0xff] }
 0x18e   : > { %v2676_v58 = vadd.f32 %v5424_v1, %v2645_v18  ;;  %v2697_v55 = vmul.f32 %v5431_v53, %v2684_v40  ;;  %v5625_v15 = vadd.f32 %v2835_v2, %v2814_v0  ;;  %v2722_v35 = vmul.f32 %v5454_v42, %v2709_v43  ;;  %v6003_v36 = vld [vmem:[#allocation40_spill] sm:$0xff]  ;;  %v6004_v0 = vld [vmem:[#allocation23_spill] sm:$0xff] }
 0x18f   : > { %v2671_v27 = vadd.f32 %v2663_v23, %v2640_v25  ;;  %v2692_v41 = vmul.f32 %v5431_v53, %v2679_v8  ;;  %v2751_v13 = vmul.f32 %v5480_v46, %v2738_v6  ;;  %v5634_v45 = vmul.f32 %v5499_v22, %v6003_v36  ;;  %v2742_v37 = vld [vmem:[#allocation2 + $0xd3] sm:$0xff]  ;;  %v2737_v6 = vld [vmem:[#allocation2 + $0x83] sm:$0xff] }
 0x190   : > { %6002 = vst [vmem:[#allocation15_spill] sm:$0xff] %v5625_v15  ;;  %v2771_v17 = vld [vmem:[#allocation2 + $0xd4] sm:$0xff]  ;;  %v2675_v61 = vadd.f32 %v5424_v1, %v2644_v63  ;;  %v2696_v18 = vmul.f32 %v5431_v53, %v5392_v3  ;;  %v1189_v2 = vadd.f32 %v6004_v0, %v5520_v24  ;;  %v2701_v25 = vadd.f32 %v2693_v44, %v2672_v29  ;;  %v6006_v1 = vld [vmem:[#allocation26_spill] sm:$0xff] }
 0x191   : > { %v5645_v23 = vmul.f32 %v5527_v12, %v5258_v10  ;;  %v5649_v38 = vmul.f32 %v5567_v5, %v5271_v60  ;;  %v2800_v43 = vld [vmem:[#allocation2 + $0xd5] sm:$0xff]  ;;  %v1191_v8 = vadd.f32 %v6006_v1, %v5539_v59  ;;  %v5653_v63 = vadd.f32 %v2839_v32, %v2818_v50 }
 0x192   : > { %v2705_v3 = vadd.f32 %v2697_v55, %v2676_v58  ;;  %v2726_v53 = vmul.f32 %v5454_v42, %v2713_v47  ;;  %v2829_v24 = vld [vmem:[#allocation2 + $0xd6] sm:$0xff]  ;;  %v2755_v29 = vmul.f32 %v5480_v46, %v2742_v37  ;;  %v2784_v10 = vmul.f32 %v5499_v22, %v2771_v17 }
 0x193   : > { %6007 = vst [vmem:[#allocation54_spill] sm:$0xff] %v5653_v63  ;;  %v2700_v44 = vadd.f32 %v2692_v41, %v2671_v27  ;;  %v2721_v36 = vmul.f32 %v5454_v42, %v2708_v31  ;;  %v6008_v60 = vld [vmem:[#allocation49_spill] sm:$0xff]  ;;  %v5662_v59 = vmul.f32 %v5527_v12, %v2800_v43  ;;  %v2704_v50 = vadd.f32 %v2696_v18, %v2675_v61  ;;  %v6009_v58 = vld [vmem:[#allocation24_spill] sm:$0xff]  ;;  %v6011_v31 = vld [vmem:[#allocation30_spill] sm:$0xff] }
 0x194   : > { %v1190_v0 = vadd.f32 %v6008_v60, %v5543_v9  ;;  %v2725_v32 = vmul.f32 %v5454_v42, %v5415_v62  ;;  %v1188_v55 = vadd.f32 %v6009_v58, %v5535_v39  ;;  %v2730_v37 = vadd.f32 %v2722_v35, %v2701_v25  ;;  %v6010_v17 = vld [vmem:[#allocation29_spill] sm:$0xff]  ;;  %v3720_v61 = vld [vmem:[#allocation2 + $0x84] sm:$0xff] }
 0x195   : > { %v5669_v27 = vmul.f32 %v5567_v5, %v2829_v24  ;;  %v2750_v41 = vmul.f32 %v5480_v46, %v2737_v6  ;;  %v1467_v9 = vadd.f32 %v6010_v17, %v1191_v8  ;;  %v1193_v43 = vadd.f32 %v6011_v31, %v5595_v52  ;;  %v6012_v62 = vld [vmem:[#allocation35_spill] sm:$0xff]  ;;  %v6013_v25 = vld [vmem:[#allocation14_spill] sm:$0xff]  ;;  %v6017_v31 = vld [vmem:[#allocation48_spill] sm:$0xff] }
 0x196   : > { %v2734_v1 = vadd.f32 %v2726_v53, %v2705_v3  ;;  %v2779_v18 = vmul.f32 %v3720_v61, %v5499_v22  ;;  %v1622_v42 = vadd.f32 %v6012_v62, %v1463_v26  ;;  %v2729_v60 = vadd.f32 %v2721_v36, %v2700_v44  ;;  %v3721_v39 = vld [vmem:[#allocation2 + $0x85] sm:$0xff]  ;;  %v6018_v26 = vld [vmem:[#allocation32_spill] sm:$0xff] }
 0x197   : > { %v2808_v35 = vmul.f32 %v3721_v39, %v5527_v12  ;;  %v2754_v24 = vmul.f32 %v5480_v46, %v6013_v25  ;;  %v6014_v58 = vld [vmem:[#allocation31_spill] sm:$0xff]  ;;  %v6016_v63 = vld [vmem:[#allocation22_spill] sm:$0xff]  ;;  %v2733_v53 = vadd.f32 %v2725_v32, %v2704_v50  ;;  %v1465_v61 = vadd.f32 %v6017_v31, %v1189_v2  ;;  %v6019_v46 = vld [vmem:[#allocation12_spill] sm:$0xff] }
 0x198   : > { %v5556_v16 = vpop.f32.mrf.mxu0  ;;  %v5578_v56 = vpop.f32.mrf.mxu1  ;;  %v1466_v6 = vadd.f32 %v6014_v58, %v1190_v0  ;;  %v6015_v8 = vld [vmem:[#allocation27_spill] sm:$0xff]  ;;  %v1626_v52 = vadd.f32 %v6016_v63, %v1467_v9  ;;  %v1621_v44 = vadd.f32 %v6018_v26, %v5610_v57  ;;  %v2759_v62 = vadd.f32 %v2751_v13, %v2730_v37  ;;  %v6021_v9 = vld [vmem:[#allocation21_spill] sm:$0xff]  ;;  %v6023_v13 = vld [vmem:[#allocation36_spill] sm:$0xff] }
 0x199   : > { %v1192_v17 = vadd.f32 %v6015_v8, %v5606_v49  ;;  %v3722_v39 = vld [vmem:[#allocation2 + $0x86] sm:$0xff]  ;;  %v1464_v0 = vadd.f32 %v6019_v46, %v1188_v55  ;;  %v2763_v63 = vadd.f32 %v2755_v29, %v2734_v1  ;;  %v1781_v50 = vadd.f32 %v6021_v9, %v1622_v42  ;;  %v6022_v32 = vld [vmem:[#allocation33_spill] sm:$0xff] }
 0x19a   : > { %v5584_v34 = vpop.f32.mrf.mxu0  ;;  %v5599_v30 = vpop.f32.mrf.mxu1  ;;  %v6020_v25 = vld [vmem:[#allocation51_spill] sm:$0xff]  ;;  %v1625_v49 = vadd.f32 %v5488_v54, %v1466_v6  ;;  %v1624_v2 = vadd.f32 %v6022_v32, %v1465_v61  ;;  %v2758_v8 = vadd.f32 %v2750_v41, %v2729_v60  ;;  %v2783_v57 = vmul.f32 %v5499_v22, %v5464_v51  ;;  %v6024_v31 = vld [vmem:[#allocation42_spill] sm:$0xff] }
 0x19b   : > { %5997 = vst [vmem:[#allocation46_spill] sm:$0xff] %v5599_v30  ;;  %v1469_v58 = vadd.f32 %v6020_v25, %v1193_v43  ;;  %v1468_v37 = vadd.f32 %v6023_v13, %v1192_v17  ;;  %v1785_v26 = vadd.f32 %v6024_v31, %v1626_v52  ;;  %v2762_v46 = vadd.f32 %v2754_v24, %v2733_v53  ;;  %v6025_v43 = vld [vmem:[#allocation52_spill] sm:$0xff]  ;;  %v6026_v54 = vld [vmem:[#allocation38_spill] sm:$0xff]  ;;  %v6027_v17 = vld [vmem:[#allocation37_spill] sm:$0xff] }
 0x19c   : > { %v1780_v25 = vadd.f32 %v6025_v43, %v1621_v44  ;;  %v1623_v29 = vadd.f32 %v6026_v54, %v1464_v0  ;;  %v2058_v1 = vadd.f32 %v5556_v16, %v1781_v50  ;;  %v2788_v41 = vadd.f32 %v5634_v45, %v2759_v62  ;;  %v6028_v45 = vld [vmem:[#allocation53_spill] sm:$0xff]  ;;  %v6029_v62 = vld [vmem:[#allocation43_spill] sm:$0xff] }
 0x19d   : > { %v5612_v28 = vpop.f32.mrf.mxu0  ;;  %v1784_v60 = vadd.f32 %v5494_v48, %v1625_v49  ;;  %v1627_v51 = vadd.f32 %v5545_v19, %v1468_v37  ;;  %v2792_v6 = vadd.f32 %v2784_v10, %v2763_v63  ;;  %v1783_v52 = vadd.f32 %v6027_v17, %v1624_v2 }
 0x19e   : > { %v2787_v24 = vadd.f32 %v2779_v18, %v2758_v8  ;;  %v2812_v53 = vmul.f32 %v5527_v12, %v5512_v4  ;;  %v2791_v0 = vadd.f32 %v2783_v57, %v2762_v46  ;;  %v2841_v48 = vmul.f32 %v5567_v5, %v5552_v21 }
 0x19f   : > { %v5629_v20 = vpop.f32.mrf.mxu0  ;;  %v1782_v19 = vadd.f32 %v6028_v45, %v1623_v29  ;;  %v2060_v10 = vadd.f32 %v5612_v28, %v1783_v52  ;;  %v2817_v18 = vadd.f32 %v5645_v23, %v2788_v41  ;;  %v1786_v4 = vadd.f32 %v6029_v62, %v1627_v51 }
 0x1a1   : > { %v5614_v30 = vpop.f32.mrf.mxu1  ;;  %v2059_v21 = vadd.f32 %v5629_v20, %v1782_v19 }
 0x1a2   : > { %v6030_v49 = vld [vmem:[#allocation46_spill] sm:$0xff] }
 0x1a3   : > { %v5641_v40 = vpop.f32.mrf.mxu1  ;;  %v3561_v15 = vpop.f32.mrf.mxu0 }
 0x1a4   : > { %6005 = vst [vmem:[#allocation17_spill] sm:$0xff] %v5641_v40  ;;  %v5688_v40 = vmul.f32 %v3722_v39, %v5567_v5  ;;  %v1628_v39 = vadd.f32 %v5505_v7, %v1469_v58  ;;  %v2062_v22 = vadd.f32 %v3561_v15, %v1785_v26  ;;  %v2057_v7 = vadd.f32 %v5584_v34, %v1780_v25 }
 0x1a5   : > { %v2038_v3 = vpop.f32.mrf.mxu0  ;;  %v2217_v15 = vadd.f32 %v5578_v56, %v2058_v1  ;;  %v2821_v58 = vadd.f32 %v5662_v59, %v2792_v6  ;;  %v2816_v56 = vadd.f32 %v2808_v35, %v2787_v24  ;;  %v2219_v59 = vadd.f32 %v5614_v30, %v2060_v10  ;;  %v6032_v30 = vld [vmem:[#allocation15_spill] sm:$0xff] }
 0x1a6   : > { %v1787_v61 = vadd.f32 %v5522_v33, %v1628_v39  ;;  %v2061_v16 = vadd.f32 %v2038_v3, %v1784_v60  ;;  %v2216_v63 = vadd.f32 %v6030_v49, %v2057_v7  ;;  %v2846_v35 = vadd.f32 %v5649_v38, %v2817_v18 }
 0x1a7   : > { %v3605_v47 = vpop.f32.mrf.mxu1  ;;  %v2850_v31 = vadd.f32 %v5669_v27, %v2821_v58  ;;  %v2845_v43 = vadd.f32 %v5688_v40, %v2816_v56 }
 0x1a8   : > { %v2221_v12 = vadd.f32 %v3605_v47, %v2062_v22  ;;  %v2820_v47 = vadd.f32 %v2812_v53, %v2791_v0 }
 0x1a9   : > { %v2197_v36 = vpop.f32.mrf.mxu1  ;;  %v3564_v55 = vpop.f32.mrf.mxu0 }
 0x1aa   : > { %v2064_v33 = vadd.f32 %v3564_v55, %v1787_v61  ;;  %v2220_v50 = vadd.f32 %v2197_v36, %v2061_v16  ;;  %v2849_v29 = vadd.f32 %v2841_v48, %v2820_v47 }
 0x1ab   : > { %v2048_v44 = vpop.f32.mrf.mxu0  ;;  %v6031_v26 = vld [vmem:[#allocation17_spill] sm:$0xff] }
 0x1ac   : > { %v2063_v32 = vadd.f32 %v2048_v44, %v1786_v4  ;;  %v2218_v39 = vadd.f32 %v6031_v26, %v2059_v21 }
 0x1ad   : > { %v3608_v42 = vpop.f32.mrf.mxu1 }
 0x1ae   : > { %v2223_v36 = vadd.f32 %v3608_v42, %v2064_v33 }
 0x1af   : > { %v2207_v34 = vpop.f32.mrf.mxu1 }
 0x1b0   : > { %v2222_v38 = vadd.f32 %v2207_v34, %v2063_v32 }
 0x1c0   : > { %v3643_v3 = vpop.f32.mrf.mxu0  ;;  %v3649_v9 = vpop.f32.mrf.mxu1 }
 0x1c1   : > { %v2376_v5 = vadd.f32 %v3643_v3, %v2217_v15  ;;  %v2380_v28 = vadd.f32 %v3649_v9, %v2221_v12 }
 0x1c2   : > { %v2336_v23 = vpop.f32.mrf.mxu0  ;;  %v2356_v8 = vpop.f32.mrf.mxu1 }
 0x1c3   : > { %v2852_v2 = vadd.f32 %v5616_v14, %v2376_v5  ;;  %v2375_v20 = vadd.f32 %v2336_v23, %v2216_v63  ;;  %v2856_v57 = vadd.f32 %v5618_v11, %v2380_v28  ;;  %v2379_v13 = vadd.f32 %v2356_v8, %v2220_v50  ;;  %v6033_v11 = vld [vmem:[#allocation54_spill] sm:$0xff] }
 0x1c4   : > { %v3646_v37 = vpop.f32.mrf.mxu0  ;;  %v3652_v46 = vpop.f32.mrf.mxu1 }
 0x1c5   : > { %2860 = vst [vmem:[%s5726_s29 + $0x8] sm:$0xff] %v2852_v2  ;;  %v2851_v55 = vadd.f32 %v6032_v30, %v2375_v20  ;;  %v2378_v14 = vadd.f32 %v3646_v37, %v2219_v59  ;;  %2864 = vst [vmem:[%s5726_s29 + $0x28] sm:$0xff] %v2856_v57  ;;  %v2855_v25 = vadd.f32 %v6033_v11, %v2379_v13 }
 0x1c6   : > { %v2382_v54 = vadd.f32 %v3652_v46, %v2223_v36  ;;  %v2346_v27 = vpop.f32.mrf.mxu0  ;;  %v2366_v41 = vpop.f32.mrf.mxu1 }
 0x1c7   : > { %2859 = vst [vmem:[%s5726_s29] sm:$0xff] %v2851_v55  ;;  %v2854_v1 = vadd.f32 %v2846_v35, %v2378_v14  ;;  %v2377_v42 = vadd.f32 %v2346_v27, %v2218_v39  ;;  %2863 = vst [vmem:[%s5726_s29 + $0x20] sm:$0xff] %v2855_v25  ;;  %v2381_v51 = vadd.f32 %v2366_v41, %v2222_v38 }
 0x1c8   : > { %v2858_v60 = vadd.f32 %v2850_v31, %v2382_v54 }
 0x1c9   : > { %2862 = vst [vmem:[%s5726_s29 + $0x18] sm:$0xff] %v2854_v1  ;;  %v2853_v22 = vadd.f32 %v2845_v43, %v2377_v42  ;;  %v2857_v40 = vadd.f32 %v2849_v29, %v2381_v51 }
 0x1ca   : > { %2866 = vst [vmem:[%s5726_s29 + $0x38] sm:$0xff] %v2858_v60 }
 0x1cb   : > { %2861 = vst [vmem:[%s5726_s29 + $0x10] sm:$0xff] %v2853_v22  ;;  %2865 = vst [vmem:[%s5726_s29 + $0x30] sm:$0xff] %v2857_v40 }
 0x1cc PF: > { %s15_s15 = sadd.s32 1, %s3759_s15  }
 0x1cd   : > { %p12_p1 = scmp.ge.s32.totalorder %s15_s15, 4  }
 0x1cf   :  { %14 = sbr.rel (!%p12_p1) target bundleno = 1 (0x1), region = 92 }
 0x1d4   :  { %2888 = vsyncpa [#allocation4], 1 }
 0x1d5   :  { %2890 = vsyncpa [#allocation4 + $0x1], 1 }

</bundles_post_ra>
